<compile_context>
chip_gen: v5e
topology: v5e:2x2
jax: 0.10.0
libtpu: 0.0.40
codegen_flags: <defaults>
</compile_context>

<pallas_src>
import functools

import jax
import jax.numpy as jnp
from jax import lax
from jax.experimental import pallas as pl
from jax.experimental.pallas import tpu as pltpu


def _round_up(x, m):
    return (x + m - 1) // m * m


# ----------------------------------------------------------------------------
# Pallas GRU kernels: one grid step == one block of Tb timesteps
# ----------------------------------------------------------------------------
def _gru_step(gi, h, whh, bhh, Hp):
    """One GRU cell update (PyTorch gate order r, z, n); slices are 128-aligned."""
    gh = jnp.dot(h, whh, preferred_element_type=jnp.float32) + bhh
    r = jax.nn.sigmoid(gi[:, :Hp] + gh[:, :Hp])
    z = jax.nn.sigmoid(gi[:, Hp:2 * Hp] + gh[:, Hp:2 * Hp])
    n = jnp.tanh(gi[:, 2 * Hp:] + r * gh[:, 2 * Hp:])
    return (1.0 - z) * n + z * h


def _gru_block_kernel_with_out(len_ref, gi_ref, whh_ref, bhh_ref,
                               out_ref, hN_ref):
    """GRU block; writes per-timestep outputs AND the running hidden state."""
    tb = pl.program_id(0)
    Tb = gi_ref.shape[0]
    Hp = hN_ref.shape[1]

    @pl.when(tb == 0)
    def _():
        hN_ref[...] = jnp.zeros_like(hN_ref)            # h0 = zeros

    lens = len_ref[...]                                 # (Np, 1) int32, resident
    whh = whh_ref[...]                                  # (Hp, 3Hp), resident
    bhh = bhh_ref[...]                                  # (1, 3Hp), resident
    t0 = tb * Tb

    def step(k, h):
        gi = gi_ref[k]                                  # precomputed x @ W_ih + b_ih
        h_new = _gru_step(gi, h, whh, bhh, Hp)
        mask = lens > (t0 + k)                          # (Np, 1) valid-timestep mask
        h_next = jnp.where(mask, h_new, h)              # freeze hidden past length
        out_ref[k] = jnp.where(mask, h_new, 0.0)        # pad_packed_sequence zeros
        return h_next

    hN_ref[...] = lax.fori_loop(0, Tb, step, hN_ref[...], unroll=True)


def _gru_block_kernel_hidden_only(len_ref, gi_ref, whh_ref, bhh_ref, hN_ref):
    """GRU block; only the final hidden state is produced (no output writeback)."""
    tb = pl.program_id(0)
    Tb = gi_ref.shape[0]
    Hp = hN_ref.shape[1]

    @pl.when(tb == 0)
    def _():
        hN_ref[...] = jnp.zeros_like(hN_ref)

    lens = len_ref[...]
    whh = whh_ref[...]
    bhh = bhh_ref[...]
    t0 = tb * Tb

    def step(k, h):
        gi = gi_ref[k]
        h_new = _gru_step(gi, h, whh, bhh, Hp)
        mask = lens > (t0 + k)
        return jnp.where(mask, h_new, h)

    hN_ref[...] = lax.fori_loop(0, Tb, step, hN_ref[...], unroll=True)


# ----------------------------------------------------------------------------
# GRU forward (batch-first interface), recurrence in the Pallas kernel
# ----------------------------------------------------------------------------
def gru_forward(x, lengths, w_ih, w_hh, b_ih, b_hh, *, block_t=32,
                need_outputs=True):
    """Single-layer unidirectional GRU.

    x: (N, T, E) f32; lengths: (N,) int.  Weights stored transposed vs PyTorch
    (so the kernel does x @ W), gate order (r, z, n): w_ih (E, 3H),
    w_hh (H, 3H), b_* (3H,).  Returns (outputs (N, T, H) or None, h_last (N, H)).
    """
    N, T, E = x.shape
    H = w_hh.shape[0]
    Hp = _round_up(H, 128)                 # lane-aligned hidden dim
    Np = _round_up(N, 8)                   # sublane-aligned batch
    Tb = min(block_t, T)                   # timesteps per grid step
    Tp = pl.cdiv(T, Tb) * Tb
    nblk = Tp // Tb

    # ---- lane-aligned, per-gate-padded parameters --------------------------
    def pad_gate_cols(w):                  # (..., 3H) -> (..., 3Hp)
        r, z, n = w[..., :H], w[..., H:2 * H], w[..., 2 * H:]
        padw = [(0, 0)] * (w.ndim - 1) + [(0, Hp - H)]
        return jnp.concatenate(
            [jnp.pad(r, padw), jnp.pad(z, padw), jnp.pad(n, padw)], axis=-1)

    w_ih_p = pad_gate_cols(w_ih.astype(jnp.float32))                    # (E, 3Hp)
    w_hh_p = jnp.pad(pad_gate_cols(w_hh.astype(jnp.float32)),
                     ((0, Hp - H), (0, 0)))                             # (Hp, 3Hp)
    b_ih_p = pad_gate_cols(b_ih.astype(jnp.float32).reshape(1, 3 * H))  # (1, 3Hp)
    b_hh_p = pad_gate_cols(b_hh.astype(jnp.float32).reshape(1, 3 * H))  # (1, 3Hp)

    # ---- hoisted input projection: ONE big matmul outside the time loop ----
    x_tm = jnp.transpose(x.astype(jnp.float32), (1, 0, 2))              # (T, N, E)
    x_tm = jnp.pad(x_tm, ((0, Tp - T), (0, Np - N), (0, 0)))            # (Tp, Np, E)
    gi_all = (jnp.dot(x_tm.reshape(Tp * Np, E), w_ih_p,
                      preferred_element_type=jnp.float32)
              + b_ih_p).reshape(Tp, Np, 3 * Hp)

    lens2d = jnp.pad(lengths.astype(jnp.int32).reshape(N, 1),
                     ((0, Np - N), (0, 0)))                             # (Np, 1)

    in_specs = [
        pl.BlockSpec((Np, 1), lambda t: (0, 0)),              # lengths (resident)
        pl.BlockSpec((Tb, Np, 3 * Hp), lambda t: (t, 0, 0)),  # gi block (pipelined)
        pl.BlockSpec((Hp, 3 * Hp), lambda t: (0, 0)),         # W_hh (resident)
        pl.BlockSpec((1, 3 * Hp), lambda t: (0, 0)),          # b_hh (resident)
    ]
    hN_shape = jax.ShapeDtypeStruct((Np, Hp), jnp.float32)
    hN_spec = pl.BlockSpec((Np, Hp), lambda t: (0, 0))        # hidden accumulator
    cparams = pltpu.CompilerParams(
        dimension_semantics=("arbitrary",))                   # sequential recurrence

    if need_outputs:
        out_tm, h_last = pl.pallas_call(
            _gru_block_kernel_with_out,
            out_shape=(jax.ShapeDtypeStruct((Tp, Np, Hp), jnp.float32), hN_shape),
            grid_spec=pltpu.PrefetchScalarGridSpec(
                num_scalar_prefetch=0,
                grid=(nblk,),
                in_specs=in_specs,
                out_specs=[pl.BlockSpec((Tb, Np, Hp), lambda t: (t, 0, 0)),
                           hN_spec],
            ),
            compiler_params=cparams,
        )(lens2d, gi_all, w_hh_p, b_hh_p)
        outputs = jnp.transpose(out_tm[:T, :N, :H], (1, 0, 2))          # (N, T, H)
        return outputs, h_last[:N, :H]

    # hidden-only path: no (T, N, H) HBM writeback, no output transpose.
    h_last = pl.pallas_call(
        _gru_block_kernel_hidden_only,
        out_shape=hN_shape,
        grid_spec=pltpu.PrefetchScalarGridSpec(
            num_scalar_prefetch=0,
            grid=(nblk,),
            in_specs=in_specs,
            out_specs=hN_spec,
        ),
        compiler_params=cparams,
    )(lens2d, gi_all, w_hh_p, b_hh_p)
    return None, h_last[:N, :H]


# ----------------------------------------------------------------------------
# Encoders (glue in plain JAX; the recurrence runs in the Pallas kernel)
# ----------------------------------------------------------------------------
def rnn_encoder(params, inputs, lengths, use_embedding, need_outputs=True):
    """Single-layer unidirectional GRU encoder.
    Returns (outputs (N, T, H) or None, hidden (1, N, H))."""
    if use_embedding:
        x = jnp.take(params["embedding"], inputs, axis=0)   # gather stays in XLA
    else:
        x = inputs
    outputs, h_last = gru_forward(
        x, lengths, params["w_ih"], params["w_hh"],
        params["b_ih"], params["b_hh"], need_outputs=need_outputs)
    return outputs, h_last[None]                             # (N,T,H)|None, (1,N,H)


@functools.partial(jax.jit, static_argnames=())
def hrnn_encoder_forward(sub_params, hiera_params, indices, lengths,
                         features=None):
    """Reproduces HRNNEncoder.forward with return_last_sub_outputs=False.

    NOTE: hiera_lengths = count of nonzero sub-lengths assumes zero-length
    sub-sequences only appear as a suffix within each batch row (same
    assumption the original packing-based code relies on).
    """
    B, Lh, Ls = indices.shape
    hiera_lengths = (lengths > 0).astype(jnp.int32).sum(axis=1)       # (B,)
    flat_indices = indices.reshape(B * Lh, Ls)
    sub_lengths = lengths.reshape(B * Lh)

    # sub encoder over every sub-sequence: only its final hidden is consumed,
    # so use the hidden-only kernel (skips the (T, N, H) output writeback).
    _, sub_hidden = rnn_encoder(
        sub_params, flat_indices, sub_lengths, use_embedding=True,
        need_outputs=False)
    sub_hidden = sub_hidden[-1].reshape(B, Lh, -1)                    # (B, Lh, Hs)
    if features is not None:
        sub_hidden = jnp.concatenate([sub_hidden, features], axis=-1)

    # hierarchical encoder over the sequence of sub hidden states
    hiera_outputs, hiera_hidden = rnn_encoder(
        hiera_params, sub_hidden, hiera_lengths, use_embedding=False,
        need_outputs=True)

    # TODO(synk): return_last_sub_outputs=True branch (data-dependent
    # max-length slicing of last sub outputs) is dynamic-shape logic, left out.
    return hiera_outputs, hiera_hidden, None


# ----------------------------------------------------------------------------
# Deterministic parameter construction
# ----------------------------------------------------------------------------
def make_gru_params(key, input_size, hidden_size, vocab=None, embed_dim=None):
    ks = jax.random.split(key, 5)
    p = {
        # stored transposed vs PyTorch: (in, 3H) so the kernel does x @ W
        "w_ih": 0.1 * jax.random.normal(ks[0], (input_size, 3 * hidden_size), jnp.float32),
        "w_hh": 0.1 * jax.random.normal(ks[1], (hidden_size, 3 * hidden_size), jnp.float32),
        "b_ih": 0.1 * jax.random.normal(ks[2], (3 * hidden_size,), jnp.float32),
        "b_hh": 0.1 * jax.random.normal(ks[3], (3 * hidden_size,), jnp.float32),
    }
    if vocab is not None:
        p["embedding"] = 0.1 * jax.random.normal(ks[4], (vocab, embed_dim), jnp.float32)
    return p


if __name__ == "__main__":
    B, Lh, Ls = 2, 4, 8
    VOCAB, EMBED = 32, 16
    H_SUB, H_HIER = 32, 32

    key = jax.random.PRNGKey(0)
    k_idx, k_sub, k_hier = jax.random.split(key, 3)

    indices = jax.random.randint(k_idx, (B, Lh, Ls), 0, VOCAB, dtype=jnp.int32)
    lengths = jnp.array([[8, 5, 3, 0],
                         [6, 2, 0, 0]], dtype=jnp.int32)              # (B, Lh)

    sub_params = make_gru_params(k_sub, EMBED, H_SUB, vocab=VOCAB, embed_dim=EMBED)
    hiera_params = make_gru_params(k_hier, H_SUB, H_HIER)

    hiera_outputs, hiera_hidden, last = hrnn_encoder_forward(
        sub_params, hiera_params, indices, lengths)

    jax.block_until_ready((hiera_outputs, hiera_hidden))
    assert hiera_outputs.shape == (B, Lh, H_HIER)
    assert hiera_hidden.shape == (1, B, H_HIER)
    assert last is None
    print("KERNEL_OK")
</pallas_src>

<mosaic_0001>
module attributes {stable_mosaic.version = 11 : i64} {
  func.func @_gru_block_kernel_hidden_only(%arg0: i32, %arg1: memref<8x1xi32, #tpu.memory_space<vmem>>, %arg2: memref<8x8x384xf32, #tpu.memory_space<vmem>>, %arg3: memref<128x384xf32, #tpu.memory_space<vmem>>, %arg4: memref<1x384xf32, #tpu.memory_space<vmem>>, %arg5: memref<8x128xf32, #tpu.memory_space<vmem>>) attributes {dimension_semantics = [#tpu.dimension_semantics<arbitrary>], iteration_bounds = array<i64: 1>, scalar_prefetch = 0 : i64, scratch_operands = 0 : i64, tpu.core_type = #tpu.core_type<tc>, window_params = [{pipeline_mode = #tpu.pipeline_mode<synchronous>, transform_indices = @transform_0, window_bounds = array<i64: 8, 1>}, {transform_indices = @transform_1, window_bounds = array<i64: 8, 8, 384>}, {pipeline_mode = #tpu.pipeline_mode<synchronous>, transform_indices = @transform_2, window_bounds = array<i64: 128, 384>}, {pipeline_mode = #tpu.pipeline_mode<synchronous>, transform_indices = @transform_3, window_bounds = array<i64: 1, 384>}, {pipeline_mode = #tpu.pipeline_mode<synchronous>, transform_indices = @transform_4, window_bounds = array<i64: 8, 128>}]} {
    %c0_i32 = arith.constant 0 : i32
    %0 = arith.cmpi eq, %arg0, %c0_i32 : i32
    %1 = arith.extui %0 : i1 to i32
    %c0_i32_0 = arith.constant 0 : i32
    %2 = arith.cmpi ne, %1, %c0_i32_0 : i32
    scf.if %2 {
      %cst_59 = arith.constant 0.000000e+00 : f32
      %313 = vector.broadcast %cst_59 : f32 to vector<8x128xf32>
      %c0_60 = arith.constant 0 : index
      %c0_61 = arith.constant 0 : index
      %314 = vector.load %arg5[%c0_60, %c0_61] : memref<8x128xf32, #tpu.memory_space<vmem>>, vector<8x128xf32>
      tpu.vector_store %arg5[%c0_60, %c0_61], %313 {strides = array<i32>} : memref<8x128xf32, #tpu.memory_space<vmem>>, vector<8x128xf32>,
    } else {
    }
    %c0 = arith.constant 0 : index
    %c0_1 = arith.constant 0 : index
    %3 = vector.load %arg1[%c0, %c0_1] : memref<8x1xi32, #tpu.memory_space<vmem>>, vector<8x1xi32>
    %c0_2 = arith.constant 0 : index
    %c0_3 = arith.constant 0 : index
    %4 = vector.load %arg3[%c0_2, %c0_3] : memref<128x384xf32, #tpu.memory_space<vmem>>, vector<128x384xf32>
    %c0_4 = arith.constant 0 : index
    %c0_5 = arith.constant 0 : index
    %5 = vector.load %arg4[%c0_4, %c0_5] : memref<1x384xf32, #tpu.memory_space<vmem>>, vector<1x384xf32>
    %c8_i32 = arith.constant 8 : i32
    %6 = arith.muli %arg0, %c8_i32 : i32
    %c0_6 = arith.constant 0 : index
    %c0_7 = arith.constant 0 : index
    %7 = vector.load %arg5[%c0_6, %c0_7] : memref<8x128xf32, #tpu.memory_space<vmem>>, vector<8x128xf32>
    %c0_i32_8 = arith.constant 0 : i32
    %8 = arith.index_cast %c0_i32_8 : i32 to index
    %c0_9 = arith.constant 0 : index
    %c0_10 = arith.constant 0 : index
    %9 = vector.load %arg2[%8, %c0_9, %c0_10] : memref<8x8x384xf32, #tpu.memory_space<vmem>>, vector<1x8x384xf32>
    %10 = vector.shape_cast %9 : vector<1x8x384xf32> to vector<8x384xf32>
    %cst = arith.constant dense<0.000000e+00> : vector<8x384xf32>
    %11 = tpu.matmul %7, %4, %cst {dimension_numbers = #tpu.dot_dimension_numbers<[1], [0], [0], [1], [0, 0, 1, 1], [], []>} : vector<8x128xf32>, vector<128x384xf32>, vector<8x384xf32> -> vector<8x384xf32>
    %12 = vector.broadcast %5 : vector<1x384xf32> to vector<8x384xf32>
    %13 = arith.addf %11, %12 : vector<8x384xf32>
    %14 = vector.extract_strided_slice %10 {offsets = [0, 0], sizes = [8, 128], strides = [1, 1]} : vector<8x384xf32> to vector<8x128xf32>
    %15 = vector.extract_strided_slice %13 {offsets = [0, 0], sizes = [8, 128], strides = [1, 1]} : vector<8x384xf32> to vector<8x128xf32>
    %16 = arith.addf %14, %15 : vector<8x128xf32>
    %17 = arith.negf %16 : vector<8x128xf32>
    %18 = math.exp %17 : vector<8x128xf32>
    %cst_11 = arith.constant 1.000000e+00 : f32
    %19 = vector.broadcast %cst_11 : f32 to vector<8x128xf32>
    %20 = arith.addf %19, %18 : vector<8x128xf32>
    %21 = arith.divf %19, %20 : vector<8x128xf32>
    %22 = vector.extract_strided_slice %10 {offsets = [0, 128], sizes = [8, 128], strides = [1, 1]} : vector<8x384xf32> to vector<8x128xf32>
    %23 = vector.extract_strided_slice %13 {offsets = [0, 128], sizes = [8, 128], strides = [1, 1]} : vector<8x384xf32> to vector<8x128xf32>
    %24 = arith.addf %22, %23 : vector<8x128xf32>
    %25 = arith.negf %24 : vector<8x128xf32>
    %26 = math.exp %25 : vector<8x128xf32>
    %cst_12 = arith.constant 1.000000e+00 : f32
    %27 = vector.broadcast %cst_12 : f32 to vector<8x128xf32>
    %28 = arith.addf %27, %26 : vector<8x128xf32>
    %29 = arith.divf %27, %28 : vector<8x128xf32>
    %30 = vector.extract_strided_slice %10 {offsets = [0, 256], sizes = [8, 128], strides = [1, 1]} : vector<8x384xf32> to vector<8x128xf32>
    %31 = vector.extract_strided_slice %13 {offsets = [0, 256], sizes = [8, 128], strides = [1, 1]} : vector<8x384xf32> to vector<8x128xf32>
    %32 = arith.mulf %21, %31 : vector<8x128xf32>
    %33 = arith.addf %30, %32 : vector<8x128xf32>
    %34 = math.tanh %33 : vector<8x128xf32>
    %cst_13 = arith.constant 1.000000e+00 : f32
    %35 = vector.broadcast %cst_13 : f32 to vector<8x128xf32>
    %36 = arith.subf %35, %29 : vector<8x128xf32>
    %37 = arith.mulf %36, %34 : vector<8x128xf32>
    %38 = arith.mulf %29, %7 : vector<8x128xf32>
    %39 = arith.addf %37, %38 : vector<8x128xf32>
    %40 = arith.addi %6, %c0_i32_8 : i32
    %41 = vector.broadcast %40 : i32 to vector<8x1xi32>
    %42 = arith.cmpi sgt, %3, %41 : vector<8x1xi32>
    %43 = vector.shape_cast %42 : vector<8x1xi1> to vector<8x1xi1>
    %44 = vector.broadcast %43 : vector<8x1xi1> to vector<8x128xi1>
    %45 = arith.select %44, %39, %7 : vector<8x128xi1>, vector<8x128xf32>
    %c1_i32 = arith.constant 1 : i32
    %46 = arith.index_cast %c1_i32 : i32 to index
    %c0_14 = arith.constant 0 : index
    %c0_15 = arith.constant 0 : index
    %47 = vector.load %arg2[%46, %c0_14, %c0_15] : memref<8x8x384xf32, #tpu.memory_space<vmem>>, vector<1x8x384xf32>
    %48 = vector.shape_cast %47 : vector<1x8x384xf32> to vector<8x384xf32>
    %cst_16 = arith.constant dense<0.000000e+00> : vector<8x384xf32>
    %49 = tpu.matmul %45, %4, %cst_16 {dimension_numbers = #tpu.dot_dimension_numbers<[1], [0], [0], [1], [0, 0, 1, 1], [], []>} : vector<8x128xf32>, vector<128x384xf32>, vector<8x384xf32> -> vector<8x384xf32>
    %50 = vector.broadcast %5 : vector<1x384xf32> to vector<8x384xf32>
    %51 = arith.addf %49, %50 : vector<8x384xf32>
    %52 = vector.extract_strided_slice %48 {offsets = [0, 0], sizes = [8, 128], strides = [1, 1]} : vector<8x384xf32> to vector<8x128xf32>
    %53 = vector.extract_strided_slice %51 {offsets = [0, 0], sizes = [8, 128], strides = [1, 1]} : vector<8x384xf32> to vector<8x128xf32>
    %54 = arith.addf %52, %53 : vector<8x128xf32>
    %55 = arith.negf %54 : vector<8x128xf32>
    %56 = math.exp %55 : vector<8x128xf32>
    %cst_17 = arith.constant 1.000000e+00 : f32
    %57 = vector.broadcast %cst_17 : f32 to vector<8x128xf32>
    %58 = arith.addf %57, %56 : vector<8x128xf32>
    %59 = arith.divf %57, %58 : vector<8x128xf32>
    %60 = vector.extract_strided_slice %48 {offsets = [0, 128], sizes = [8, 128], strides = [1, 1]} : vector<8x384xf32> to vector<8x128xf32>
    %61 = vector.extract_strided_slice %51 {offsets = [0, 128], sizes = [8, 128], strides = [1, 1]} : vector<8x384xf32> to vector<8x128xf32>
    %62 = arith.addf %60, %61 : vector<8x128xf32>
    %63 = arith.negf %62 : vector<8x128xf32>
    %64 = math.exp %63 : vector<8x128xf32>
    %cst_18 = arith.constant 1.000000e+00 : f32
    %65 = vector.broadcast %cst_18 : f32 to vector<8x128xf32>
    %66 = arith.addf %65, %64 : vector<8x128xf32>
    %67 = arith.divf %65, %66 : vector<8x128xf32>
    %68 = vector.extract_strided_slice %48 {offsets = [0, 256], sizes = [8, 128], strides = [1, 1]} : vector<8x384xf32> to vector<8x128xf32>
    %69 = vector.extract_strided_slice %51 {offsets = [0, 256], sizes = [8, 128], strides = [1, 1]} : vector<8x384xf32> to vector<8x128xf32>
    %70 = arith.mulf %59, %69 : vector<8x128xf32>
    %71 = arith.addf %68, %70 : vector<8x128xf32>
    %72 = math.tanh %71 : vector<8x128xf32>
    %cst_19 = arith.constant 1.000000e+00 : f32
    %73 = vector.broadcast %cst_19 : f32 to vector<8x128xf32>
    %74 = arith.subf %73, %67 : vector<8x128xf32>
    %75 = arith.mulf %74, %72 : vector<8x128xf32>
    %76 = arith.mulf %67, %45 : vector<8x128xf32>
    %77 = arith.addf %75, %76 : vector<8x128xf32>
    %78 = arith.addi %6, %c1_i32 : i32
    %79 = vector.broadcast %78 : i32 to vector<8x1xi32>
    %80 = arith.cmpi sgt, %3, %79 : vector<8x1xi32>
    %81 = vector.shape_cast %80 : vector<8x1xi1> to vector<8x1xi1>
    %82 = vector.broadcast %81 : vector<8x1xi1> to vector<8x128xi1>
    %83 = arith.select %82, %77, %45 : vector<8x128xi1>, vector<8x128xf32>
    %c2_i32 = arith.constant 2 : i32
    %84 = arith.index_cast %c2_i32 : i32 to index
    %c0_20 = arith.constant 0 : index
    %c0_21 = arith.constant 0 : index
    %85 = vector.load %arg2[%84, %c0_20, %c0_21] : memref<8x8x384xf32, #tpu.memory_space<vmem>>, vector<1x8x384xf32>
    %86 = vector.shape_cast %85 : vector<1x8x384xf32> to vector<8x384xf32>
    %cst_22 = arith.constant dense<0.000000e+00> : vector<8x384xf32>
    %87 = tpu.matmul %83, %4, %cst_22 {dimension_numbers = #tpu.dot_dimension_numbers<[1], [0], [0], [1], [0, 0, 1, 1], [], []>} : vector<8x128xf32>, vector<128x384xf32>, vector<8x384xf32> -> vector<8x384xf32>
    %88 = vector.broadcast %5 : vector<1x384xf32> to vector<8x384xf32>
    %89 = arith.addf %87, %88 : vector<8x384xf32>
    %90 = vector.extract_strided_slice %86 {offsets = [0, 0], sizes = [8, 128], strides = [1, 1]} : vector<8x384xf32> to vector<8x128xf32>
    %91 = vector.extract_strided_slice %89 {offsets = [0, 0], sizes = [8, 128], strides = [1, 1]} : vector<8x384xf32> to vector<8x128xf32>
    %92 = arith.addf %90, %91 : vector<8x128xf32>
    %93 = arith.negf %92 : vector<8x128xf32>
    %94 = math.exp %93 : vector<8x128xf32>
    %cst_23 = arith.constant 1.000000e+00 : f32
    %95 = vector.broadcast %cst_23 : f32 to vector<8x128xf32>
    %96 = arith.addf %95, %94 : vector<8x128xf32>
    %97 = arith.divf %95, %96 : vector<8x128xf32>
    %98 = vector.extract_strided_slice %86 {offsets = [0, 128], sizes = [8, 128], strides = [1, 1]} : vector<8x384xf32> to vector<8x128xf32>
    %99 = vector.extract_strided_slice %89 {offsets = [0, 128], sizes = [8, 128], strides = [1, 1]} : vector<8x384xf32> to vector<8x128xf32>
    %100 = arith.addf %98, %99 : vector<8x128xf32>
    %101 = arith.negf %100 : vector<8x128xf32>
    %102 = math.exp %101 : vector<8x128xf32>
    %cst_24 = arith.constant 1.000000e+00 : f32
    %103 = vector.broadcast %cst_24 : f32 to vector<8x128xf32>
    %104 = arith.addf %103, %102 : vector<8x128xf32>
    %105 = arith.divf %103, %104 : vector<8x128xf32>
    %106 = vector.extract_strided_slice %86 {offsets = [0, 256], sizes = [8, 128], strides = [1, 1]} : vector<8x384xf32> to vector<8x128xf32>
    %107 = vector.extract_strided_slice %89 {offsets = [0, 256], sizes = [8, 128], strides = [1, 1]} : vector<8x384xf32> to vector<8x128xf32>
    %108 = arith.mulf %97, %107 : vector<8x128xf32>
    %109 = arith.addf %106, %108 : vector<8x128xf32>
    %110 = math.tanh %109 : vector<8x128xf32>
    %cst_25 = arith.constant 1.000000e+00 : f32
    %111 = vector.broadcast %cst_25 : f32 to vector<8x128xf32>
    %112 = arith.subf %111, %105 : vector<8x128xf32>
    %113 = arith.mulf %112, %110 : vector<8x128xf32>
    %114 = arith.mulf %105, %83 : vector<8x128xf32>
    %115 = arith.addf %113, %114 : vector<8x128xf32>
    %116 = arith.addi %6, %c2_i32 : i32
    %117 = vector.broadcast %116 : i32 to vector<8x1xi32>
    %118 = arith.cmpi sgt, %3, %117 : vector<8x1xi32>
    %119 = vector.shape_cast %118 : vector<8x1xi1> to vector<8x1xi1>
    %120 = vector.broadcast %119 : vector<8x1xi1> to vector<8x128xi1>
    %121 = arith.select %120, %115, %83 : vector<8x128xi1>, vector<8x128xf32>
    %c3_i32 = arith.constant 3 : i32
    %122 = arith.index_cast %c3_i32 : i32 to index
    %c0_26 = arith.constant 0 : index
    %c0_27 = arith.constant 0 : index
    %123 = vector.load %arg2[%122, %c0_26, %c0_27] : memref<8x8x384xf32, #tpu.memory_space<vmem>>, vector<1x8x384xf32>
    %124 = vector.shape_cast %123 : vector<1x8x384xf32> to vector<8x384xf32>
    %cst_28 = arith.constant dense<0.000000e+00> : vector<8x384xf32>
    %125 = tpu.matmul %121, %4, %cst_28 {dimension_numbers = #tpu.dot_dimension_numbers<[1], [0], [0], [1], [0, 0, 1, 1], [], []>} : vector<8x128xf32>, vector<128x384xf32>, vector<8x384xf32> -> vector<8x384xf32>
    %126 = vector.broadcast %5 : vector<1x384xf32> to vector<8x384xf32>
    %127 = arith.addf %125, %126 : vector<8x384xf32>
    %128 = vector.extract_strided_slice %124 {offsets = [0, 0], sizes = [8, 128], strides = [1, 1]} : vector<8x384xf32> to vector<8x128xf32>
    %129 = vector.extract_strided_slice %127 {offsets = [0, 0], sizes = [8, 128], strides = [1, 1]} : vector<8x384xf32> to vector<8x128xf32>
    %130 = arith.addf %128, %129 : vector<8x128xf32>
    %131 = arith.negf %130 : vector<8x128xf32>
    %132 = math.exp %131 : vector<8x128xf32>
    %cst_29 = arith.constant 1.000000e+00 : f32
    %133 = vector.broadcast %cst_29 : f32 to vector<8x128xf32>
    %134 = arith.addf %133, %132 : vector<8x128xf32>
    %135 = arith.divf %133, %134 : vector<8x128xf32>
    %136 = vector.extract_strided_slice %124 {offsets = [0, 128], sizes = [8, 128], strides = [1, 1]} : vector<8x384xf32> to vector<8x128xf32>
    %137 = vector.extract_strided_slice %127 {offsets = [0, 128], sizes = [8, 128], strides = [1, 1]} : vector<8x384xf32> to vector<8x128xf32>
    %138 = arith.addf %136, %137 : vector<8x128xf32>
    %139 = arith.negf %138 : vector<8x128xf32>
    %140 = math.exp %139 : vector<8x128xf32>
    %cst_30 = arith.constant 1.000000e+00 : f32
    %141 = vector.broadcast %cst_30 : f32 to vector<8x128xf32>
    %142 = arith.addf %141, %140 : vector<8x128xf32>
    %143 = arith.divf %141, %142 : vector<8x128xf32>
    %144 = vector.extract_strided_slice %124 {offsets = [0, 256], sizes = [8, 128], strides = [1, 1]} : vector<8x384xf32> to vector<8x128xf32>
    %145 = vector.extract_strided_slice %127 {offsets = [0, 256], sizes = [8, 128], strides = [1, 1]} : vector<8x384xf32> to vector<8x128xf32>
    %146 = arith.mulf %135, %145 : vector<8x128xf32>
    %147 = arith.addf %144, %146 : vector<8x128xf32>
    %148 = math.tanh %147 : vector<8x128xf32>
    %cst_31 = arith.constant 1.000000e+00 : f32
    %149 = vector.broadcast %cst_31 : f32 to vector<8x128xf32>
    %150 = arith.subf %149, %143 : vector<8x128xf32>
    %151 = arith.mulf %150, %148 : vector<8x128xf32>
    %152 = arith.mulf %143, %121 : vector<8x128xf32>
    %153 = arith.addf %151, %152 : vector<8x128xf32>
    %154 = arith.addi %6, %c3_i32 : i32
    %155 = vector.broadcast %154 : i32 to vector<8x1xi32>
    %156 = arith.cmpi sgt, %3, %155 : vector<8x1xi32>
    %157 = vector.shape_cast %156 : vector<8x1xi1> to vector<8x1xi1>
    %158 = vector.broadcast %157 : vector<8x1xi1> to vector<8x128xi1>
    %159 = arith.select %158, %153, %121 : vector<8x128xi1>, vector<8x128xf32>
    %c4_i32 = arith.constant 4 : i32
    %160 = arith.index_cast %c4_i32 : i32 to index
    %c0_32 = arith.constant 0 : index
    %c0_33 = arith.constant 0 : index
    %161 = vector.load %arg2[%160, %c0_32, %c0_33] : memref<8x8x384xf32, #tpu.memory_space<vmem>>, vector<1x8x384xf32>
    %162 = vector.shape_cast %161 : vector<1x8x384xf32> to vector<8x384xf32>
    %cst_34 = arith.constant dense<0.000000e+00> : vector<8x384xf32>
    %163 = tpu.matmul %159, %4, %cst_34 {dimension_numbers = #tpu.dot_dimension_numbers<[1], [0], [0], [1], [0, 0, 1, 1], [], []>} : vector<8x128xf32>, vector<128x384xf32>, vector<8x384xf32> -> vector<8x384xf32>
    %164 = vector.broadcast %5 : vector<1x384xf32> to vector<8x384xf32>
    %165 = arith.addf %163, %164 : vector<8x384xf32>
    %166 = vector.extract_strided_slice %162 {offsets = [0, 0], sizes = [8, 128], strides = [1, 1]} : vector<8x384xf32> to vector<8x128xf32>
    %167 = vector.extract_strided_slice %165 {offsets = [0, 0], sizes = [8, 128], strides = [1, 1]} : vector<8x384xf32> to vector<8x128xf32>
    %168 = arith.addf %166, %167 : vector<8x128xf32>
    %169 = arith.negf %168 : vector<8x128xf32>
    %170 = math.exp %169 : vector<8x128xf32>
    %cst_35 = arith.constant 1.000000e+00 : f32
    %171 = vector.broadcast %cst_35 : f32 to vector<8x128xf32>
    %172 = arith.addf %171, %170 : vector<8x128xf32>
    %173 = arith.divf %171, %172 : vector<8x128xf32>
    %174 = vector.extract_strided_slice %162 {offsets = [0, 128], sizes = [8, 128], strides = [1, 1]} : vector<8x384xf32> to vector<8x128xf32>
    %175 = vector.extract_strided_slice %165 {offsets = [0, 128], sizes = [8, 128], strides = [1, 1]} : vector<8x384xf32> to vector<8x128xf32>
    %176 = arith.addf %174, %175 : vector<8x128xf32>
    %177 = arith.negf %176 : vector<8x128xf32>
    %178 = math.exp %177 : vector<8x128xf32>
    %cst_36 = arith.constant 1.000000e+00 : f32
    %179 = vector.broadcast %cst_36 : f32 to vector<8x128xf32>
    %180 = arith.addf %179, %178 : vector<8x128xf32>
    %181 = arith.divf %179, %180 : vector<8x128xf32>
    %182 = vector.extract_strided_slice %162 {offsets = [0, 256], sizes = [8, 128], strides = [1, 1]} : vector<8x384xf32> to vector<8x128xf32>
    %183 = vector.extract_strided_slice %165 {offsets = [0, 256], sizes = [8, 128], strides = [1, 1]} : vector<8x384xf32> to vector<8x128xf32>
    %184 = arith.mulf %173, %183 : vector<8x128xf32>
    %185 = arith.addf %182, %184 : vector<8x128xf32>
    %186 = math.tanh %185 : vector<8x128xf32>
    %cst_37 = arith.constant 1.000000e+00 : f32
    %187 = vector.broadcast %cst_37 : f32 to vector<8x128xf32>
    %188 = arith.subf %187, %181 : vector<8x128xf32>
    %189 = arith.mulf %188, %186 : vector<8x128xf32>
    %190 = arith.mulf %181, %159 : vector<8x128xf32>
    %191 = arith.addf %189, %190 : vector<8x128xf32>
    %192 = arith.addi %6, %c4_i32 : i32
    %193 = vector.broadcast %192 : i32 to vector<8x1xi32>
    %194 = arith.cmpi sgt, %3, %193 : vector<8x1xi32>
    %195 = vector.shape_cast %194 : vector<8x1xi1> to vector<8x1xi1>
    %196 = vector.broadcast %195 : vector<8x1xi1> to vector<8x128xi1>
    %197 = arith.select %196, %191, %159 : vector<8x128xi1>, vector<8x128xf32>
    %c5_i32 = arith.constant 5 : i32
    %198 = arith.index_cast %c5_i32 : i32 to index
    %c0_38 = arith.constant 0 : index
    %c0_39 = arith.constant 0 : index
    %199 = vector.load %arg2[%198, %c0_38, %c0_39] : memref<8x8x384xf32, #tpu.memory_space<vmem>>, vector<1x8x384xf32>
    %200 = vector.shape_cast %199 : vector<1x8x384xf32> to vector<8x384xf32>
    %cst_40 = arith.constant dense<0.000000e+00> : vector<8x384xf32>
    %201 = tpu.matmul %197, %4, %cst_40 {dimension_numbers = #tpu.dot_dimension_numbers<[1], [0], [0], [1], [0, 0, 1, 1], [], []>} : vector<8x128xf32>, vector<128x384xf32>, vector<8x384xf32> -> vector<8x384xf32>
    %202 = vector.broadcast %5 : vector<1x384xf32> to vector<8x384xf32>
    %203 = arith.addf %201, %202 : vector<8x384xf32>
    %204 = vector.extract_strided_slice %200 {offsets = [0, 0], sizes = [8, 128], strides = [1, 1]} : vector<8x384xf32> to vector<8x128xf32>
    %205 = vector.extract_strided_slice %203 {offsets = [0, 0], sizes = [8, 128], strides = [1, 1]} : vector<8x384xf32> to vector<8x128xf32>
    %206 = arith.addf %204, %205 : vector<8x128xf32>
    %207 = arith.negf %206 : vector<8x128xf32>
    %208 = math.exp %207 : vector<8x128xf32>
    %cst_41 = arith.constant 1.000000e+00 : f32
    %209 = vector.broadcast %cst_41 : f32 to vector<8x128xf32>
    %210 = arith.addf %209, %208 : vector<8x128xf32>
    %211 = arith.divf %209, %210 : vector<8x128xf32>
    %212 = vector.extract_strided_slice %200 {offsets = [0, 128], sizes = [8, 128], strides = [1, 1]} : vector<8x384xf32> to vector<8x128xf32>
    %213 = vector.extract_strided_slice %203 {offsets = [0, 128], sizes = [8, 128], strides = [1, 1]} : vector<8x384xf32> to vector<8x128xf32>
    %214 = arith.addf %212, %213 : vector<8x128xf32>
    %215 = arith.negf %214 : vector<8x128xf32>
    %216 = math.exp %215 : vector<8x128xf32>
    %cst_42 = arith.constant 1.000000e+00 : f32
    %217 = vector.broadcast %cst_42 : f32 to vector<8x128xf32>
    %218 = arith.addf %217, %216 : vector<8x128xf32>
    %219 = arith.divf %217, %218 : vector<8x128xf32>
    %220 = vector.extract_strided_slice %200 {offsets = [0, 256], sizes = [8, 128], strides = [1, 1]} : vector<8x384xf32> to vector<8x128xf32>
    %221 = vector.extract_strided_slice %203 {offsets = [0, 256], sizes = [8, 128], strides = [1, 1]} : vector<8x384xf32> to vector<8x128xf32>
    %222 = arith.mulf %211, %221 : vector<8x128xf32>
    %223 = arith.addf %220, %222 : vector<8x128xf32>
    %224 = math.tanh %223 : vector<8x128xf32>
    %cst_43 = arith.constant 1.000000e+00 : f32
    %225 = vector.broadcast %cst_43 : f32 to vector<8x128xf32>
    %226 = arith.subf %225, %219 : vector<8x128xf32>
    %227 = arith.mulf %226, %224 : vector<8x128xf32>
    %228 = arith.mulf %219, %197 : vector<8x128xf32>
    %229 = arith.addf %227, %228 : vector<8x128xf32>
    %230 = arith.addi %6, %c5_i32 : i32
    %231 = vector.broadcast %230 : i32 to vector<8x1xi32>
    %232 = arith.cmpi sgt, %3, %231 : vector<8x1xi32>
    %233 = vector.shape_cast %232 : vector<8x1xi1> to vector<8x1xi1>
    %234 = vector.broadcast %233 : vector<8x1xi1> to vector<8x128xi1>
    %235 = arith.select %234, %229, %197 : vector<8x128xi1>, vector<8x128xf32>
    %c6_i32 = arith.constant 6 : i32
    %236 = arith.index_cast %c6_i32 : i32 to index
    %c0_44 = arith.constant 0 : index
    %c0_45 = arith.constant 0 : index
    %237 = vector.load %arg2[%236, %c0_44, %c0_45] : memref<8x8x384xf32, #tpu.memory_space<vmem>>, vector<1x8x384xf32>
    %238 = vector.shape_cast %237 : vector<1x8x384xf32> to vector<8x384xf32>
    %cst_46 = arith.constant dense<0.000000e+00> : vector<8x384xf32>
    %239 = tpu.matmul %235, %4, %cst_46 {dimension_numbers = #tpu.dot_dimension_numbers<[1], [0], [0], [1], [0, 0, 1, 1], [], []>} : vector<8x128xf32>, vector<128x384xf32>, vector<8x384xf32> -> vector<8x384xf32>
    %240 = vector.broadcast %5 : vector<1x384xf32> to vector<8x384xf32>
    %241 = arith.addf %239, %240 : vector<8x384xf32>
    %242 = vector.extract_strided_slice %238 {offsets = [0, 0], sizes = [8, 128], strides = [1, 1]} : vector<8x384xf32> to vector<8x128xf32>
    %243 = vector.extract_strided_slice %241 {offsets = [0, 0], sizes = [8, 128], strides = [1, 1]} : vector<8x384xf32> to vector<8x128xf32>
    %244 = arith.addf %242, %243 : vector<8x128xf32>
    %245 = arith.negf %244 : vector<8x128xf32>
    %246 = math.exp %245 : vector<8x128xf32>
    %cst_47 = arith.constant 1.000000e+00 : f32
    %247 = vector.broadcast %cst_47 : f32 to vector<8x128xf32>
    %248 = arith.addf %247, %246 : vector<8x128xf32>
    %249 = arith.divf %247, %248 : vector<8x128xf32>
    %250 = vector.extract_strided_slice %238 {offsets = [0, 128], sizes = [8, 128], strides = [1, 1]} : vector<8x384xf32> to vector<8x128xf32>
    %251 = vector.extract_strided_slice %241 {offsets = [0, 128], sizes = [8, 128], strides = [1, 1]} : vector<8x384xf32> to vector<8x128xf32>
    %252 = arith.addf %250, %251 : vector<8x128xf32>
    %253 = arith.negf %252 : vector<8x128xf32>
    %254 = math.exp %253 : vector<8x128xf32>
    %cst_48 = arith.constant 1.000000e+00 : f32
    %255 = vector.broadcast %cst_48 : f32 to vector<8x128xf32>
    %256 = arith.addf %255, %254 : vector<8x128xf32>
    %257 = arith.divf %255, %256 : vector<8x128xf32>
    %258 = vector.extract_strided_slice %238 {offsets = [0, 256], sizes = [8, 128], strides = [1, 1]} : vector<8x384xf32> to vector<8x128xf32>
    %259 = vector.extract_strided_slice %241 {offsets = [0, 256], sizes = [8, 128], strides = [1, 1]} : vector<8x384xf32> to vector<8x128xf32>
    %260 = arith.mulf %249, %259 : vector<8x128xf32>
    %261 = arith.addf %258, %260 : vector<8x128xf32>
    %262 = math.tanh %261 : vector<8x128xf32>
    %cst_49 = arith.constant 1.000000e+00 : f32
    %263 = vector.broadcast %cst_49 : f32 to vector<8x128xf32>
    %264 = arith.subf %263, %257 : vector<8x128xf32>
    %265 = arith.mulf %264, %262 : vector<8x128xf32>
    %266 = arith.mulf %257, %235 : vector<8x128xf32>
    %267 = arith.addf %265, %266 : vector<8x128xf32>
    %268 = arith.addi %6, %c6_i32 : i32
    %269 = vector.broadcast %268 : i32 to vector<8x1xi32>
    %270 = arith.cmpi sgt, %3, %269 : vector<8x1xi32>
    %271 = vector.shape_cast %270 : vector<8x1xi1> to vector<8x1xi1>
    %272 = vector.broadcast %271 : vector<8x1xi1> to vector<8x128xi1>
    %273 = arith.select %272, %267, %235 : vector<8x128xi1>, vector<8x128xf32>
    %c7_i32 = arith.constant 7 : i32
    %274 = arith.index_cast %c7_i32 : i32 to index
    %c0_50 = arith.constant 0 : index
    %c0_51 = arith.constant 0 : index
    %275 = vector.load %arg2[%274, %c0_50, %c0_51] : memref<8x8x384xf32, #tpu.memory_space<vmem>>, vector<1x8x384xf32>
    %276 = vector.shape_cast %275 : vector<1x8x384xf32> to vector<8x384xf32>
    %cst_52 = arith.constant dense<0.000000e+00> : vector<8x384xf32>
    %277 = tpu.matmul %273, %4, %cst_52 {dimension_numbers = #tpu.dot_dimension_numbers<[1], [0], [0], [1], [0, 0, 1, 1], [], []>} : vector<8x128xf32>, vector<128x384xf32>, vector<8x384xf32> -> vector<8x384xf32>
    %278 = vector.broadcast %5 : vector<1x384xf32> to vector<8x384xf32>
    %279 = arith.addf %277, %278 : vector<8x384xf32>
    %280 = vector.extract_strided_slice %276 {offsets = [0, 0], sizes = [8, 128], strides = [1, 1]} : vector<8x384xf32> to vector<8x128xf32>
    %281 = vector.extract_strided_slice %279 {offsets = [0, 0], sizes = [8, 128], strides = [1, 1]} : vector<8x384xf32> to vector<8x128xf32>
    %282 = arith.addf %280, %281 : vector<8x128xf32>
    %283 = arith.negf %282 : vector<8x128xf32>
    %284 = math.exp %283 : vector<8x128xf32>
    %cst_53 = arith.constant 1.000000e+00 : f32
    %285 = vector.broadcast %cst_53 : f32 to vector<8x128xf32>
    %286 = arith.addf %285, %284 : vector<8x128xf32>
    %287 = arith.divf %285, %286 : vector<8x128xf32>
    %288 = vector.extract_strided_slice %276 {offsets = [0, 128], sizes = [8, 128], strides = [1, 1]} : vector<8x384xf32> to vector<8x128xf32>
    %289 = vector.extract_strided_slice %279 {offsets = [0, 128], sizes = [8, 128], strides = [1, 1]} : vector<8x384xf32> to vector<8x128xf32>
    %290 = arith.addf %288, %289 : vector<8x128xf32>
    %291 = arith.negf %290 : vector<8x128xf32>
    %292 = math.exp %291 : vector<8x128xf32>
    %cst_54 = arith.constant 1.000000e+00 : f32
    %293 = vector.broadcast %cst_54 : f32 to vector<8x128xf32>
    %294 = arith.addf %293, %292 : vector<8x128xf32>
    %295 = arith.divf %293, %294 : vector<8x128xf32>
    %296 = vector.extract_strided_slice %276 {offsets = [0, 256], sizes = [8, 128], strides = [1, 1]} : vector<8x384xf32> to vector<8x128xf32>
    %297 = vector.extract_strided_slice %279 {offsets = [0, 256], sizes = [8, 128], strides = [1, 1]} : vector<8x384xf32> to vector<8x128xf32>
    %298 = arith.mulf %287, %297 : vector<8x128xf32>
    %299 = arith.addf %296, %298 : vector<8x128xf32>
    %300 = math.tanh %299 : vector<8x128xf32>
    %cst_55 = arith.constant 1.000000e+00 : f32
    %301 = vector.broadcast %cst_55 : f32 to vector<8x128xf32>
    %302 = arith.subf %301, %295 : vector<8x128xf32>
    %303 = arith.mulf %302, %300 : vector<8x128xf32>
    %304 = arith.mulf %295, %273 : vector<8x128xf32>
    %305 = arith.addf %303, %304 : vector<8x128xf32>
    %306 = arith.addi %6, %c7_i32 : i32
    %307 = vector.broadcast %306 : i32 to vector<8x1xi32>
    %308 = arith.cmpi sgt, %3, %307 : vector<8x1xi32>
    %309 = vector.shape_cast %308 : vector<8x1xi1> to vector<8x1xi1>
    %310 = vector.broadcast %309 : vector<8x1xi1> to vector<8x128xi1>
    %311 = arith.select %310, %305, %273 : vector<8x128xi1>, vector<8x128xf32>
    %c8_i32_56 = arith.constant 8 : i32
    %c0_57 = arith.constant 0 : index
    %c0_58 = arith.constant 0 : index
    %312 = vector.load %arg5[%c0_57, %c0_58] : memref<8x128xf32, #tpu.memory_space<vmem>>, vector<8x128xf32>
    tpu.vector_store %arg5[%c0_57, %c0_58], %311 {strides = array<i32>} : memref<8x128xf32, #tpu.memory_space<vmem>>, vector<8x128xf32>,
    return
  }
  func.func @transform_0(%arg0: i32) -> (i32, i32) {
    %c0_i32 = arith.constant 0 : i32
    %c0_i32_0 = arith.constant 0 : i32
    %c0_i32_1 = arith.constant 0 : i32
    return %c0_i32, %c0_i32_0 : i32, i32
  }
  func.func @transform_1(%arg0: i32) -> (i32, i32, i32) {
    %c0_i32 = arith.constant 0 : i32
    %c0_i32_0 = arith.constant 0 : i32
    %c0_i32_1 = arith.constant 0 : i32
    return %arg0, %c0_i32, %c0_i32_0 : i32, i32, i32
  }
  func.func @transform_2(%arg0: i32) -> (i32, i32) {
    %c0_i32 = arith.constant 0 : i32
    %c0_i32_0 = arith.constant 0 : i32
    %c0_i32_1 = arith.constant 0 : i32
    return %c0_i32, %c0_i32_0 : i32, i32
  }
  func.func @transform_3(%arg0: i32) -> (i32, i32) {
    %c0_i32 = arith.constant 0 : i32
    %c0_i32_0 = arith.constant 0 : i32
    %c0_i32_1 = arith.constant 0 : i32
    return %c0_i32, %c0_i32_0 : i32, i32
  }
  func.func @transform_4(%arg0: i32) -> (i32, i32) {
    %c0_i32 = arith.constant 0 : i32
    %c0_i32_0 = arith.constant 0 : i32
    %c0_i32_1 = arith.constant 0 : i32
    return %c0_i32, %c0_i32_0 : i32, i32
  }
}

module attributes {stable_mosaic.version = 11 : i64} {
  func.func @_gru_block_kernel_with_out(%arg0: i32, %arg1: memref<8x1xi32, #tpu.memory_space<vmem>>, %arg2: memref<4x8x384xf32, #tpu.memory_space<vmem>>, %arg3: memref<128x384xf32, #tpu.memory_space<vmem>>, %arg4: memref<1x384xf32, #tpu.memory_space<vmem>>, %arg5: memref<4x8x128xf32, #tpu.memory_space<vmem>>, %arg6: memref<8x128xf32, #tpu.memory_space<vmem>>) attributes {dimension_semantics = [#tpu.dimension_semantics<arbitrary>], iteration_bounds = array<i64: 1>, scalar_prefetch = 0 : i64, scratch_operands = 0 : i64, tpu.core_type = #tpu.core_type<tc>, window_params = [{pipeline_mode = #tpu.pipeline_mode<synchronous>, transform_indices = @transform_0, window_bounds = array<i64: 8, 1>}, {transform_indices = @transform_1, window_bounds = array<i64: 4, 8, 384>}, {pipeline_mode = #tpu.pipeline_mode<synchronous>, transform_indices = @transform_2, window_bounds = array<i64: 128, 384>}, {pipeline_mode = #tpu.pipeline_mode<synchronous>, transform_indices = @transform_3, window_bounds = array<i64: 1, 384>}, {transform_indices = @transform_4, window_bounds = array<i64: 4, 8, 128>}, {pipeline_mode = #tpu.pipeline_mode<synchronous>, transform_indices = @transform_5, window_bounds = array<i64: 8, 128>}]} {
    %c0_i32 = arith.constant 0 : i32
    %0 = arith.cmpi eq, %arg0, %c0_i32 : i32
    %1 = arith.extui %0 : i1 to i32
    %c0_i32_0 = arith.constant 0 : i32
    %2 = arith.cmpi ne, %1, %c0_i32_0 : i32
    scf.if %2 {
      %cst_47 = arith.constant 0.000000e+00 : f32
      %193 = vector.broadcast %cst_47 : f32 to vector<8x128xf32>
      %c0_48 = arith.constant 0 : index
      %c0_49 = arith.constant 0 : index
      %194 = vector.load %arg6[%c0_48, %c0_49] : memref<8x128xf32, #tpu.memory_space<vmem>>, vector<8x128xf32>
      tpu.vector_store %arg6[%c0_48, %c0_49], %193 {strides = array<i32>} : memref<8x128xf32, #tpu.memory_space<vmem>>, vector<8x128xf32>,
    } else {
    }
    %c0 = arith.constant 0 : index
    %c0_1 = arith.constant 0 : index
    %3 = vector.load %arg1[%c0, %c0_1] : memref<8x1xi32, #tpu.memory_space<vmem>>, vector<8x1xi32>
    %c0_2 = arith.constant 0 : index
    %c0_3 = arith.constant 0 : index
    %4 = vector.load %arg3[%c0_2, %c0_3] : memref<128x384xf32, #tpu.memory_space<vmem>>, vector<128x384xf32>
    %c0_4 = arith.constant 0 : index
    %c0_5 = arith.constant 0 : index
    %5 = vector.load %arg4[%c0_4, %c0_5] : memref<1x384xf32, #tpu.memory_space<vmem>>, vector<1x384xf32>
    %c4_i32 = arith.constant 4 : i32
    %6 = arith.muli %arg0, %c4_i32 : i32
    %c0_6 = arith.constant 0 : index
    %c0_7 = arith.constant 0 : index
    %7 = vector.load %arg6[%c0_6, %c0_7] : memref<8x128xf32, #tpu.memory_space<vmem>>, vector<8x128xf32>
    %c0_i32_8 = arith.constant 0 : i32
    %8 = arith.index_cast %c0_i32_8 : i32 to index
    %c0_9 = arith.constant 0 : index
    %c0_10 = arith.constant 0 : index
    %9 = vector.load %arg2[%8, %c0_9, %c0_10] : memref<4x8x384xf32, #tpu.memory_space<vmem>>, vector<1x8x384xf32>
    %10 = vector.shape_cast %9 : vector<1x8x384xf32> to vector<8x384xf32>
    %cst = arith.constant dense<0.000000e+00> : vector<8x384xf32>
    %11 = tpu.matmul %7, %4, %cst {dimension_numbers = #tpu.dot_dimension_numbers<[1], [0], [0], [1], [0, 0, 1, 1], [], []>} : vector<8x128xf32>, vector<128x384xf32>, vector<8x384xf32> -> vector<8x384xf32>
    %12 = vector.broadcast %5 : vector<1x384xf32> to vector<8x384xf32>
    %13 = arith.addf %11, %12 : vector<8x384xf32>
    %14 = vector.extract_strided_slice %10 {offsets = [0, 0], sizes = [8, 128], strides = [1, 1]} : vector<8x384xf32> to vector<8x128xf32>
    %15 = vector.extract_strided_slice %13 {offsets = [0, 0], sizes = [8, 128], strides = [1, 1]} : vector<8x384xf32> to vector<8x128xf32>
    %16 = arith.addf %14, %15 : vector<8x128xf32>
    %17 = arith.negf %16 : vector<8x128xf32>
    %18 = math.exp %17 : vector<8x128xf32>
    %cst_11 = arith.constant 1.000000e+00 : f32
    %19 = vector.broadcast %cst_11 : f32 to vector<8x128xf32>
    %20 = arith.addf %19, %18 : vector<8x128xf32>
    %21 = arith.divf %19, %20 : vector<8x128xf32>
    %22 = vector.extract_strided_slice %10 {offsets = [0, 128], sizes = [8, 128], strides = [1, 1]} : vector<8x384xf32> to vector<8x128xf32>
    %23 = vector.extract_strided_slice %13 {offsets = [0, 128], sizes = [8, 128], strides = [1, 1]} : vector<8x384xf32> to vector<8x128xf32>
    %24 = arith.addf %22, %23 : vector<8x128xf32>
    %25 = arith.negf %24 : vector<8x128xf32>
    %26 = math.exp %25 : vector<8x128xf32>
    %cst_12 = arith.constant 1.000000e+00 : f32
    %27 = vector.broadcast %cst_12 : f32 to vector<8x128xf32>
    %28 = arith.addf %27, %26 : vector<8x128xf32>
    %29 = arith.divf %27, %28 : vector<8x128xf32>
    %30 = vector.extract_strided_slice %10 {offsets = [0, 256], sizes = [8, 128], strides = [1, 1]} : vector<8x384xf32> to vector<8x128xf32>
    %31 = vector.extract_strided_slice %13 {offsets = [0, 256], sizes = [8, 128], strides = [1, 1]} : vector<8x384xf32> to vector<8x128xf32>
    %32 = arith.mulf %21, %31 : vector<8x128xf32>
    %33 = arith.addf %30, %32 : vector<8x128xf32>
    %34 = math.tanh %33 : vector<8x128xf32>
    %cst_13 = arith.constant 1.000000e+00 : f32
    %35 = vector.broadcast %cst_13 : f32 to vector<8x128xf32>
    %36 = arith.subf %35, %29 : vector<8x128xf32>
    %37 = arith.mulf %36, %34 : vector<8x128xf32>
    %38 = arith.mulf %29, %7 : vector<8x128xf32>
    %39 = arith.addf %37, %38 : vector<8x128xf32>
    %40 = arith.addi %6, %c0_i32_8 : i32
    %41 = vector.broadcast %40 : i32 to vector<8x1xi32>
    %42 = arith.cmpi sgt, %3, %41 : vector<8x1xi32>
    %43 = vector.shape_cast %42 : vector<8x1xi1> to vector<8x1xi1>
    %44 = vector.broadcast %43 : vector<8x1xi1> to vector<8x128xi1>
    %45 = arith.select %44, %39, %7 : vector<8x128xi1>, vector<8x128xf32>
    %cst_14 = arith.constant 0.000000e+00 : f32
    %46 = vector.shape_cast %42 : vector<8x1xi1> to vector<8x1xi1>
    %47 = vector.broadcast %46 : vector<8x1xi1> to vector<8x128xi1>
    %48 = vector.broadcast %cst_14 : f32 to vector<8x128xf32>
    %49 = arith.select %47, %39, %48 : vector<8x128xi1>, vector<8x128xf32>
    %50 = arith.index_cast %c0_i32_8 : i32 to index
    %c0_15 = arith.constant 0 : index
    %c0_16 = arith.constant 0 : index
    %51 = vector.load %arg5[%50, %c0_15, %c0_16] : memref<4x8x128xf32, #tpu.memory_space<vmem>>, vector<1x8x128xf32>
    %52 = vector.shape_cast %51 : vector<1x8x128xf32> to vector<8x128xf32>
    %53 = vector.shape_cast %49 : vector<8x128xf32> to vector<1x8x128xf32>
    tpu.vector_store %arg5[%50, %c0_15, %c0_16], %53 {strides = array<i32>} : memref<4x8x128xf32, #tpu.memory_space<vmem>>, vector<1x8x128xf32>,
    %c1_i32 = arith.constant 1 : i32
    %54 = arith.index_cast %c1_i32 : i32 to index
    %c0_17 = arith.constant 0 : index
    %c0_18 = arith.constant 0 : index
    %55 = vector.load %arg2[%54, %c0_17, %c0_18] : memref<4x8x384xf32, #tpu.memory_space<vmem>>, vector<1x8x384xf32>
    %56 = vector.shape_cast %55 : vector<1x8x384xf32> to vector<8x384xf32>
    %cst_19 = arith.constant dense<0.000000e+00> : vector<8x384xf32>
    %57 = tpu.matmul %45, %4, %cst_19 {dimension_numbers = #tpu.dot_dimension_numbers<[1], [0], [0], [1], [0, 0, 1, 1], [], []>} : vector<8x128xf32>, vector<128x384xf32>, vector<8x384xf32> -> vector<8x384xf32>
    %58 = vector.broadcast %5 : vector<1x384xf32> to vector<8x384xf32>
    %59 = arith.addf %57, %58 : vector<8x384xf32>
    %60 = vector.extract_strided_slice %56 {offsets = [0, 0], sizes = [8, 128], strides = [1, 1]} : vector<8x384xf32> to vector<8x128xf32>
    %61 = vector.extract_strided_slice %59 {offsets = [0, 0], sizes = [8, 128], strides = [1, 1]} : vector<8x384xf32> to vector<8x128xf32>
    %62 = arith.addf %60, %61 : vector<8x128xf32>
    %63 = arith.negf %62 : vector<8x128xf32>
    %64 = math.exp %63 : vector<8x128xf32>
    %cst_20 = arith.constant 1.000000e+00 : f32
    %65 = vector.broadcast %cst_20 : f32 to vector<8x128xf32>
    %66 = arith.addf %65, %64 : vector<8x128xf32>
    %67 = arith.divf %65, %66 : vector<8x128xf32>
    %68 = vector.extract_strided_slice %56 {offsets = [0, 128], sizes = [8, 128], strides = [1, 1]} : vector<8x384xf32> to vector<8x128xf32>
    %69 = vector.extract_strided_slice %59 {offsets = [0, 128], sizes = [8, 128], strides = [1, 1]} : vector<8x384xf32> to vector<8x128xf32>
    %70 = arith.addf %68, %69 : vector<8x128xf32>
    %71 = arith.negf %70 : vector<8x128xf32>
    %72 = math.exp %71 : vector<8x128xf32>
    %cst_21 = arith.constant 1.000000e+00 : f32
    %73 = vector.broadcast %cst_21 : f32 to vector<8x128xf32>
    %74 = arith.addf %73, %72 : vector<8x128xf32>
    %75 = arith.divf %73, %74 : vector<8x128xf32>
    %76 = vector.extract_strided_slice %56 {offsets = [0, 256], sizes = [8, 128], strides = [1, 1]} : vector<8x384xf32> to vector<8x128xf32>
    %77 = vector.extract_strided_slice %59 {offsets = [0, 256], sizes = [8, 128], strides = [1, 1]} : vector<8x384xf32> to vector<8x128xf32>
    %78 = arith.mulf %67, %77 : vector<8x128xf32>
    %79 = arith.addf %76, %78 : vector<8x128xf32>
    %80 = math.tanh %79 : vector<8x128xf32>
    %cst_22 = arith.constant 1.000000e+00 : f32
    %81 = vector.broadcast %cst_22 : f32 to vector<8x128xf32>
    %82 = arith.subf %81, %75 : vector<8x128xf32>
    %83 = arith.mulf %82, %80 : vector<8x128xf32>
    %84 = arith.mulf %75, %45 : vector<8x128xf32>
    %85 = arith.addf %83, %84 : vector<8x128xf32>
    %86 = arith.addi %6, %c1_i32 : i32
    %87 = vector.broadcast %86 : i32 to vector<8x1xi32>
    %88 = arith.cmpi sgt, %3, %87 : vector<8x1xi32>
    %89 = vector.shape_cast %88 : vector<8x1xi1> to vector<8x1xi1>
    %90 = vector.broadcast %89 : vector<8x1xi1> to vector<8x128xi1>
    %91 = arith.select %90, %85, %45 : vector<8x128xi1>, vector<8x128xf32>
    %cst_23 = arith.constant 0.000000e+00 : f32
    %92 = vector.shape_cast %88 : vector<8x1xi1> to vector<8x1xi1>
    %93 = vector.broadcast %92 : vector<8x1xi1> to vector<8x128xi1>
    %94 = vector.broadcast %cst_23 : f32 to vector<8x128xf32>
    %95 = arith.select %93, %85, %94 : vector<8x128xi1>, vector<8x128xf32>
    %96 = arith.index_cast %c1_i32 : i32 to index
    %c0_24 = arith.constant 0 : index
    %c0_25 = arith.constant 0 : index
    %97 = vector.load %arg5[%96, %c0_24, %c0_25] : memref<4x8x128xf32, #tpu.memory_space<vmem>>, vector<1x8x128xf32>
    %98 = vector.shape_cast %97 : vector<1x8x128xf32> to vector<8x128xf32>
    %99 = vector.shape_cast %95 : vector<8x128xf32> to vector<1x8x128xf32>
    tpu.vector_store %arg5[%96, %c0_24, %c0_25], %99 {strides = array<i32>} : memref<4x8x128xf32, #tpu.memory_space<vmem>>, vector<1x8x128xf32>,
    %c2_i32 = arith.constant 2 : i32
    %100 = arith.index_cast %c2_i32 : i32 to index
    %c0_26 = arith.constant 0 : index
    %c0_27 = arith.constant 0 : index
    %101 = vector.load %arg2[%100, %c0_26, %c0_27] : memref<4x8x384xf32, #tpu.memory_space<vmem>>, vector<1x8x384xf32>
    %102 = vector.shape_cast %101 : vector<1x8x384xf32> to vector<8x384xf32>
    %cst_28 = arith.constant dense<0.000000e+00> : vector<8x384xf32>
    %103 = tpu.matmul %91, %4, %cst_28 {dimension_numbers = #tpu.dot_dimension_numbers<[1], [0], [0], [1], [0, 0, 1, 1], [], []>} : vector<8x128xf32>, vector<128x384xf32>, vector<8x384xf32> -> vector<8x384xf32>
    %104 = vector.broadcast %5 : vector<1x384xf32> to vector<8x384xf32>
    %105 = arith.addf %103, %104 : vector<8x384xf32>
    %106 = vector.extract_strided_slice %102 {offsets = [0, 0], sizes = [8, 128], strides = [1, 1]} : vector<8x384xf32> to vector<8x128xf32>
    %107 = vector.extract_strided_slice %105 {offsets = [0, 0], sizes = [8, 128], strides = [1, 1]} : vector<8x384xf32> to vector<8x128xf32>
    %108 = arith.addf %106, %107 : vector<8x128xf32>
    %109 = arith.negf %108 : vector<8x128xf32>
    %110 = math.exp %109 : vector<8x128xf32>
    %cst_29 = arith.constant 1.000000e+00 : f32
    %111 = vector.broadcast %cst_29 : f32 to vector<8x128xf32>
    %112 = arith.addf %111, %110 : vector<8x128xf32>
    %113 = arith.divf %111, %112 : vector<8x128xf32>
    %114 = vector.extract_strided_slice %102 {offsets = [0, 128], sizes = [8, 128], strides = [1, 1]} : vector<8x384xf32> to vector<8x128xf32>
    %115 = vector.extract_strided_slice %105 {offsets = [0, 128], sizes = [8, 128], strides = [1, 1]} : vector<8x384xf32> to vector<8x128xf32>
    %116 = arith.addf %114, %115 : vector<8x128xf32>
    %117 = arith.negf %116 : vector<8x128xf32>
    %118 = math.exp %117 : vector<8x128xf32>
    %cst_30 = arith.constant 1.000000e+00 : f32
    %119 = vector.broadcast %cst_30 : f32 to vector<8x128xf32>
    %120 = arith.addf %119, %118 : vector<8x128xf32>
    %121 = arith.divf %119, %120 : vector<8x128xf32>
    %122 = vector.extract_strided_slice %102 {offsets = [0, 256], sizes = [8, 128], strides = [1, 1]} : vector<8x384xf32> to vector<8x128xf32>
    %123 = vector.extract_strided_slice %105 {offsets = [0, 256], sizes = [8, 128], strides = [1, 1]} : vector<8x384xf32> to vector<8x128xf32>
    %124 = arith.mulf %113, %123 : vector<8x128xf32>
    %125 = arith.addf %122, %124 : vector<8x128xf32>
    %126 = math.tanh %125 : vector<8x128xf32>
    %cst_31 = arith.constant 1.000000e+00 : f32
    %127 = vector.broadcast %cst_31 : f32 to vector<8x128xf32>
    %128 = arith.subf %127, %121 : vector<8x128xf32>
    %129 = arith.mulf %128, %126 : vector<8x128xf32>
    %130 = arith.mulf %121, %91 : vector<8x128xf32>
    %131 = arith.addf %129, %130 : vector<8x128xf32>
    %132 = arith.addi %6, %c2_i32 : i32
    %133 = vector.broadcast %132 : i32 to vector<8x1xi32>
    %134 = arith.cmpi sgt, %3, %133 : vector<8x1xi32>
    %135 = vector.shape_cast %134 : vector<8x1xi1> to vector<8x1xi1>
    %136 = vector.broadcast %135 : vector<8x1xi1> to vector<8x128xi1>
    %137 = arith.select %136, %131, %91 : vector<8x128xi1>, vector<8x128xf32>
    %cst_32 = arith.constant 0.000000e+00 : f32
    %138 = vector.shape_cast %134 : vector<8x1xi1> to vector<8x1xi1>
    %139 = vector.broadcast %138 : vector<8x1xi1> to vector<8x128xi1>
    %140 = vector.broadcast %cst_32 : f32 to vector<8x128xf32>
    %141 = arith.select %139, %131, %140 : vector<8x128xi1>, vector<8x128xf32>
    %142 = arith.index_cast %c2_i32 : i32 to index
    %c0_33 = arith.constant 0 : index
    %c0_34 = arith.constant 0 : index
    %143 = vector.load %arg5[%142, %c0_33, %c0_34] : memref<4x8x128xf32, #tpu.memory_space<vmem>>, vector<1x8x128xf32>
    %144 = vector.shape_cast %143 : vector<1x8x128xf32> to vector<8x128xf32>
    %145 = vector.shape_cast %141 : vector<8x128xf32> to vector<1x8x128xf32>
    tpu.vector_store %arg5[%142, %c0_33, %c0_34], %145 {strides = array<i32>} : memref<4x8x128xf32, #tpu.memory_space<vmem>>, vector<1x8x128xf32>,
    %c3_i32 = arith.constant 3 : i32
    %146 = arith.index_cast %c3_i32 : i32 to index
    %c0_35 = arith.constant 0 : index
    %c0_36 = arith.constant 0 : index
    %147 = vector.load %arg2[%146, %c0_35, %c0_36] : memref<4x8x384xf32, #tpu.memory_space<vmem>>, vector<1x8x384xf32>
    %148 = vector.shape_cast %147 : vector<1x8x384xf32> to vector<8x384xf32>
    %cst_37 = arith.constant dense<0.000000e+00> : vector<8x384xf32>
    %149 = tpu.matmul %137, %4, %cst_37 {dimension_numbers = #tpu.dot_dimension_numbers<[1], [0], [0], [1], [0, 0, 1, 1], [], []>} : vector<8x128xf32>, vector<128x384xf32>, vector<8x384xf32> -> vector<8x384xf32>
    %150 = vector.broadcast %5 : vector<1x384xf32> to vector<8x384xf32>
    %151 = arith.addf %149, %150 : vector<8x384xf32>
    %152 = vector.extract_strided_slice %148 {offsets = [0, 0], sizes = [8, 128], strides = [1, 1]} : vector<8x384xf32> to vector<8x128xf32>
    %153 = vector.extract_strided_slice %151 {offsets = [0, 0], sizes = [8, 128], strides = [1, 1]} : vector<8x384xf32> to vector<8x128xf32>
    %154 = arith.addf %152, %153 : vector<8x128xf32>
    %155 = arith.negf %154 : vector<8x128xf32>
    %156 = math.exp %155 : vector<8x128xf32>
    %cst_38 = arith.constant 1.000000e+00 : f32
    %157 = vector.broadcast %cst_38 : f32 to vector<8x128xf32>
    %158 = arith.addf %157, %156 : vector<8x128xf32>
    %159 = arith.divf %157, %158 : vector<8x128xf32>
    %160 = vector.extract_strided_slice %148 {offsets = [0, 128], sizes = [8, 128], strides = [1, 1]} : vector<8x384xf32> to vector<8x128xf32>
    %161 = vector.extract_strided_slice %151 {offsets = [0, 128], sizes = [8, 128], strides = [1, 1]} : vector<8x384xf32> to vector<8x128xf32>
    %162 = arith.addf %160, %161 : vector<8x128xf32>
    %163 = arith.negf %162 : vector<8x128xf32>
    %164 = math.exp %163 : vector<8x128xf32>
    %cst_39 = arith.constant 1.000000e+00 : f32
    %165 = vector.broadcast %cst_39 : f32 to vector<8x128xf32>
    %166 = arith.addf %165, %164 : vector<8x128xf32>
    %167 = arith.divf %165, %166 : vector<8x128xf32>
    %168 = vector.extract_strided_slice %148 {offsets = [0, 256], sizes = [8, 128], strides = [1, 1]} : vector<8x384xf32> to vector<8x128xf32>
    %169 = vector.extract_strided_slice %151 {offsets = [0, 256], sizes = [8, 128], strides = [1, 1]} : vector<8x384xf32> to vector<8x128xf32>
    %170 = arith.mulf %159, %169 : vector<8x128xf32>
    %171 = arith.addf %168, %170 : vector<8x128xf32>
    %172 = math.tanh %171 : vector<8x128xf32>
    %cst_40 = arith.constant 1.000000e+00 : f32
    %173 = vector.broadcast %cst_40 : f32 to vector<8x128xf32>
    %174 = arith.subf %173, %167 : vector<8x128xf32>
    %175 = arith.mulf %174, %172 : vector<8x128xf32>
    %176 = arith.mulf %167, %137 : vector<8x128xf32>
    %177 = arith.addf %175, %176 : vector<8x128xf32>
    %178 = arith.addi %6, %c3_i32 : i32
    %179 = vector.broadcast %178 : i32 to vector<8x1xi32>
    %180 = arith.cmpi sgt, %3, %179 : vector<8x1xi32>
    %181 = vector.shape_cast %180 : vector<8x1xi1> to vector<8x1xi1>
    %182 = vector.broadcast %181 : vector<8x1xi1> to vector<8x128xi1>
    %183 = arith.select %182, %177, %137 : vector<8x128xi1>, vector<8x128xf32>
    %cst_41 = arith.constant 0.000000e+00 : f32
    %184 = vector.shape_cast %180 : vector<8x1xi1> to vector<8x1xi1>
    %185 = vector.broadcast %184 : vector<8x1xi1> to vector<8x128xi1>
    %186 = vector.broadcast %cst_41 : f32 to vector<8x128xf32>
    %187 = arith.select %185, %177, %186 : vector<8x128xi1>, vector<8x128xf32>
    %188 = arith.index_cast %c3_i32 : i32 to index
    %c0_42 = arith.constant 0 : index
    %c0_43 = arith.constant 0 : index
    %189 = vector.load %arg5[%188, %c0_42, %c0_43] : memref<4x8x128xf32, #tpu.memory_space<vmem>>, vector<1x8x128xf32>
    %190 = vector.shape_cast %189 : vector<1x8x128xf32> to vector<8x128xf32>
    %191 = vector.shape_cast %187 : vector<8x128xf32> to vector<1x8x128xf32>
    tpu.vector_store %arg5[%188, %c0_42, %c0_43], %191 {strides = array<i32>} : memref<4x8x128xf32, #tpu.memory_space<vmem>>, vector<1x8x128xf32>,
    %c4_i32_44 = arith.constant 4 : i32
    %c0_45 = arith.constant 0 : index
    %c0_46 = arith.constant 0 : index
    %192 = vector.load %arg6[%c0_45, %c0_46] : memref<8x128xf32, #tpu.memory_space<vmem>>, vector<8x128xf32>
    tpu.vector_store %arg6[%c0_45, %c0_46], %183 {strides = array<i32>} : memref<8x128xf32, #tpu.memory_space<vmem>>, vector<8x128xf32>,
    return
  }
  func.func @transform_0(%arg0: i32) -> (i32, i32) {
    %c0_i32 = arith.constant 0 : i32
    %c0_i32_0 = arith.constant 0 : i32
    %c0_i32_1 = arith.constant 0 : i32
    return %c0_i32, %c0_i32_0 : i32, i32
  }
  func.func @transform_1(%arg0: i32) -> (i32, i32, i32) {
    %c0_i32 = arith.constant 0 : i32
    %c0_i32_0 = arith.constant 0 : i32
    %c0_i32_1 = arith.constant 0 : i32
    return %arg0, %c0_i32, %c0_i32_0 : i32, i32, i32
  }
  func.func @transform_2(%arg0: i32) -> (i32, i32) {
    %c0_i32 = arith.constant 0 : i32
    %c0_i32_0 = arith.constant 0 : i32
    %c0_i32_1 = arith.constant 0 : i32
    return %c0_i32, %c0_i32_0 : i32, i32
  }
  func.func @transform_3(%arg0: i32) -> (i32, i32) {
    %c0_i32 = arith.constant 0 : i32
    %c0_i32_0 = arith.constant 0 : i32
    %c0_i32_1 = arith.constant 0 : i32
    return %c0_i32, %c0_i32_0 : i32, i32
  }
  func.func @transform_4(%arg0: i32) -> (i32, i32, i32) {
    %c0_i32 = arith.constant 0 : i32
    %c0_i32_0 = arith.constant 0 : i32
    %c0_i32_1 = arith.constant 0 : i32
    return %arg0, %c0_i32, %c0_i32_0 : i32, i32, i32
  }
  func.func @transform_5(%arg0: i32) -> (i32, i32) {
    %c0_i32 = arith.constant 0 : i32
    %c0_i32_0 = arith.constant 0 : i32
    %c0_i32_1 = arith.constant 0 : i32
    return %c0_i32, %c0_i32_0 : i32, i32
  }
}

</mosaic_0001>

<bundles_post_ra>
// kernel: hrnn_encoder_forward.3
= control target key start
LH: loop header
LB: loop body
LE: loop exit
PB: predicated region body
PF: predicated region fallthrough
CT: control target
= control target key end

     0   :  { %v648_v19 = vmov 0   ;;  %v649_v48 = vmov 0.0   ;;  %s1218_s2 = inlined_call_operand.vmem [shape: f32[128,384], index: 2, kind: input, shape index: {}]   ;;  %s1219_s0 = inlined_call_operand.vmem [shape: s32[8,1], index: 0, kind: input, shape index: {}]   ;;  %s1220_s3 = inlined_call_operand.vmem [shape: f32[1,384], index: 3, kind: input, shape index: {}]   ;;  %s1221_s1 = inlined_call_operand.vmem [shape: f32[4,8,384], index: 1, kind: input, shape index: {}]   ;;  %s1222_s4 = inlined_call_operand.vmem [shape: f32[4,8,128], index: 4, kind: output, shape index: {0}]   ;;  %s1223_s5 = inlined_call_operand.vmem [shape: f32[8,128], index: 5, kind: output, shape index: {1}]  }
   0x1   :  { %v683_v0 = vld [vmem:[%s1218_s2 + $0x168] sm:$0xff]  ;;  %v688_v1 = vld [vmem:[%s1218_s2 + $0x170] sm:$0xff]  ;;  %v700_v3 = vld [vmem:[%s1218_s2 + $0x158] sm:$0xff]  ;;  %603 = vset.pattern.permute.xlu0 %v648_v19  ;;  %604 = vset.pattern.permute.xlu1 %v648_v19 }
   0x2   :  { %v693_v2 = vld [vmem:[%s1218_s2 + $0x150] sm:$0xff]  ;;  %86 = vmatpush.msra.mxu0 %v683_v0  ;;  %106 = vmatpush.msra.mxu1 %v688_v1  ;;  %v705_v4 = vld [vmem:[%s1218_s2 + $0x138] sm:$0xff]  ;;  %v710_v5 = vld [vmem:[%s1218_s2 + $0x140] sm:$0xff] }
   0x3   :  { %207 = vmatpush.msra.mxu3 %v683_v0  ;;  %v718_v6 = vld [vmem:[%s1218_s2 + $0x120] sm:$0xff]  ;;  %v723_v7 = vld [vmem:[%s1218_s2 + $0x128] sm:$0xff]  ;;  %v736_v9 = vld [vmem:[%s1218_s2 + $0x110] sm:$0xff] }
   0x4   :  { %87 = vmatpush.msra.mxu0 %v693_v2  ;;  %107 = vmatpush.msra.mxu1 %v700_v3  ;;  %v731_v8 = vld [vmem:[%s1218_s2 + $0x108] sm:$0xff]  ;;  %v744_v10 = vld [vmem:[%s1218_s2 + $0xf0] sm:$0xff]  ;;  %v749_v11 = vld [vmem:[%s1218_s2 + $0xf8] sm:$0xff] }
   0x5   :  { %208 = vmatpush.msra.mxu3 %v693_v2  ;;  %v754_v12 = vld [vmem:[%s1218_s2 + $0x178] sm:$0xff]  ;;  %v762_v13 = vld [vmem:[%s1218_s2 + $0x160] sm:$0xff]  ;;  %v781_v16 = vld [vmem:[%s1218_s2 + $0x148] sm:$0xff] }
   0x6   :  { %88 = vmatpush.msra.mxu0 %v705_v4  ;;  %108 = vmatpush.msra.mxu1 %v710_v5  ;;  %v767_v14 = vld [vmem:[%s1218_s2 + $0xd8] sm:$0xff]  ;;  %v772_v15 = vld [vmem:[%s1218_s2 + $0xe0] sm:$0xff]  ;;  %v791_v18 = vld [vmem:[%s1218_s2 + $0xc8] sm:$0xff] }
   0x7   :  { %209 = vmatpush.msra.mxu3 %v705_v4  ;;  %126 = vmatpush.msra.mxu2 %v754_v12  ;;  %v786_v17 = vld [vmem:[%s1218_s2 + $0xc0] sm:$0xff]  ;;  %v800_v20 = vld [vmem:[%s1218_s2 + $0x130] sm:$0xff]  ;;  %v805_v21 = vld [vmem:[%s1218_s2 + $0xa8] sm:$0xff] }
   0x8   :  { %89 = vmatpush.msra.mxu0 %v718_v6  ;;  %109 = vmatpush.msra.mxu1 %v723_v7  ;;  %v810_v22 = vld [vmem:[%s1218_s2 + $0xb0] sm:$0xff]  ;;  %v819_v23 = vld [vmem:[%s1218_s2 + $0x118] sm:$0xff]  ;;  %v835_v26 = vld [vmem:[%s1219_s0] sm:$0xff] }
   0x9   :  { %210 = vmatpush.msra.mxu3 %v718_v6  ;;  %127 = vmatpush.msra.mxu2 %v762_v13  ;;  %v824_v24 = vld [vmem:[%s1218_s2 + $0x90] sm:$0xff]  ;;  %v829_v25 = vld [vmem:[%s1218_s2 + $0x98] sm:$0xff]  ;;  %v843_v27 = vld [vmem:[%s1218_s2 + $0x100] sm:$0xff]  ;;  %vm194_vm0 = vcmp.gt.s32.totalorder %v835_v26, 0  ;;  %vm316_vm1 = vcmp.gt.s32.totalorder %v835_v26, 1  ;;  %vm439_vm11 = vcmp.gt.s32.totalorder %v835_v26, 2 }
   0xa   :  { %90 = vmatpush.msra.mxu0 %v731_v8  ;;  %110 = vmatpush.msra.mxu1 %v736_v9  ;;  %v849_v28 = vld [vmem:[%s1218_s2 + $0x78] sm:$0xff]  ;;  %v854_v29 = vld [vmem:[%s1218_s2 + $0x80] sm:$0xff]  ;;  %v195_v30 = vsel %vm194_vm0, 1, %v648_v19  ;;  %v864_v31 = vld [vmem:[%s1218_s2 + $0xe8] sm:$0xff]  ;;  %v317_v41 = vsel %vm316_vm1, 1, %v648_v19  ;;  %vm562_vm12 = vcmp.gt.s32.totalorder %v835_v26, 3 }
   0xb   :  { %211 = vmatpush.msra.mxu3 %v731_v8  ;;  %128 = vmatpush.msra.mxu2 %v781_v16  ;;  %v869_v32 = vld [vmem:[%s1218_s2 + $0x60] sm:$0xff]  ;;  %v874_v33 = vld [vmem:[%s1218_s2 + $0x68] sm:$0xff]  ;;  %v882_v34 = vld [vmem:[%s1218_s2 + $0xd0] sm:$0xff] }
   0xc   :  { %91 = vmatpush.msra.mxu0 %v744_v10  ;;  %111 = vmatpush.msra.mxu1 %v749_v11  ;;  %v887_v35 = vld [vmem:[%s1218_s2 + $0x48] sm:$0xff]  ;;  %v892_v36 = vld [vmem:[%s1218_s2 + $0x50] sm:$0xff]  ;;  %v902_v37 = vld [vmem:[%s1218_s2 + $0xb8] sm:$0xff] }
   0xd   :  { %212 = vmatpush.msra.mxu3 %v744_v10  ;;  %129 = vmatpush.msra.mxu2 %v800_v20  ;;  %v907_v38 = vld [vmem:[%s1218_s2 + $0x30] sm:$0xff]  ;;  %v912_v39 = vld [vmem:[%s1218_s2 + $0x38] sm:$0xff]  ;;  %v921_v40 = vld [vmem:[%s1218_s2 + $0xa0] sm:$0xff] }
   0xe   :  { %92 = vmatpush.msra.mxu0 %v767_v14  ;;  %112 = vmatpush.msra.mxu1 %v772_v15  ;;  %v927_v42 = vld [vmem:[%s1218_s2 + $0x18] sm:$0xff]  ;;  %v932_v43 = vld [vmem:[%s1218_s2 + $0x20] sm:$0xff]  ;;  %v941_v44 = vld [vmem:[%s1218_s2 + $0x88] sm:$0xff] }
   0xf   :  { %213 = vmatpush.msra.mxu3 %v767_v14  ;;  %130 = vmatpush.msra.mxu2 %v819_v23  ;;  %v946_v45 = vld [vmem:[%s1218_s2] sm:$0xff]  ;;  %v951_v46 = vld [vmem:[%s1218_s2 + $0x8] sm:$0xff]  ;;  %v960_v47 = vld [vmem:[%s1218_s2 + $0x70] sm:$0xff] }
  0x10   :  { %93 = vmatpush.msra.mxu0 %v786_v17  ;;  %113 = vmatpush.msra.mxu1 %v791_v18  ;;  %v968_v49 = vld [vmem:[%s1218_s2 + $0x58] sm:$0xff]  ;;  %v975_v50 = vld [vmem:[%s1218_s2 + $0x40] sm:$0xff]  ;;  %v984_v51 = vld [vmem:[%s1218_s2 + $0x28] sm:$0xff] }
  0x11   :  { %214 = vmatpush.msra.mxu3 %v786_v17  ;;  %131 = vmatpush.msra.mxu2 %v843_v27  ;;  %v993_v52 = vld [vmem:[%s1218_s2 + $0x10] sm:$0xff]  ;;  %v73_v53 = vld [vmem:[%s1220_s3] sm:$0x7]  ;;  %v77_v58 = vld [vmem:[%s1221_s1 + $0x8] sm:$0xff] }
  0x12   :  { %94 = vmatpush.msra.mxu0 %v805_v21  ;;  %114 = vmatpush.msra.mxu1 %v810_v22  ;;  %v1110_v54 = vperm.slane %v73_v53, 0  ;;  %v1112_v55 = vperm.slane %v73_v53, 1  ;;  %v76_v56 = vld [vmem:[%s1221_s1] sm:$0xff] }
  0x13   :  { %197 = vperm.xlu0 %603, %v195_v30   ;;  %132 = vmatpush.msra.mxu2 %v864_v31  ;;  %v78_v30 = vld [vmem:[%s1221_s1 + $0x10] sm:$0xff] }
  0x14   :  { %95 = vmatpush.msra.mxu0 %v824_v24  ;;  %115 = vmatpush.msra.mxu1 %v829_v25 }
  0x15   :  { %215 = vmatpush.msra.mxu3 %v805_v21  ;;  %133 = vmatpush.msra.mxu2 %v882_v34 }
  0x16   :  { %96 = vmatpush.msra.mxu0 %v849_v28  ;;  %116 = vmatpush.msra.mxu1 %v854_v29 }
  0x17   :  { %216 = vmatpush.msra.mxu3 %v824_v24  ;;  %134 = vmatpush.msra.mxu2 %v902_v37 }
  0x18   :  { %97 = vmatpush.msra.mxu0 %v869_v32  ;;  %117 = vmatpush.msra.mxu1 %v874_v33 }
  0x19   :  { %217 = vmatpush.msra.mxu3 %v849_v28  ;;  %135 = vmatpush.msra.mxu2 %v921_v40 }
  0x1a   :  { %98 = vmatpush.msra.mxu0 %v887_v35  ;;  %118 = vmatpush.msra.mxu1 %v892_v36 }
  0x1b   :  { %319 = vperm.xlu0 %603, %v317_v41   ;;  %136 = vmatpush.msra.mxu2 %v941_v44 }
  0x1c   :  { %99 = vmatpush.msra.mxu0 %v907_v38  ;;  %119 = vmatpush.msra.mxu1 %v912_v39 }
  0x1d   :  { %218 = vmatpush.msra.mxu3 %v869_v32  ;;  %137 = vmatpush.msra.mxu2 %v960_v47 }
  0x1e   :  { %100 = vmatpush.msra.mxu0 %v927_v42  ;;  %120 = vmatpush.msra.mxu1 %v932_v43 }
  0x1f   :  { %219 = vmatpush.msra.mxu3 %v887_v35  ;;  %138 = vmatpush.msra.mxu2 %v968_v49 }
  0x20   :  { %101 = vmatpush.msra.mxu0 %v946_v45  ;;  %121 = vmatpush.msra.mxu1 %v951_v46 }
  0x21   :  { %102 = vmatmul.f32.vlgmr.msra.gmra.mxu0 %v649_v48  ;;  %122 = vmatmul.f32.vlgmr.msra.gmra.mxu1 %v649_v48 }
  0x22   :  { %227 = vmatpush.msrb.mxu0 %v688_v1  ;;  %247 = vmatpush.msrb.mxu1 %v754_v12 }
  0x23   :  { %220 = vmatpush.msra.mxu3 %v907_v38  ;;  %139 = vmatpush.msra.mxu2 %v975_v50 }
  0x24   :  { %228 = vmatpush.msrb.mxu0 %v700_v3  ;;  %248 = vmatpush.msrb.mxu1 %v762_v13 }
  0x25   :  { %221 = vmatpush.msra.mxu3 %v927_v42  ;;  %140 = vmatpush.msra.mxu2 %v984_v51 }
  0x26   :  { %229 = vmatpush.msrb.mxu0 %v710_v5  ;;  %249 = vmatpush.msrb.mxu1 %v781_v16 }
  0x27   :  { %222 = vmatpush.msra.mxu3 %v946_v45  ;;  %141 = vmatpush.msra.mxu2 %v993_v52 }
  0x28   :  { %230 = vmatpush.msrb.mxu0 %v723_v7  ;;  %250 = vmatpush.msrb.mxu1 %v800_v20 }
  0x29   :  { %142 = vmatmul.f32.vlgmr.msra.gmra.mxu2 %v649_v48  ;;  %350 = vmatpush.msrb.mxu3 %v688_v1 }
  0x2a   :  { %231 = vmatpush.msrb.mxu0 %v736_v9  ;;  %251 = vmatpush.msrb.mxu1 %v819_v23 }
  0x2b   :  { %330 = vmatpush.msrb.mxu2 %v683_v0  ;;  %351 = vmatpush.msrb.mxu3 %v700_v3 }
  0x2c   :  { %232 = vmatpush.msrb.mxu0 %v749_v11  ;;  %252 = vmatpush.msrb.mxu1 %v843_v27 }
  0x2d   :  { %331 = vmatpush.msrb.mxu2 %v693_v2  ;;  %352 = vmatpush.msrb.mxu3 %v710_v5 }
  0x2e   :  { %233 = vmatpush.msrb.mxu0 %v772_v15  ;;  %253 = vmatpush.msrb.mxu1 %v864_v31 }
  0x2f   :  { %332 = vmatpush.msrb.mxu2 %v705_v4  ;;  %353 = vmatpush.msrb.mxu3 %v723_v7 }
  0x30   :  { %234 = vmatpush.msrb.mxu0 %v791_v18  ;;  %254 = vmatpush.msrb.mxu1 %v882_v34 }
  0x31   :  { %333 = vmatpush.msrb.mxu2 %v718_v6  ;;  %354 = vmatpush.msrb.mxu3 %v736_v9 }
  0x32   :  { %235 = vmatpush.msrb.mxu0 %v810_v22  ;;  %255 = vmatpush.msrb.mxu1 %v902_v37 }
  0x33   :  { %334 = vmatpush.msrb.mxu2 %v731_v8  ;;  %355 = vmatpush.msrb.mxu3 %v749_v11 }
  0x34   :  { %236 = vmatpush.msrb.mxu0 %v829_v25  ;;  %256 = vmatpush.msrb.mxu1 %v921_v40 }
  0x35   :  { %335 = vmatpush.msrb.mxu2 %v744_v10  ;;  %356 = vmatpush.msrb.mxu3 %v772_v15 }
  0x36   :  { %237 = vmatpush.msrb.mxu0 %v854_v29  ;;  %257 = vmatpush.msrb.mxu1 %v941_v44 }
  0x37   :  { %336 = vmatpush.msrb.mxu2 %v767_v14  ;;  %357 = vmatpush.msrb.mxu3 %v791_v18 }
  0x38   :  { %238 = vmatpush.msrb.mxu0 %v874_v33  ;;  %258 = vmatpush.msrb.mxu1 %v960_v47 }
  0x39   :  { %337 = vmatpush.msrb.mxu2 %v786_v17  ;;  %358 = vmatpush.msrb.mxu3 %v810_v22 }
  0x3a   :  { %239 = vmatpush.msrb.mxu0 %v892_v36  ;;  %259 = vmatpush.msrb.mxu1 %v968_v49 }
  0x3b   :  { %338 = vmatpush.msrb.mxu2 %v805_v21  ;;  %359 = vmatpush.msrb.mxu3 %v829_v25 }
  0x3c   :  { %240 = vmatpush.msrb.mxu0 %v912_v39  ;;  %260 = vmatpush.msrb.mxu1 %v975_v50 }
  0x3d   :  { %339 = vmatpush.msrb.mxu2 %v824_v24  ;;  %360 = vmatpush.msrb.mxu3 %v854_v29 }
  0x3e   :  { %241 = vmatpush.msrb.mxu0 %v932_v43  ;;  %261 = vmatpush.msrb.mxu1 %v984_v51 }
  0x3f   :  { %340 = vmatpush.msrb.mxu2 %v849_v28  ;;  %361 = vmatpush.msrb.mxu3 %v874_v33 }
  0x40   :  { %242 = vmatpush.msrb.mxu0 %v951_v46  ;;  %262 = vmatpush.msrb.mxu1 %v993_v52 }
  0x41   :  { %341 = vmatpush.msrb.mxu2 %v869_v32  ;;  %362 = vmatpush.msrb.mxu3 %v892_v36 }
  0x42   :  { %370 = vmatpush.msra.mxu0 %v754_v12  ;;  %453 = vmatpush.msra.mxu1 %v683_v0 }
  0x43   :  { %342 = vmatpush.msrb.mxu2 %v887_v35  ;;  %363 = vmatpush.msrb.mxu3 %v912_v39 }
  0x44   :  { %371 = vmatpush.msra.mxu0 %v762_v13  ;;  %454 = vmatpush.msra.mxu1 %v693_v2 }
  0x45   :  { %343 = vmatpush.msrb.mxu2 %v907_v38  ;;  %364 = vmatpush.msrb.mxu3 %v932_v43 }
  0x46   :  { %372 = vmatpush.msra.mxu0 %v781_v16  ;;  %455 = vmatpush.msra.mxu1 %v705_v4 }
  0x47   :  { %344 = vmatpush.msrb.mxu2 %v927_v42  ;;  %365 = vmatpush.msrb.mxu3 %v951_v46 }
  0x48   :  { %373 = vmatpush.msra.mxu0 %v800_v20  ;;  %456 = vmatpush.msra.mxu1 %v718_v6 }
  0x49   :  { %345 = vmatpush.msrb.mxu2 %v946_v45 }
  0x4a   :  { %374 = vmatpush.msra.mxu0 %v819_v23  ;;  %457 = vmatpush.msra.mxu1 %v731_v8 }
  0x4b   :  { %473 = vmatpush.msra.mxu2 %v688_v1 }
  0x4c   :  { %375 = vmatpush.msra.mxu0 %v843_v27  ;;  %458 = vmatpush.msra.mxu1 %v744_v10  ;;  %v1122_v10 = vperm.slane %v73_v53, 2 }
  0x4d   :  { %474 = vmatpush.msra.mxu2 %v700_v3 }
  0x4e   :  { %376 = vmatpush.msra.mxu0 %v864_v31  ;;  %459 = vmatpush.msra.mxu1 %v767_v14 }
  0x4f   :  { %475 = vmatpush.msra.mxu2 %v710_v5 }
  0x50   :  { %377 = vmatpush.msra.mxu0 %v882_v34  ;;  %460 = vmatpush.msra.mxu1 %v786_v17 }
  0x51   :  { %476 = vmatpush.msra.mxu2 %v723_v7 }
  0x52   :  { %378 = vmatpush.msra.mxu0 %v902_v37  ;;  %461 = vmatpush.msra.mxu1 %v805_v21 }
  0x53   :  { %477 = vmatpush.msra.mxu2 %v736_v9 }
  0x54   :  { %379 = vmatpush.msra.mxu0 %v921_v40  ;;  %462 = vmatpush.msra.mxu1 %v824_v24 }
  0x55   :  { %478 = vmatpush.msra.mxu2 %v749_v11 }
  0x56   :  { %380 = vmatpush.msra.mxu0 %v941_v44  ;;  %463 = vmatpush.msra.mxu1 %v849_v28 }
  0x57   :  { %479 = vmatpush.msra.mxu2 %v772_v15 }
  0x58   :  { %381 = vmatpush.msra.mxu0 %v960_v47  ;;  %464 = vmatpush.msra.mxu1 %v869_v32 }
  0x59   :  { %480 = vmatpush.msra.mxu2 %v791_v18 }
  0x5a   :  { %382 = vmatpush.msra.mxu0 %v968_v49  ;;  %465 = vmatpush.msra.mxu1 %v887_v35 }
  0x5b   :  { %481 = vmatpush.msra.mxu2 %v810_v22 }
  0x5c   :  { %383 = vmatpush.msra.mxu0 %v975_v50  ;;  %466 = vmatpush.msra.mxu1 %v907_v38 }
  0x5d   :  { %482 = vmatpush.msra.mxu2 %v829_v25 }
  0x5e   :  { %384 = vmatpush.msra.mxu0 %v984_v51  ;;  %467 = vmatpush.msra.mxu1 %v927_v42 }
  0x5f   :  { %483 = vmatpush.msra.mxu2 %v854_v29 }
  0x60   :  { %385 = vmatpush.msra.mxu0 %v993_v52  ;;  %468 = vmatpush.msra.mxu1 %v946_v45 }
  0x61   :  { %484 = vmatpush.msra.mxu2 %v874_v33 }
  0x63   :  { %485 = vmatpush.msra.mxu2 %v892_v36 }
  0x65   :  { %486 = vmatpush.msra.mxu2 %v912_v39 }
  0x67   :  { %487 = vmatpush.msra.mxu2 %v932_v43 }
  0x69   :  { %488 = vmatpush.msra.mxu2 %v951_v46 }
  0x9e   :  { %v103_v57 = vpop.f32.mrf.mxu0  ;;  %v123_v59 = vpop.f32.mrf.mxu1 }
  0x9f   :  { %v104_v60 = vadd.f32 %v103_v57, %v1110_v54  ;;  %v124_v61 = vadd.f32 %v123_v59, %v1112_v55 }
  0xa1   :  { %v146_v62 = vadd.f32 %v104_v60, %v76_v56  ;;  %v166_v63 = vadd.f32 %v124_v61, %v77_v58  ;;  %v198_v56 = vpop.permute.xlu0 %197 }
  0xa2   :  { %vm199_vm10 = vcmp.eq.s32.totalorder %v198_v56, 1 }
  0xa3   :  { %v581_v0 = vmul.f32 -1.442695, %v146_v62  ;;  %v582_v1 = vmul.f32 -1.442695, %v166_v63 }
  0xa5   :  { %605 = vpow2.f32 %v581_v0  ;;  %v563_v0 = vsel %vm562_vm12, 1, %v648_v19 }
  0xa6   :  { %607 = vpow2.f32 %v582_v1 }
  0xab   :  { %v606_v2 = vpop.eup %605 }
  0xac   :  { %v608_v3 = vpop.eup %607  ;;  %v150_v4 = vadd.f32 1.0, %v606_v2  ;;  %v143_v14 = vpop.f32.mrf.mxu2 }
  0xad   :  { %v170_v5 = vadd.f32 1.0, %v608_v3  ;;  %v144_v24 = vadd.f32 %v143_v14, %v1122_v10 }
  0xae   :  { %609 = vrcp.f32 %v150_v4  ;;  %v162_v15 = vand.u32 2147483648, %v150_v4  ;;  %v160_v21 = vand.u32 2147483647, %v150_v4  ;;  %vm156_vm3 = vweird.f32 %v150_v4 }
  0xaf   :  { %611 = vrcp.f32 %v170_v5  ;;  %vm176_vm6 = vweird.f32 %v170_v5  ;;  %v182_v36 = vand.u32 2147483648, %v170_v5  ;;  %v180_v38 = vand.u32 2147483647, %v170_v5 }
  0xb0   :  { %v163_v28 = vor.u32 1.1754944e-38, %v162_v15  ;;  %vm161_vm5 = vcmp.eq.f32.partialorder %v160_v21, 8.507059e+37 }
  0xb1   :  { %v183_v42 = vor.u32 1.1754944e-38, %v182_v36  ;;  %vm181_vm9 = vcmp.eq.f32.partialorder %v180_v38, 8.507059e+37  ;;  %v589_v38 = vld [vmem:[%s1221_s1 + $0x30] sm:$0xff] }
  0xb4   :  { %v610_v6 = vpop.eup %609 }
  0xb5   :  { %v612_v7 = vpop.eup %611  ;;  %v152_v8 = vmul.f32 %v610_v6, %v150_v4  ;;  %vm157_vm2 = vweird.f32 %v610_v6 }
  0xb6   :  { %v172_v9 = vmul.f32 %v612_v7, %v170_v5  ;;  %vm158_vm4 = vmor %vm156_vm3, %vm157_vm2  ;;  %vm177_vm7 = vweird.f32 %v612_v7 }
  0xb7   :  { %v153_v11 = vsub.f32 1.0, %v152_v8  ;;  %vm178_vm8 = vmor %vm176_vm6, %vm177_vm7 }
  0xb8   :  { %v173_v17 = vsub.f32 1.0, %v172_v9 }
  0xb9   :  { %v154_v18 = vmul.f32 %v610_v6, %v153_v11 }
  0xba   :  { %v174_v22 = vmul.f32 %v612_v7, %v173_v17 }
  0xbb   :  { %v155_v25 = vadd.f32 %v610_v6, %v154_v18 }
  0xbc   :  { %v175_v33 = vadd.f32 %v612_v7, %v174_v22 }
  0xbd   :  { %v159_v29 = vsel %vm158_vm4, %v610_v6, %v155_v25 }
  0xbe   :  { %v164_v32 = vsel %vm161_vm5, %v163_v28, %v159_v29  ;;  %v179_v41 = vsel %vm178_vm8, %v612_v7, %v175_v33  ;;  %v320_v29 = vpop.permute.xlu0 %319 }
  0xbf   :  { %v186_v35 = vmul.f32 %v164_v32, %v144_v24  ;;  %v184_v43 = vsel %vm181_vm9, %v183_v42, %v179_v41  ;;  %vm321_vm5 = vcmp.eq.s32.totalorder %v320_v29, 1  ;;  %v590_v41 = vld [vmem:[%s1221_s1 + $0x38] sm:$0xff] }
  0xc0   :  { %v189_v45 = vsub.f32 1.0, %v184_v43  ;;  %v191_v53 = vmul.f32 0.0, %v184_v43 }
  0xc1   :  { %v187_v39 = vadd.f32 %v186_v35, %v78_v30 }
  0xc3   :  { %613 = vtanh.f32 %v187_v39 }
  0xc9   :  { %v614_v46 = vpop.eup %613 }
  0xca   :  { %v190_v48 = vmul.f32 %v614_v46, %v189_v45 }
  0xcc   :  { %v192_v57 = vadd.f32 %v191_v53, %v190_v48 }
  0xce   :  { %v1128_v58 = vsel %vm199_vm10, %v192_v57, 0.0  ;;  %645 = vmatmul.msk.f32.vlgmr.msra.gmra.mxu3 %vm199_vm10, %v192_v57  ;;  %646 = vmatmul.msk.f32.vlgmr.msrb.gmra.mxu0 %vm199_vm10, %v192_v57 }
  0xcf   :  { %202 = vst [vmem:[%s1222_s4] sm:$0xff] %v1128_v58  ;;  %647 = vmatmul.msk.f32.vlgmr.msrb.gmra.mxu1 %vm199_vm10, %v192_v57  ;;  %493 = vmatpush.msra.mxu3 %v754_v12  ;;  %v584_v12 = vld [vmem:[%s1221_s1 + $0x20] sm:$0xff] }
  0xd1   :  { %494 = vmatpush.msra.mxu3 %v762_v13 }
  0xd3   :  { %495 = vmatpush.msra.mxu3 %v781_v16 }
  0xd5   :  { %496 = vmatpush.msra.mxu3 %v800_v20 }
  0xd7   :  { %497 = vmatpush.msra.mxu3 %v819_v23 }
  0xd9   :  { %498 = vmatpush.msra.mxu3 %v843_v27  ;;  %v583_v27 = vld [vmem:[%s1221_s1 + $0x18] sm:$0xff] }
  0xdb   :  { %499 = vmatpush.msra.mxu3 %v864_v31 }
  0xdd   :  { %500 = vmatpush.msra.mxu3 %v882_v34 }
  0xdf   :  { %501 = vmatpush.msra.mxu3 %v902_v37 }
  0xe1   :  { %502 = vmatpush.msra.mxu3 %v921_v40 }
  0xe3   :  { %503 = vmatpush.msra.mxu3 %v941_v44 }
  0xe5   :  { %504 = vmatpush.msra.mxu3 %v960_v47 }
  0xe7   :  { %505 = vmatpush.msra.mxu3 %v968_v49 }
  0xe9   :  { %506 = vmatpush.msra.mxu3 %v975_v50 }
  0xeb   :  { %507 = vmatpush.msra.mxu3 %v984_v51 }
  0xed   :  { %508 = vmatpush.msra.mxu3 %v993_v52  ;;  %v440_v52 = vsel %vm439_vm11, 1, %v648_v19  ;;  %v585_v19 = vld [vmem:[%s1221_s1 + $0x28] sm:$0xff] }
  0xee   :  { %442 = vperm.xlu1 %604, %v440_v52  }
  0xf6   :  { %565 = vperm.xlu1 %604, %v563_v0  }
 0x14b   :  { %v244_v13 = vpop.f32.mrf.mxu0 }
 0x14c   :  { %v245_v16 = vadd.f32 %v244_v13, %v1112_v55  ;;  %v264_v5 = vpop.f32.mrf.mxu1 }
 0x14d   :  { %v265_v8 = vadd.f32 %v264_v5, %v1122_v10 }
 0x14e   :  { %v287_v20 = vadd.f32 %v584_v12, %v245_v16 }
 0x150   :  { %v587_v23 = vmul.f32 -1.442695, %v287_v20 }
 0x151   :  { %v224_v31 = vpop.f32.mrf.mxu3 }
 0x152   :  { %615 = vpow2.f32 %v587_v23  ;;  %v225_v34 = vadd.f32 %v224_v31, %v1110_v54 }
 0x154   :  { %v267_v37 = vadd.f32 %v583_v27, %v225_v34 }
 0x156   :  { %v586_v40 = vmul.f32 -1.442695, %v267_v37 }
 0x158   :  { %v616_v44 = vpop.eup %615  ;;  %617 = vpow2.f32 %v586_v40 }
 0x159   :  { %v291_v47 = vadd.f32 1.0, %v616_v44 }
 0x15b   :  { %619 = vrcp.f32 %v291_v47  ;;  %v303_v14 = vand.u32 2147483648, %v291_v47  ;;  %vm297_vm2 = vweird.f32 %v291_v47  ;;  %v301_v17 = vand.u32 2147483647, %v291_v47 }
 0x15d   :  { %v304_v22 = vor.u32 1.1754944e-38, %v303_v14  ;;  %vm302_vm4 = vcmp.eq.f32.partialorder %v301_v17, 8.507059e+37 }
 0x15e   :  { %v618_v49 = vpop.eup %617 }
 0x15f   :  { %v271_v50 = vadd.f32 1.0, %v618_v49 }
 0x161   :  { %621 = vrcp.f32 %v271_v50  ;;  %v620_v51 = vpop.eup %619  ;;  %v283_v1 = vand.u32 2147483648, %v271_v50  ;;  %v281_v3 = vand.u32 2147483647, %v271_v50  ;;  %vm277_vm14 = vweird.f32 %v271_v50 }
 0x162   :  { %v293_v59 = vmul.f32 %v620_v51, %v291_v47  ;;  %vm298_vm1 = vweird.f32 %v620_v51 }
 0x163   :  { %v284_v7 = vor.u32 1.1754944e-38, %v283_v1  ;;  %vm282_vm0 = vcmp.eq.f32.partialorder %v281_v3, 8.507059e+37  ;;  %vm299_vm3 = vmor %vm297_vm2, %vm298_vm1 }
 0x164   :  { %v294_v62 = vsub.f32 1.0, %v293_v59 }
 0x166   :  { %v295_v4 = vmul.f32 %v620_v51, %v294_v62 }
 0x167   :  { %v622_v60 = vpop.eup %621 }
 0x168   :  { %v273_v61 = vmul.f32 %v622_v60, %v271_v50  ;;  %vm278_vm13 = vweird.f32 %v622_v60  ;;  %v296_v11 = vadd.f32 %v620_v51, %v295_v4 }
 0x169   :  { %vm279_vm15 = vmor %vm277_vm14, %vm278_vm13 }
 0x16a   :  { %v274_v63 = vsub.f32 1.0, %v273_v61  ;;  %v300_v21 = vsel %vm299_vm3, %v620_v51, %v296_v11 }
 0x16b   :  { %v305_v24 = vsel %vm302_vm4, %v304_v22, %v300_v21 }
 0x16c   :  { %v275_v2 = vmul.f32 %v622_v60, %v274_v63  ;;  %v310_v25 = vsub.f32 1.0, %v305_v24  ;;  %v312_v32 = vmul.f32 %v305_v24, %v1128_v58  ;;  %v596_v24 = vld [vmem:[%s1221_s1 + $0x50] sm:$0xff] }
 0x16e   :  { %v276_v6 = vadd.f32 %v622_v60, %v275_v2 }
 0x170   :  { %v280_v9 = vsel %vm279_vm15, %v622_v60, %v276_v6  ;;  %v591_v60 = vld [vmem:[%s1221_s1 + $0x40] sm:$0xff] }
 0x171   :  { %v285_v26 = vsel %vm282_vm0, %v284_v7, %v280_v9 }
 0x172   :  { %v307_v15 = vmul.f32 %v285_v26, %v265_v8  ;;  %v443_v8 = vpop.permute.xlu1 %442 }
 0x173   :  { %vm444_vm14 = vcmp.eq.s32.totalorder %v443_v8, 1 }
 0x174   :  { %v308_v18 = vadd.f32 %v585_v19, %v307_v15  ;;  %v595_v15 = vld [vmem:[%s1221_s1 + $0x48] sm:$0xff] }
 0x176   :  { %623 = vtanh.f32 %v308_v18 }
 0x17c   :  { %v624_v28 = vpop.eup %623 }
 0x17d   :  { %v311_v30 = vmul.f32 %v624_v28, %v310_v25 }
 0x17f   :  { %v313_v33 = vadd.f32 %v312_v32, %v311_v30 }
 0x181   :  { %v1168_v35 = vsel %vm321_vm5, %v313_v33, %v1128_v58  ;;  %v323_v36 = vsel %vm321_vm5, %v313_v33, 0.0 }
 0x182   :  { %588 = vst [vmem:[%s1222_s4 + $0x8] sm:$0xff] %v323_v36  ;;  %346 = vmatmul.f32.vlgmr.msrb.gmra.mxu2 %v1168_v35  ;;  %366 = vmatmul.f32.vlgmr.msrb.gmra.mxu3 %v1168_v35 }
 0x183   :  { %386 = vmatmul.f32.vlgmr.msra.gmra.mxu0 %v1168_v35 }
 0x200   :  { %v387_v47 = vpop.f32.mrf.mxu0 }
 0x201   :  { %v388_v52 = vadd.f32 %v387_v47, %v1122_v10 }
 0x205   :  { %v347_v39 = vpop.f32.mrf.mxu2  ;;  %v367_v42 = vpop.f32.mrf.mxu3 }
 0x206   :  { %v348_v43 = vadd.f32 %v347_v39, %v1110_v54  ;;  %v368_v45 = vadd.f32 %v367_v42, %v1112_v55 }
 0x208   :  { %v390_v46 = vadd.f32 %v589_v38, %v348_v43  ;;  %v410_v48 = vadd.f32 %v590_v41, %v368_v45 }
 0x20a   :  { %v592_v53 = vmul.f32 -1.442695, %v390_v46  ;;  %v593_v56 = vmul.f32 -1.442695, %v410_v48 }
 0x20c   :  { %625 = vpow2.f32 %v592_v53 }
 0x20d   :  { %627 = vpow2.f32 %v593_v56 }
 0x212   :  { %v626_v57 = vpop.eup %625 }
 0x213   :  { %v628_v58 = vpop.eup %627  ;;  %v394_v12 = vadd.f32 1.0, %v626_v57 }
 0x214   :  { %v414_v13 = vadd.f32 1.0, %v628_v58 }
 0x215   :  { %629 = vrcp.f32 %v394_v12  ;;  %v406_v34 = vand.u32 2147483648, %v394_v12  ;;  %v404_v44 = vand.u32 2147483647, %v394_v12  ;;  %vm400_vm7 = vweird.f32 %v394_v12 }
 0x216   :  { %631 = vrcp.f32 %v414_v13  ;;  %v426_v63 = vand.u32 2147483648, %v414_v13  ;;  %vm420_vm11 = vweird.f32 %v414_v13  ;;  %v424_v1 = vand.u32 2147483647, %v414_v13 }
 0x217   :  { %v407_v51 = vor.u32 1.1754944e-38, %v406_v34  ;;  %vm405_vm9 = vcmp.eq.f32.partialorder %v404_v44, 8.507059e+37 }
 0x218   :  { %v427_v4 = vor.u32 1.1754944e-38, %v426_v63  ;;  %vm425_vm13 = vcmp.eq.f32.partialorder %v424_v1, 8.507059e+37 }
 0x21b   :  { %v630_v16 = vpop.eup %629 }
 0x21c   :  { %v632_v20 = vpop.eup %631  ;;  %v396_v23 = vmul.f32 %v630_v16, %v394_v12  ;;  %vm401_vm6 = vweird.f32 %v630_v16  ;;  %v597_v12 = vld [vmem:[%s1221_s1 + $0x58] sm:$0xff] }
 0x21d   :  { %v416_v27 = vmul.f32 %v632_v20, %v414_v13  ;;  %vm402_vm8 = vmor %vm400_vm7, %vm401_vm6  ;;  %vm421_vm10 = vweird.f32 %v632_v20 }
 0x21e   :  { %v397_v31 = vsub.f32 1.0, %v396_v23  ;;  %vm422_vm12 = vmor %vm420_vm11, %vm421_vm10 }
 0x21f   :  { %v417_v37 = vsub.f32 1.0, %v416_v27 }
 0x220   :  { %v398_v40 = vmul.f32 %v630_v16, %v397_v31 }
 0x221   :  { %v418_v49 = vmul.f32 %v632_v20, %v417_v37 }
 0x222   :  { %v399_v50 = vadd.f32 %v630_v16, %v398_v40 }
 0x223   :  { %v419_v62 = vadd.f32 %v632_v20, %v418_v49  ;;  %v566_v49 = vpop.permute.xlu1 %565 }
 0x224   :  { %v403_v59 = vsel %vm402_vm8, %v630_v16, %v399_v50  ;;  %vm567_vm7 = vcmp.eq.s32.totalorder %v566_v49, 1 }
 0x225   :  { %v408_v61 = vsel %vm405_vm9, %v407_v51, %v403_v59  ;;  %v423_v3 = vsel %vm422_vm12, %v632_v20, %v419_v62 }
 0x226   :  { %v430_v0 = vmul.f32 %v408_v61, %v388_v52  ;;  %v428_v5 = vsel %vm425_vm13, %v427_v4, %v423_v3 }
 0x227   :  { %v433_v6 = vsub.f32 1.0, %v428_v5  ;;  %v435_v26 = vmul.f32 %v428_v5, %v1168_v35 }
 0x228   :  { %v431_v2 = vadd.f32 %v591_v60, %v430_v0 }
 0x22a   :  { %633 = vtanh.f32 %v431_v2 }
 0x230   :  { %v634_v7 = vpop.eup %633 }
 0x231   :  { %v434_v9 = vmul.f32 %v634_v7, %v433_v6 }
 0x233   :  { %v436_v19 = vadd.f32 %v435_v26, %v434_v9 }
 0x235   :  { %v1190_v11 = vsel %vm444_vm14, %v436_v19, %v1168_v35  ;;  %v446_v14 = vsel %vm444_vm14, %v436_v19, 0.0 }
 0x236   :  { %594 = vst [vmem:[%s1222_s4 + $0x10] sm:$0xff] %v446_v14  ;;  %469 = vmatmul.f32.vlgmr.msra.gmra.mxu1 %v1190_v11  ;;  %489 = vmatmul.f32.vlgmr.msra.gmra.mxu2 %v1190_v11 }
 0x237   :  { %509 = vmatmul.f32.vlgmr.msra.gmra.mxu3 %v1190_v11 }
 0x2b3   :  { %v470_v17 = vpop.f32.mrf.mxu1 }
 0x2b4   :  { %v471_v18 = vadd.f32 %v470_v17, %v1110_v54 }
 0x2b6   :  { %v513_v21 = vadd.f32 %v595_v15, %v471_v18 }
 0x2b8   :  { %v598_v22 = vmul.f32 -1.442695, %v513_v21 }
 0x2b9   :  { %v490_v25 = vpop.f32.mrf.mxu2 }
 0x2ba   :  { %635 = vpow2.f32 %v598_v22  ;;  %v491_v28 = vadd.f32 %v490_v25, %v1112_v55  ;;  %v510_v46 = vpop.f32.mrf.mxu3 }
 0x2bb   :  { %v511_v57 = vadd.f32 %v510_v46, %v1122_v10 }
 0x2bc   :  { %v533_v29 = vadd.f32 %v596_v24, %v491_v28 }
 0x2be   :  { %v599_v30 = vmul.f32 -1.442695, %v533_v29 }
 0x2c0   :  { %v636_v32 = vpop.eup %635  ;;  %637 = vpow2.f32 %v599_v30 }
 0x2c1   :  { %v517_v33 = vadd.f32 1.0, %v636_v32 }
 0x2c3   :  { %639 = vrcp.f32 %v517_v33  ;;  %v529_v41 = vand.u32 2147483648, %v517_v33  ;;  %v527_v43 = vand.u32 2147483647, %v517_v33  ;;  %vm523_vm0 = vweird.f32 %v517_v33 }
 0x2c5   :  { %v530_v53 = vor.u32 1.1754944e-38, %v529_v41  ;;  %vm528_vm2 = vcmp.eq.f32.partialorder %v527_v43, 8.507059e+37 }
 0x2c6   :  { %v638_v35 = vpop.eup %637 }
 0x2c7   :  { %v537_v36 = vadd.f32 1.0, %v638_v35 }
 0x2c9   :  { %v640_v38 = vpop.eup %639  ;;  %641 = vrcp.f32 %v537_v36  ;;  %v549_v20 = vand.u32 2147483648, %v537_v36  ;;  %v547_v27 = vand.u32 2147483647, %v537_v36  ;;  %vm543_vm4 = vweird.f32 %v537_v36 }
 0x2ca   :  { %v519_v54 = vmul.f32 %v640_v38, %v517_v33  ;;  %vm524_vm15 = vweird.f32 %v640_v38 }
 0x2cb   :  { %vm525_vm1 = vmor %vm523_vm0, %vm524_vm15  ;;  %v550_v37 = vor.u32 1.1754944e-38, %v549_v20  ;;  %vm548_vm6 = vcmp.eq.f32.partialorder %v547_v27, 8.507059e+37 }
 0x2cc   :  { %v520_v39 = vsub.f32 1.0, %v519_v54 }
 0x2ce   :  { %v521_v42 = vmul.f32 %v640_v38, %v520_v39 }
 0x2cf   :  { %v642_v45 = vpop.eup %641 }
 0x2d0   :  { %v539_v48 = vmul.f32 %v642_v45, %v537_v36  ;;  %v522_v55 = vadd.f32 %v640_v38, %v521_v42  ;;  %vm544_vm3 = vweird.f32 %v642_v45 }
 0x2d1   :  { %vm545_vm5 = vmor %vm543_vm4, %vm544_vm3 }
 0x2d2   :  { %v540_v56 = vsub.f32 1.0, %v539_v48  ;;  %v526_v58 = vsel %vm525_vm1, %v640_v38, %v522_v55 }
 0x2d3   :  { %v531_v13 = vsel %vm528_vm2, %v530_v53, %v526_v58 }
 0x2d4   :  { %v541_v16 = vmul.f32 %v642_v45, %v540_v56  ;;  %v553_v23 = vmul.f32 %v531_v13, %v511_v57 }
 0x2d6   :  { %v542_v31 = vadd.f32 %v642_v45, %v541_v16  ;;  %v554_v34 = vadd.f32 %v597_v12, %v553_v23 }
 0x2d8   :  { %v546_v40 = vsel %vm545_vm5, %v642_v45, %v542_v31  ;;  %643 = vtanh.f32 %v554_v34 }
 0x2d9   :  { %v551_v10 = vsel %vm548_vm6, %v550_v37, %v546_v40 }
 0x2da   :  { %v556_v44 = vsub.f32 1.0, %v551_v10  ;;  %v558_v51 = vmul.f32 %v551_v10, %v1190_v11 }
 0x2de   :  { %v644_v47 = vpop.eup %643 }
 0x2df   :  { %v557_v50 = vmul.f32 %v644_v47, %v556_v44 }
 0x2e1   :  { %v559_v52 = vadd.f32 %v558_v51, %v557_v50 }
 0x2e3   :  { %v568_v59 = vsel %vm567_vm7, %v559_v52, %v1190_v11  ;;  %v569_v60 = vsel %vm567_vm7, %v559_v52, 0.0 }
 0x2e4   :  { %600 = vst [vmem:[%s1222_s4 + $0x18] sm:$0xff] %v569_v60 }
 0x2e5   :  { %572 = vst [vmem:[%s1223_s5] sm:$0xff] %v568_v59 }

// kernel: hrnn_encoder_forward.2
= control target key start
LH: loop header
LB: loop body
LE: loop exit
PB: predicated region body
PF: predicated region fallthrough
CT: control target
= control target key end

     0   :  { %v2263_v19 = vmov 0   ;;  %v1219_v48 = vmov 0.0   ;;  %s2258_s2 = inlined_call_operand.vmem [shape: f32[128,384], index: 2, kind: input, shape index: {}]   ;;  %s2259_s0 = inlined_call_operand.vmem [shape: s32[8,1], index: 0, kind: input, shape index: {}]   ;;  %s2260_s3 = inlined_call_operand.vmem [shape: f32[1,384], index: 3, kind: input, shape index: {}]   ;;  %s2261_s1 = inlined_call_operand.vmem [shape: f32[8,8,384], index: 1, kind: input, shape index: {}]   ;;  %s2262_s4 = inlined_call_operand.vmem [shape: f32[8,128], index: 4, kind: output, shape index: {}]  }
   0x1   :  { %v1248_v0 = vld [vmem:[%s2258_s2 + $0x168] sm:$0xff]  ;;  %v1253_v1 = vld [vmem:[%s2258_s2 + $0x170] sm:$0xff]  ;;  %v1265_v3 = vld [vmem:[%s2258_s2 + $0x158] sm:$0xff]  ;;  %1083 = vset.pattern.permute.xlu0 %v2263_v19  ;;  %1084 = vset.pattern.permute.xlu1 %v2263_v19 }
   0x2   :  { %v1258_v2 = vld [vmem:[%s2258_s2 + $0x150] sm:$0xff]  ;;  %84 = vmatpush.msra.mxu0 %v1248_v0  ;;  %104 = vmatpush.msra.mxu1 %v1253_v1  ;;  %v1270_v4 = vld [vmem:[%s2258_s2 + $0x138] sm:$0xff]  ;;  %v1275_v5 = vld [vmem:[%s2258_s2 + $0x140] sm:$0xff] }
   0x3   :  { %203 = vmatpush.msra.mxu3 %v1248_v0  ;;  %v1283_v6 = vld [vmem:[%s2258_s2 + $0x120] sm:$0xff]  ;;  %v1288_v7 = vld [vmem:[%s2258_s2 + $0x128] sm:$0xff]  ;;  %v1301_v9 = vld [vmem:[%s2258_s2 + $0x110] sm:$0xff]  ;;  %1085 = vset.pattern.permute.xlu2 %v2263_v19 }
   0x4   :  { %85 = vmatpush.msra.mxu0 %v1258_v2  ;;  %105 = vmatpush.msra.mxu1 %v1265_v3  ;;  %v1296_v8 = vld [vmem:[%s2258_s2 + $0x108] sm:$0xff]  ;;  %v1309_v10 = vld [vmem:[%s2258_s2 + $0xf0] sm:$0xff]  ;;  %v1314_v11 = vld [vmem:[%s2258_s2 + $0xf8] sm:$0xff] }
   0x5   :  { %204 = vmatpush.msra.mxu3 %v1258_v2  ;;  %v1319_v12 = vld [vmem:[%s2258_s2 + $0x178] sm:$0xff]  ;;  %v1327_v13 = vld [vmem:[%s2258_s2 + $0x160] sm:$0xff]  ;;  %v1346_v16 = vld [vmem:[%s2258_s2 + $0x148] sm:$0xff] }
   0x6   :  { %86 = vmatpush.msra.mxu0 %v1270_v4  ;;  %106 = vmatpush.msra.mxu1 %v1275_v5  ;;  %v1332_v14 = vld [vmem:[%s2258_s2 + $0xd8] sm:$0xff]  ;;  %v1337_v15 = vld [vmem:[%s2258_s2 + $0xe0] sm:$0xff]  ;;  %v1356_v18 = vld [vmem:[%s2258_s2 + $0xc8] sm:$0xff] }
   0x7   :  { %205 = vmatpush.msra.mxu3 %v1270_v4  ;;  %124 = vmatpush.msra.mxu2 %v1319_v12  ;;  %v1351_v17 = vld [vmem:[%s2258_s2 + $0xc0] sm:$0xff]  ;;  %v1365_v20 = vld [vmem:[%s2258_s2 + $0x130] sm:$0xff]  ;;  %v1370_v21 = vld [vmem:[%s2258_s2 + $0xa8] sm:$0xff] }
   0x8   :  { %87 = vmatpush.msra.mxu0 %v1283_v6  ;;  %107 = vmatpush.msra.mxu1 %v1288_v7  ;;  %v1375_v22 = vld [vmem:[%s2258_s2 + $0xb0] sm:$0xff]  ;;  %v1384_v23 = vld [vmem:[%s2258_s2 + $0x118] sm:$0xff]  ;;  %v1400_v26 = vld [vmem:[%s2259_s0] sm:$0xff] }
   0x9   :  { %206 = vmatpush.msra.mxu3 %v1283_v6  ;;  %125 = vmatpush.msra.mxu2 %v1327_v13  ;;  %v1389_v24 = vld [vmem:[%s2258_s2 + $0x90] sm:$0xff]  ;;  %v1394_v25 = vld [vmem:[%s2258_s2 + $0x98] sm:$0xff]  ;;  %2287 = vst [vmem:[#allocation2_spill] sm:$0xff] %v1400_v26  ;;  %v1408_v27 = vld [vmem:[%s2258_s2 + $0x100] sm:$0xff]  ;;  %vm192_vm0 = vcmp.gt.s32.totalorder %v1400_v26, 0  ;;  %vm312_vm1 = vcmp.gt.s32.totalorder %v1400_v26, 1 }
   0xa   :  { %88 = vmatpush.msra.mxu0 %v1296_v8  ;;  %108 = vmatpush.msra.mxu1 %v1301_v9  ;;  %v1414_v28 = vld [vmem:[%s2258_s2 + $0x78] sm:$0xff]  ;;  %v1419_v29 = vld [vmem:[%s2258_s2 + $0x80] sm:$0xff]  ;;  %v193_v30 = vsel %vm192_vm0, 1, %v2263_v19  ;;  %v1429_v31 = vld [vmem:[%s2258_s2 + $0xe8] sm:$0xff]  ;;  %v313_v41 = vsel %vm312_vm1, 1, %v2263_v19  ;;  %vm912_vm2 = vcmp.gt.s32.totalorder %v1400_v26, 6 }
   0xb   :  { %207 = vmatpush.msra.mxu3 %v1296_v8  ;;  %126 = vmatpush.msra.mxu2 %v1346_v16  ;;  %v1434_v32 = vld [vmem:[%s2258_s2 + $0x60] sm:$0xff]  ;;  %v1439_v33 = vld [vmem:[%s2258_s2 + $0x68] sm:$0xff]  ;;  %v1447_v34 = vld [vmem:[%s2258_s2 + $0xd0] sm:$0xff]  ;;  %v913_v50 = vsel %vm912_vm2, 1, %v2263_v19 }
   0xc   :  { %89 = vmatpush.msra.mxu0 %v1309_v10  ;;  %109 = vmatpush.msra.mxu1 %v1314_v11  ;;  %v1452_v35 = vld [vmem:[%s2258_s2 + $0x48] sm:$0xff]  ;;  %v1457_v36 = vld [vmem:[%s2258_s2 + $0x50] sm:$0xff]  ;;  %v1467_v37 = vld [vmem:[%s2258_s2 + $0xb8] sm:$0xff] }
   0xd   :  { %208 = vmatpush.msra.mxu3 %v1309_v10  ;;  %127 = vmatpush.msra.mxu2 %v1365_v20  ;;  %v1472_v38 = vld [vmem:[%s2258_s2 + $0x30] sm:$0xff]  ;;  %v1477_v39 = vld [vmem:[%s2258_s2 + $0x38] sm:$0xff]  ;;  %v1486_v40 = vld [vmem:[%s2258_s2 + $0xa0] sm:$0xff] }
   0xe   :  { %90 = vmatpush.msra.mxu0 %v1332_v14  ;;  %110 = vmatpush.msra.mxu1 %v1337_v15  ;;  %2288 = vst [vmem:[#allocation3_spill] sm:$0xff] %v1477_v39  ;;  %v1492_v42 = vld [vmem:[%s2258_s2 + $0x18] sm:$0xff]  ;;  %v1497_v43 = vld [vmem:[%s2258_s2 + $0x20] sm:$0xff]  ;;  %v1506_v44 = vld [vmem:[%s2258_s2 + $0x88] sm:$0xff] }
   0xf   :  { %209 = vmatpush.msra.mxu3 %v1332_v14  ;;  %128 = vmatpush.msra.mxu2 %v1384_v23  ;;  %2289 = vst [vmem:[#allocation4_spill] sm:$0xff] %v1492_v42  ;;  %v1511_v45 = vld [vmem:[%s2258_s2] sm:$0xff]  ;;  %v1516_v46 = vld [vmem:[%s2258_s2 + $0x8] sm:$0xff]  ;;  %v1525_v47 = vld [vmem:[%s2258_s2 + $0x70] sm:$0xff] }
  0x10   :  { %91 = vmatpush.msra.mxu0 %v1351_v17  ;;  %111 = vmatpush.msra.mxu1 %v1356_v18  ;;  %2290 = vst [vmem:[#allocation5_spill] sm:$0xff] %v1497_v43  ;;  %v1534_v49 = vld [vmem:[%s2258_s2 + $0x58] sm:$0xff]  ;;  %v1542_v51 = vld [vmem:[%s2258_s2 + $0x40] sm:$0xff]  ;;  %v1551_v52 = vld [vmem:[%s2258_s2 + $0x28] sm:$0xff] }
  0x11   :  { %210 = vmatpush.msra.mxu3 %v1351_v17  ;;  %129 = vmatpush.msra.mxu2 %v1408_v27  ;;  %2291 = vst [vmem:[#allocation6_spill] sm:$0xff] %v1511_v45  ;;  %v1559_v53 = vld [vmem:[%s2258_s2 + $0x10] sm:$0xff]  ;;  %v71_v54 = vld [vmem:[%s2260_s3] sm:$0x7]  ;;  %v75_v59 = vld [vmem:[%s2261_s1 + $0x8] sm:$0xff] }
  0x12   :  { %92 = vmatpush.msra.mxu0 %v1370_v21  ;;  %112 = vmatpush.msra.mxu1 %v1375_v22  ;;  %2292 = vst [vmem:[#allocation7_spill] sm:$0xff] %v1516_v46  ;;  %v1678_v55 = vperm.slane %v71_v54, 0  ;;  %v1680_v56 = vperm.slane %v71_v54, 1  ;;  %v74_v57 = vld [vmem:[%s2261_s1] sm:$0xff] }
  0x13   :  { %195 = vperm.xlu0 %1083, %v193_v30   ;;  %130 = vmatpush.msra.mxu2 %v1429_v31  ;;  %2293 = vst [vmem:[#allocation8_spill] sm:$0xff] %v1551_v52 }
  0x14   :  { %93 = vmatpush.msra.mxu0 %v1389_v24  ;;  %113 = vmatpush.msra.mxu1 %v1394_v25  ;;  %2294 = vst [vmem:[#allocation9_spill] sm:$0xff] %v1559_v53 }
  0x15   :  { %211 = vmatpush.msra.mxu3 %v1370_v21  ;;  %131 = vmatpush.msra.mxu2 %v1447_v34  ;;  %2295 = vst [vmem:[#allocation10_spill] sm:$0xff] %v1678_v55 }
  0x16   :  { %94 = vmatpush.msra.mxu0 %v1414_v28  ;;  %114 = vmatpush.msra.mxu1 %v1419_v29  ;;  %2296 = vst [vmem:[#allocation11_spill] sm:$0xff] %v1680_v56 }
  0x17   :  { %212 = vmatpush.msra.mxu3 %v1389_v24  ;;  %132 = vmatpush.msra.mxu2 %v1467_v37 }
  0x18   :  { %95 = vmatpush.msra.mxu0 %v1434_v32  ;;  %115 = vmatpush.msra.mxu1 %v1439_v33 }
  0x19   :  { %213 = vmatpush.msra.mxu3 %v1414_v28  ;;  %133 = vmatpush.msra.mxu2 %v1486_v40 }
  0x1a   :  { %96 = vmatpush.msra.mxu0 %v1452_v35  ;;  %116 = vmatpush.msra.mxu1 %v1457_v36 }
  0x1b   :  { %315 = vperm.xlu0 %1083, %v313_v41   ;;  %134 = vmatpush.msra.mxu2 %v1506_v44 }
  0x1c   :  { %97 = vmatpush.msra.mxu0 %v1472_v38  ;;  %117 = vmatpush.msra.mxu1 %v1477_v39 }
  0x1d   :  { %214 = vmatpush.msra.mxu3 %v1434_v32  ;;  %135 = vmatpush.msra.mxu2 %v1525_v47 }
  0x1e   :  { %98 = vmatpush.msra.mxu0 %v1492_v42  ;;  %118 = vmatpush.msra.mxu1 %v1497_v43 }
  0x1f   :  { %215 = vmatpush.msra.mxu3 %v1452_v35  ;;  %136 = vmatpush.msra.mxu2 %v1534_v49 }
  0x20   :  { %99 = vmatpush.msra.mxu0 %v1511_v45  ;;  %119 = vmatpush.msra.mxu1 %v1516_v46 }
  0x21   :  { %100 = vmatmul.f32.vlgmr.msra.gmra.mxu0 %v1219_v48  ;;  %120 = vmatmul.f32.vlgmr.msra.gmra.mxu1 %v1219_v48 }
  0x22   :  { %223 = vmatpush.msrb.mxu0 %v1253_v1  ;;  %243 = vmatpush.msrb.mxu1 %v1319_v12 }
  0x23   :  { %915 = vperm.xlu0 %1083, %v913_v50   ;;  %137 = vmatpush.msra.mxu2 %v1542_v51 }
  0x24   :  { %224 = vmatpush.msrb.mxu0 %v1265_v3  ;;  %244 = vmatpush.msrb.mxu1 %v1327_v13 }
  0x25   :  { %216 = vmatpush.msra.mxu3 %v1472_v38  ;;  %138 = vmatpush.msra.mxu2 %v1551_v52 }
  0x26   :  { %225 = vmatpush.msrb.mxu0 %v1275_v5  ;;  %245 = vmatpush.msrb.mxu1 %v1346_v16 }
  0x27   :  { %217 = vmatpush.msra.mxu3 %v1492_v42  ;;  %139 = vmatpush.msra.mxu2 %v1559_v53 }
  0x28   :  { %226 = vmatpush.msrb.mxu0 %v1288_v7  ;;  %246 = vmatpush.msrb.mxu1 %v1365_v20 }
  0x29   :  { %140 = vmatmul.f32.vlgmr.msra.gmra.mxu2 %v1219_v48  ;;  %218 = vmatpush.msra.mxu3 %v1511_v45 }
  0x2a   :  { %227 = vmatpush.msrb.mxu0 %v1301_v9  ;;  %247 = vmatpush.msrb.mxu1 %v1384_v23 }
  0x2b   :  { %323 = vmatpush.msrb.mxu2 %v1248_v0  ;;  %343 = vmatpush.msrb.mxu3 %v1253_v1 }
  0x2c   :  { %228 = vmatpush.msrb.mxu0 %v1314_v11  ;;  %248 = vmatpush.msrb.mxu1 %v1408_v27 }
  0x2d   :  { %324 = vmatpush.msrb.mxu2 %v1258_v2  ;;  %344 = vmatpush.msrb.mxu3 %v1265_v3 }
  0x2e   :  { %229 = vmatpush.msrb.mxu0 %v1337_v15  ;;  %249 = vmatpush.msrb.mxu1 %v1429_v31 }
  0x2f   :  { %325 = vmatpush.msrb.mxu2 %v1270_v4  ;;  %345 = vmatpush.msrb.mxu3 %v1275_v5 }
  0x30   :  { %230 = vmatpush.msrb.mxu0 %v1356_v18  ;;  %250 = vmatpush.msrb.mxu1 %v1447_v34 }
  0x31   :  { %326 = vmatpush.msrb.mxu2 %v1283_v6  ;;  %346 = vmatpush.msrb.mxu3 %v1288_v7 }
  0x32   :  { %231 = vmatpush.msrb.mxu0 %v1375_v22  ;;  %251 = vmatpush.msrb.mxu1 %v1467_v37 }
  0x33   :  { %327 = vmatpush.msrb.mxu2 %v1296_v8  ;;  %347 = vmatpush.msrb.mxu3 %v1301_v9 }
  0x34   :  { %232 = vmatpush.msrb.mxu0 %v1394_v25  ;;  %252 = vmatpush.msrb.mxu1 %v1486_v40 }
  0x35   :  { %328 = vmatpush.msrb.mxu2 %v1309_v10  ;;  %348 = vmatpush.msrb.mxu3 %v1314_v11 }
  0x36   :  { %233 = vmatpush.msrb.mxu0 %v1419_v29  ;;  %253 = vmatpush.msrb.mxu1 %v1506_v44 }
  0x37   :  { %329 = vmatpush.msrb.mxu2 %v1332_v14  ;;  %349 = vmatpush.msrb.mxu3 %v1337_v15 }
  0x38   :  { %234 = vmatpush.msrb.mxu0 %v1439_v33  ;;  %254 = vmatpush.msrb.mxu1 %v1525_v47 }
  0x39   :  { %330 = vmatpush.msrb.mxu2 %v1351_v17  ;;  %350 = vmatpush.msrb.mxu3 %v1356_v18 }
  0x3a   :  { %235 = vmatpush.msrb.mxu0 %v1457_v36  ;;  %255 = vmatpush.msrb.mxu1 %v1534_v49 }
  0x3b   :  { %331 = vmatpush.msrb.mxu2 %v1370_v21  ;;  %351 = vmatpush.msrb.mxu3 %v1375_v22 }
  0x3c   :  { %236 = vmatpush.msrb.mxu0 %v1477_v39  ;;  %256 = vmatpush.msrb.mxu1 %v1542_v51 }
  0x3d   :  { %332 = vmatpush.msrb.mxu2 %v1389_v24  ;;  %352 = vmatpush.msrb.mxu3 %v1394_v25 }
  0x3e   :  { %237 = vmatpush.msrb.mxu0 %v1497_v43  ;;  %257 = vmatpush.msrb.mxu1 %v1551_v52 }
  0x3f   :  { %333 = vmatpush.msrb.mxu2 %v1414_v28  ;;  %353 = vmatpush.msrb.mxu3 %v1419_v29 }
  0x40   :  { %238 = vmatpush.msrb.mxu0 %v1516_v46  ;;  %258 = vmatpush.msrb.mxu1 %v1559_v53 }
  0x41   :  { %334 = vmatpush.msrb.mxu2 %v1434_v32  ;;  %354 = vmatpush.msrb.mxu3 %v1439_v33 }
  0x42   :  { %363 = vmatpush.msra.mxu0 %v1319_v12  ;;  %443 = vmatpush.msra.mxu1 %v1248_v0 }
  0x43   :  { %335 = vmatpush.msrb.mxu2 %v1452_v35  ;;  %355 = vmatpush.msrb.mxu3 %v1457_v36 }
  0x44   :  { %364 = vmatpush.msra.mxu0 %v1327_v13  ;;  %444 = vmatpush.msra.mxu1 %v1258_v2 }
  0x45   :  { %336 = vmatpush.msrb.mxu2 %v1472_v38  ;;  %356 = vmatpush.msrb.mxu3 %v1477_v39 }
  0x46   :  { %365 = vmatpush.msra.mxu0 %v1346_v16  ;;  %445 = vmatpush.msra.mxu1 %v1270_v4 }
  0x47   :  { %337 = vmatpush.msrb.mxu2 %v1492_v42  ;;  %357 = vmatpush.msrb.mxu3 %v1497_v43 }
  0x48   :  { %366 = vmatpush.msra.mxu0 %v1365_v20  ;;  %446 = vmatpush.msra.mxu1 %v1283_v6 }
  0x49   :  { %338 = vmatpush.msrb.mxu2 %v1511_v45  ;;  %358 = vmatpush.msrb.mxu3 %v1516_v46 }
  0x4a   :  { %367 = vmatpush.msra.mxu0 %v1384_v23  ;;  %447 = vmatpush.msra.mxu1 %v1296_v8 }
  0x4b   :  { %463 = vmatpush.msra.mxu2 %v1253_v1 }
  0x4c   :  { %368 = vmatpush.msra.mxu0 %v1408_v27  ;;  %448 = vmatpush.msra.mxu1 %v1309_v10 }
  0x4d   :  { %464 = vmatpush.msra.mxu2 %v1265_v3 }
  0x4e   :  { %369 = vmatpush.msra.mxu0 %v1429_v31  ;;  %449 = vmatpush.msra.mxu1 %v1332_v14 }
  0x4f   :  { %465 = vmatpush.msra.mxu2 %v1275_v5 }
  0x50   :  { %370 = vmatpush.msra.mxu0 %v1447_v34  ;;  %450 = vmatpush.msra.mxu1 %v1351_v17 }
  0x51   :  { %466 = vmatpush.msra.mxu2 %v1288_v7 }
  0x52   :  { %371 = vmatpush.msra.mxu0 %v1467_v37  ;;  %451 = vmatpush.msra.mxu1 %v1370_v21 }
  0x53   :  { %467 = vmatpush.msra.mxu2 %v1301_v9 }
  0x54   :  { %372 = vmatpush.msra.mxu0 %v1486_v40  ;;  %452 = vmatpush.msra.mxu1 %v1389_v24 }
  0x55   :  { %468 = vmatpush.msra.mxu2 %v1314_v11 }
  0x56   :  { %373 = vmatpush.msra.mxu0 %v1506_v44  ;;  %453 = vmatpush.msra.mxu1 %v1414_v28 }
  0x57   :  { %469 = vmatpush.msra.mxu2 %v1337_v15 }
  0x58   :  { %374 = vmatpush.msra.mxu0 %v1525_v47  ;;  %454 = vmatpush.msra.mxu1 %v1434_v32 }
  0x59   :  { %470 = vmatpush.msra.mxu2 %v1356_v18 }
  0x5a   :  { %375 = vmatpush.msra.mxu0 %v1534_v49  ;;  %455 = vmatpush.msra.mxu1 %v1452_v35 }
  0x5b   :  { %471 = vmatpush.msra.mxu2 %v1375_v22 }
  0x5c   :  { %376 = vmatpush.msra.mxu0 %v1542_v51  ;;  %456 = vmatpush.msra.mxu1 %v1472_v38 }
  0x5d   :  { %472 = vmatpush.msra.mxu2 %v1394_v25 }
  0x5e   :  { %377 = vmatpush.msra.mxu0 %v1551_v52  ;;  %457 = vmatpush.msra.mxu1 %v1492_v42  ;;  %v1690_v52 = vperm.slane %v71_v54, 2  ;;  %v76_v54 = vld [vmem:[%s2261_s1 + $0x10] sm:$0xff] }
  0x5f   :  { %473 = vmatpush.msra.mxu2 %v1419_v29 }
  0x60   :  { %378 = vmatpush.msra.mxu0 %v1559_v53  ;;  %458 = vmatpush.msra.mxu1 %v1511_v45  ;;  %2297 = vst [vmem:[#allocation12_spill] sm:$0xff] %v1690_v52 }
  0x61   :  { %474 = vmatpush.msra.mxu2 %v1439_v33 }
  0x63   :  { %475 = vmatpush.msra.mxu2 %v1457_v36 }
  0x65   :  { %476 = vmatpush.msra.mxu2 %v1477_v39 }
  0x67   :  { %477 = vmatpush.msra.mxu2 %v1497_v43 }
  0x69   :  { %478 = vmatpush.msra.mxu2 %v1516_v46 }
  0x9e   :  { %v101_v58 = vpop.f32.mrf.mxu0  ;;  %v121_v60 = vpop.f32.mrf.mxu1 }
  0x9f   :  { %v102_v61 = vadd.f32 %v101_v58, %v1678_v55  ;;  %v122_v62 = vadd.f32 %v121_v60, %v1680_v56 }
  0xa1   :  { %v144_v63 = vadd.f32 %v102_v61, %v74_v57  ;;  %v164_v30 = vadd.f32 %v122_v62, %v75_v59 }
  0xa3   :  { %v1044_v41 = vmul.f32 -1.442695, %v144_v63  ;;  %v1045_v48 = vmul.f32 -1.442695, %v164_v30 }
  0xa5   :  { %1086 = vpow2.f32 %v1044_v41 }
  0xa6   :  { %1088 = vpow2.f32 %v1045_v48 }
  0xab   :  { %v1087_v50 = vpop.eup %1086 }
  0xac   :  { %v1089_v19 = vpop.eup %1088  ;;  %v148_v26 = vadd.f32 1.0, %v1087_v50  ;;  %v141_v57 = vpop.f32.mrf.mxu2 }
  0xad   :  { %v168_v46 = vadd.f32 1.0, %v1089_v19  ;;  %v142_v30 = vadd.f32 %v141_v57, %v1690_v52  ;;  %v196_v52 = vpop.permute.xlu0 %195 }
  0xae   :  { %1090 = vrcp.f32 %v148_v26  ;;  %v160_v59 = vand.u32 2147483648, %v148_v26  ;;  %v158_v62 = vand.u32 2147483647, %v148_v26  ;;  %vm154_vm4 = vweird.f32 %v148_v26 }
  0xaf   :  { %1092 = vrcp.f32 %v168_v46  ;;  %vm174_vm7 = vweird.f32 %v168_v46  ;;  %v178_v55 = vand.u32 2147483647, %v168_v46  ;;  %vm197_vm11 = vcmp.eq.s32.totalorder %v196_v52, 1  ;;  %v2299_v52 = vld [vmem:[#allocation4_spill] sm:$0xff] }
  0xb0   :  { %v161_v19 = vor.u32 1.1754944e-38, %v160_v59  ;;  %vm159_vm6 = vcmp.eq.f32.partialorder %v158_v62, 8.507059e+37 }
  0xb1   :  { %vm179_vm10 = vcmp.eq.f32.partialorder %v178_v55, 8.507059e+37  ;;  %v2301_v55 = vld [vmem:[#allocation9_spill] sm:$0xff] }
  0xb4   :  { %v1091_v45 = vpop.eup %1090 }
  0xb5   :  { %v1093_v53 = vpop.eup %1092  ;;  %v150_v43 = vmul.f32 %v1091_v45, %v148_v26  ;;  %vm155_vm3 = vweird.f32 %v1091_v45 }
  0xb6   :  { %v170_v42 = vmul.f32 %v1093_v53, %v168_v46  ;;  %vm156_vm5 = vmor %vm154_vm4, %vm155_vm3  ;;  %vm175_vm8 = vweird.f32 %v1093_v53 }
  0xb7   :  { %v151_v58 = vsub.f32 1.0, %v150_v43  ;;  %vm176_vm9 = vmor %vm174_vm7, %vm175_vm8 }
  0xb8   :  { %v171_v60 = vsub.f32 1.0, %v170_v42 }
  0xb9   :  { %v152_v61 = vmul.f32 %v1091_v45, %v151_v58  ;;  %v180_v58 = vand.u32 2147483648, %v168_v46  ;;  %v2298_v46 = vld [vmem:[#allocation8_spill] sm:$0xff] }
  0xba   :  { %v172_v63 = vmul.f32 %v1093_v53, %v171_v60 }
  0xbb   :  { %v153_v41 = vadd.f32 %v1091_v45, %v152_v61  ;;  %v181_v26 = vor.u32 1.1754944e-38, %v180_v58 }
  0xbc   :  { %v173_v42 = vadd.f32 %v1093_v53, %v172_v63 }
  0xbd   :  { %v157_v48 = vsel %vm156_vm5, %v1091_v45, %v153_v41 }
  0xbe   :  { %v162_v43 = vsel %vm159_vm6, %v161_v19, %v157_v48  ;;  %v177_v57 = vsel %vm176_vm9, %v1093_v53, %v173_v42  ;;  %v2300_v53 = vld [vmem:[#allocation5_spill] sm:$0xff]  ;;  %v2303_v48 = vld [vmem:[#allocation7_spill] sm:$0xff] }
  0xbf   :  { %v184_v50 = vmul.f32 %v162_v43, %v142_v30  ;;  %v182_v59 = vsel %vm179_vm10, %v181_v26, %v177_v57  ;;  %v2302_v30 = vld [vmem:[#allocation6_spill] sm:$0xff] }
  0xc0   :  { %v187_v45 = vsub.f32 1.0, %v182_v59  ;;  %v189_v41 = vmul.f32 0.0, %v182_v59  ;;  %v2304_v26 = vld [vmem:[#allocation10_spill] sm:$0xff] }
  0xc1   :  { %v185_v60 = vadd.f32 %v184_v50, %v76_v54  ;;  %v1047_v54 = vld [vmem:[%s2261_s1 + $0x20] sm:$0xff] }
  0xc3   :  { %1094 = vtanh.f32 %v185_v60  ;;  %v1046_v60 = vld [vmem:[%s2261_s1 + $0x18] sm:$0xff] }
  0xc9   :  { %v1095_v61 = vpop.eup %1094 }
  0xca   :  { %v188_v62 = vmul.f32 %v1095_v61, %v187_v45 }
  0xcc   :  { %v190_v19 = vadd.f32 %v189_v41, %v188_v62 }
  0xce   :  { %v1696_v63 = vsel %vm197_vm11, %v190_v19, 0.0  ;;  %1215 = vmatmul.msk.f32.vlgmr.msra.gmra.mxu3 %vm197_vm11, %v190_v19  ;;  %1216 = vmatmul.msk.f32.vlgmr.msrb.gmra.mxu0 %vm197_vm11, %v190_v19 }
  0xcf   :  { %1217 = vmatmul.msk.f32.vlgmr.msrb.gmra.mxu1 %vm197_vm11, %v190_v19  ;;  %483 = vmatpush.msra.mxu3 %v1319_v12 }
  0xd0   :  { %563 = vmatpush.msrb.mxu0 %v1248_v0  ;;  %583 = vmatpush.msrb.mxu1 %v1253_v1 }
  0xd1   :  { %484 = vmatpush.msra.mxu3 %v1327_v13 }
  0xd2   :  { %564 = vmatpush.msrb.mxu0 %v1258_v2  ;;  %584 = vmatpush.msrb.mxu1 %v1265_v3 }
  0xd3   :  { %485 = vmatpush.msra.mxu3 %v1346_v16 }
  0xd4   :  { %565 = vmatpush.msrb.mxu0 %v1270_v4  ;;  %585 = vmatpush.msrb.mxu1 %v1275_v5 }
  0xd5   :  { %486 = vmatpush.msra.mxu3 %v1365_v20 }
  0xd6   :  { %566 = vmatpush.msrb.mxu0 %v1283_v6  ;;  %586 = vmatpush.msrb.mxu1 %v1288_v7 }
  0xd7   :  { %487 = vmatpush.msra.mxu3 %v1384_v23 }
  0xd8   :  { %567 = vmatpush.msrb.mxu0 %v1296_v8  ;;  %587 = vmatpush.msrb.mxu1 %v1301_v9 }
  0xd9   :  { %488 = vmatpush.msra.mxu3 %v1408_v27 }
  0xda   :  { %568 = vmatpush.msrb.mxu0 %v1309_v10  ;;  %588 = vmatpush.msrb.mxu1 %v1314_v11 }
  0xdb   :  { %489 = vmatpush.msra.mxu3 %v1429_v31 }
  0xdc   :  { %569 = vmatpush.msrb.mxu0 %v1332_v14  ;;  %589 = vmatpush.msrb.mxu1 %v1337_v15 }
  0xdd   :  { %490 = vmatpush.msra.mxu3 %v1447_v34 }
  0xde   :  { %570 = vmatpush.msrb.mxu0 %v1351_v17  ;;  %590 = vmatpush.msrb.mxu1 %v1356_v18 }
  0xdf   :  { %491 = vmatpush.msra.mxu3 %v1467_v37 }
  0xe0   :  { %571 = vmatpush.msrb.mxu0 %v1370_v21  ;;  %591 = vmatpush.msrb.mxu1 %v1375_v22 }
  0xe1   :  { %492 = vmatpush.msra.mxu3 %v1486_v40 }
  0xe2   :  { %572 = vmatpush.msrb.mxu0 %v1389_v24  ;;  %592 = vmatpush.msrb.mxu1 %v1394_v25 }
  0xe3   :  { %493 = vmatpush.msra.mxu3 %v1506_v44 }
  0xe4   :  { %573 = vmatpush.msrb.mxu0 %v1414_v28  ;;  %593 = vmatpush.msrb.mxu1 %v1419_v29 }
  0xe5   :  { %494 = vmatpush.msra.mxu3 %v1525_v47 }
  0xe6   :  { %574 = vmatpush.msrb.mxu0 %v1434_v32  ;;  %594 = vmatpush.msrb.mxu1 %v1439_v33 }
  0xe7   :  { %495 = vmatpush.msra.mxu3 %v1534_v49 }
  0xe8   :  { %575 = vmatpush.msrb.mxu0 %v1452_v35  ;;  %595 = vmatpush.msrb.mxu1 %v1457_v36 }
  0xe9   :  { %496 = vmatpush.msra.mxu3 %v1542_v51 }
  0xea   :  { %576 = vmatpush.msrb.mxu0 %v1472_v38  ;;  %596 = vmatpush.msrb.mxu1 %v1477_v39 }
  0xeb   :  { %497 = vmatpush.msra.mxu3 %v2298_v46 }
  0xec   :  { %577 = vmatpush.msrb.mxu0 %v2299_v52  ;;  %597 = vmatpush.msrb.mxu1 %v2300_v53 }
  0xed   :  { %498 = vmatpush.msra.mxu3 %v2301_v55 }
  0xee   :  { %578 = vmatpush.msrb.mxu0 %v2302_v30  ;;  %598 = vmatpush.msrb.mxu1 %v2303_v48 }
 0x14b   :  { %v240_v43 = vpop.f32.mrf.mxu0 }
 0x14c   :  { %v241_v42 = vadd.f32 %v240_v43, %v1680_v56 }
 0x14e   :  { %v283_v50 = vadd.f32 %v1047_v54, %v241_v42  ;;  %v2305_v54 = vld [vmem:[#allocation2_spill] sm:$0xff]  ;;  %v2306_v42 = vmov 0  }
 0x14f   :  { %vm432_vm12 = vcmp.gt.s32.totalorder %v2305_v54, 2  ;;  %vm552_vm13 = vcmp.gt.s32.totalorder %v2305_v54, 3  ;;  %vm1032_vm1 = vcmp.gt.s32.totalorder %v2305_v54, 7 }
 0x150   :  { %v1050_v58 = vmul.f32 -1.442695, %v283_v50  ;;  %v433_v50 = vsel %vm432_vm12, 1, %v2306_v42 }
 0x151   :  { %v220_v57 = vpop.f32.mrf.mxu3  ;;  %435 = vperm.xlu1 %1084, %v433_v50   ;;  %v2307_v50 = vld [vmem:[#allocation12_spill] sm:$0xff] }
 0x152   :  { %1096 = vpow2.f32 %v1050_v58  ;;  %v221_v59 = vadd.f32 %v220_v57, %v2304_v26  ;;  %v260_v26 = vpop.f32.mrf.mxu1 }
 0x153   :  { %v261_v52 = vadd.f32 %v260_v26, %v2307_v50 }
 0x154   :  { %v263_v45 = vadd.f32 %v1046_v60, %v221_v59  ;;  %v553_v59 = vsel %vm552_vm13, 1, %v2306_v42 }
 0x156   :  { %v1049_v61 = vmul.f32 -1.442695, %v263_v45 }
 0x158   :  { %v1097_v62 = vpop.eup %1096  ;;  %1098 = vpow2.f32 %v1049_v61 }
 0x159   :  { %v287_v41 = vadd.f32 1.0, %v1097_v62  ;;  %555 = vperm.xlu1 %1084, %v553_v59   ;;  %v1033_v59 = vsel %vm1032_vm1, 1, %v2306_v42 }
 0x15b   :  { %1100 = vrcp.f32 %v287_v41  ;;  %vm293_vm4 = vweird.f32 %v287_v41 }
 0x15e   :  { %v1099_v19 = vpop.eup %1098 }
 0x15f   :  { %v267_v48 = vadd.f32 1.0, %v1099_v19 }
 0x161   :  { %1102 = vrcp.f32 %v267_v48  ;;  %v1101_v43 = vpop.eup %1100  ;;  %v279_v45 = vand.u32 2147483648, %v267_v48  ;;  %v277_v62 = vand.u32 2147483647, %v267_v48  ;;  %vm273_vm15 = vweird.f32 %v267_v48  ;;  %1035 = vperm.xlu1 %1084, %v1033_v59  }
 0x162   :  { %v289_v56 = vmul.f32 %v1101_v43, %v287_v41  ;;  %vm294_vm3 = vweird.f32 %v1101_v43 }
 0x163   :  { %v280_v53 = vor.u32 1.1754944e-38, %v279_v45  ;;  %vm278_vm2 = vcmp.eq.f32.partialorder %v277_v62, 8.507059e+37  ;;  %vm295_vm5 = vmor %vm293_vm4, %vm294_vm3  ;;  %v316_v62 = vpop.permute.xlu0 %315 }
 0x164   :  { %v290_v60 = vsub.f32 1.0, %v289_v56  ;;  %vm317_vm7 = vcmp.eq.s32.totalorder %v316_v62, 1 }
 0x166   :  { %v291_v19 = vmul.f32 %v1101_v43, %v290_v60  ;;  %v299_v60 = vand.u32 2147483648, %v287_v41 }
 0x167   :  { %v1103_v30 = vpop.eup %1102 }
 0x168   :  { %v269_v58 = vmul.f32 %v1103_v30, %v267_v48  ;;  %vm274_vm14 = vweird.f32 %v1103_v30  ;;  %v297_v48 = vand.u32 2147483647, %v287_v41  ;;  %v300_v26 = vor.u32 1.1754944e-38, %v299_v60 }
 0x169   :  { %vm275_vm0 = vmor %vm273_vm15, %vm274_vm14 }
 0x16a   :  { %v270_v57 = vsub.f32 1.0, %v269_v58  ;;  %v1048_v58 = vld [vmem:[%s2261_s1 + $0x28] sm:$0xff]  ;;  %vm298_vm6 = vcmp.eq.f32.partialorder %v297_v48, 8.507059e+37 }
 0x16c   :  { %v271_v61 = vmul.f32 %v1103_v30, %v270_v57  ;;  %v292_v57 = vadd.f32 %v1101_v43, %v291_v19 }
 0x16e   :  { %v272_v55 = vadd.f32 %v1103_v30, %v271_v61  ;;  %v296_v54 = vsel %vm295_vm5, %v1101_v43, %v292_v57 }
 0x170   :  { %v276_v46 = vsel %vm275_vm0, %v1103_v30, %v272_v55 }
 0x171   :  { %v281_v56 = vsel %vm278_vm2, %v280_v53, %v276_v46  ;;  %v301_v46 = vsel %vm298_vm6, %v300_v26, %v296_v54 }
 0x172   :  { %v303_v39 = vmul.f32 %v281_v56, %v261_v52  ;;  %v306_v53 = vsub.f32 1.0, %v301_v46  ;;  %v308_v61 = vmul.f32 %v301_v46, %v1696_v63  ;;  %v1053_v46 = vld [vmem:[%s2261_s1 + $0x40] sm:$0xff] }
 0x174   :  { %v304_v45 = vadd.f32 %v1048_v58, %v303_v39 }
 0x176   :  { %1104 = vtanh.f32 %v304_v45 }
 0x17c   :  { %v1105_v55 = vpop.eup %1104 }
 0x17d   :  { %v307_v30 = vmul.f32 %v1105_v55, %v306_v53 }
 0x17f   :  { %v309_v19 = vadd.f32 %v308_v61, %v307_v30 }
 0x181   :  { %v1766_v52 = vsel %vm317_vm7, %v309_v19, %v1696_v63 }
 0x182   :  { %339 = vmatmul.f32.vlgmr.msrb.gmra.mxu2 %v1766_v52  ;;  %359 = vmatmul.f32.vlgmr.msrb.gmra.mxu3 %v1766_v52 }
 0x183   :  { %379 = vmatmul.f32.vlgmr.msra.gmra.mxu0 %v1766_v52  ;;  %603 = vmatpush.msrb.mxu2 %v1319_v12 }
 0x184   :  { %683 = vmatpush.msrb.mxu3 %v1248_v0  ;;  %703 = vmatpush.msra.mxu0 %v1253_v1  ;;  %v2308_v0 = vld [vmem:[#allocation3_spill] sm:$0xff]  ;;  %v2309_v1 = vld [vmem:[#allocation8_spill] sm:$0xff] }
 0x185   :  { %604 = vmatpush.msrb.mxu2 %v1327_v13  ;;  %v2316_v13 = vld [vmem:[#allocation11_spill] sm:$0xff] }
 0x186   :  { %684 = vmatpush.msrb.mxu3 %v1258_v2  ;;  %704 = vmatpush.msra.mxu0 %v1265_v3  ;;  %v2310_v2 = vld [vmem:[#allocation4_spill] sm:$0xff]  ;;  %v2311_v3 = vld [vmem:[#allocation5_spill] sm:$0xff] }
 0x187   :  { %605 = vmatpush.msrb.mxu2 %v1346_v16 }
 0x188   :  { %685 = vmatpush.msrb.mxu3 %v1270_v4  ;;  %705 = vmatpush.msra.mxu0 %v1275_v5  ;;  %v2312_v4 = vld [vmem:[#allocation9_spill] sm:$0xff]  ;;  %v2313_v5 = vld [vmem:[#allocation6_spill] sm:$0xff] }
 0x189   :  { %606 = vmatpush.msrb.mxu2 %v1365_v20 }
 0x18a   :  { %686 = vmatpush.msrb.mxu3 %v1283_v6  ;;  %706 = vmatpush.msra.mxu0 %v1288_v7  ;;  %v2314_v6 = vld [vmem:[#allocation7_spill] sm:$0xff]  ;;  %v1051_v7 = vld [vmem:[%s2261_s1 + $0x30] sm:$0xff] }
 0x18b   :  { %607 = vmatpush.msrb.mxu2 %v1384_v23 }
 0x18c   :  { %687 = vmatpush.msrb.mxu3 %v1296_v8  ;;  %707 = vmatpush.msra.mxu0 %v1301_v9  ;;  %v1052_v9 = vld [vmem:[%s2261_s1 + $0x38] sm:$0xff] }
 0x18d   :  { %608 = vmatpush.msrb.mxu2 %v1408_v27 }
 0x18e   :  { %688 = vmatpush.msrb.mxu3 %v1309_v10  ;;  %708 = vmatpush.msra.mxu0 %v1314_v11  ;;  %v2315_v11 = vld [vmem:[#allocation10_spill] sm:$0xff] }
 0x18f   :  { %609 = vmatpush.msrb.mxu2 %v1429_v31 }
 0x190   :  { %689 = vmatpush.msrb.mxu3 %v1332_v14  ;;  %709 = vmatpush.msra.mxu0 %v1337_v15 }
 0x191   :  { %610 = vmatpush.msrb.mxu2 %v1447_v34 }
 0x192   :  { %690 = vmatpush.msrb.mxu3 %v1351_v17  ;;  %710 = vmatpush.msra.mxu0 %v1356_v18 }
 0x193   :  { %611 = vmatpush.msrb.mxu2 %v1467_v37 }
 0x194   :  { %691 = vmatpush.msrb.mxu3 %v1370_v21  ;;  %711 = vmatpush.msra.mxu0 %v1375_v22 }
 0x195   :  { %612 = vmatpush.msrb.mxu2 %v1486_v40 }
 0x196   :  { %692 = vmatpush.msrb.mxu3 %v1389_v24  ;;  %712 = vmatpush.msra.mxu0 %v1394_v25 }
 0x197   :  { %613 = vmatpush.msrb.mxu2 %v1506_v44 }
 0x198   :  { %693 = vmatpush.msrb.mxu3 %v1414_v28  ;;  %713 = vmatpush.msra.mxu0 %v1419_v29 }
 0x199   :  { %614 = vmatpush.msrb.mxu2 %v1525_v47 }
 0x19a   :  { %694 = vmatpush.msrb.mxu3 %v1434_v32  ;;  %714 = vmatpush.msra.mxu0 %v1439_v33 }
 0x19b   :  { %615 = vmatpush.msrb.mxu2 %v1534_v49 }
 0x19c   :  { %695 = vmatpush.msrb.mxu3 %v1452_v35  ;;  %715 = vmatpush.msra.mxu0 %v1457_v36 }
 0x19d   :  { %616 = vmatpush.msrb.mxu2 %v1542_v51 }
 0x19e   :  { %696 = vmatpush.msrb.mxu3 %v1472_v38  ;;  %716 = vmatpush.msra.mxu0 %v2308_v0 }
 0x19f   :  { %617 = vmatpush.msrb.mxu2 %v2309_v1 }
 0x1a0   :  { %697 = vmatpush.msrb.mxu3 %v2310_v2  ;;  %717 = vmatpush.msra.mxu0 %v2311_v3 }
 0x1a1   :  { %618 = vmatpush.msrb.mxu2 %v2312_v4 }
 0x1a2   :  { %698 = vmatpush.msrb.mxu3 %v2313_v5  ;;  %718 = vmatpush.msra.mxu0 %v2314_v6 }
 0x200   :  { %v380_v60 = vpop.f32.mrf.mxu0 }
 0x201   :  { %v381_v54 = vadd.f32 %v380_v60, %v2307_v50  ;;  %v1954_v60 = vld [vmem:[%s2258_s2 + $0xc8] sm:$0xff] }
 0x205   :  { %v340_v8 = vpop.f32.mrf.mxu2  ;;  %v360_v10 = vpop.f32.mrf.mxu3 }
 0x206   :  { %v341_v12 = vadd.f32 %v340_v8, %v2315_v11  ;;  %v361_v14 = vadd.f32 %v360_v10, %v2316_v13 }
 0x208   :  { %v383_v15 = vadd.f32 %v1051_v7, %v341_v12  ;;  %v403_v16 = vadd.f32 %v1052_v9, %v361_v14  ;;  %v436_v14 = vpop.permute.xlu1 %435 }
 0x209   :  { %vm437_vm0 = vcmp.eq.s32.totalorder %v436_v14, 1 }
 0x20a   :  { %v1054_v17 = vmul.f32 -1.442695, %v383_v15  ;;  %v1055_v18 = vmul.f32 -1.442695, %v403_v16 }
 0x20c   :  { %1106 = vpow2.f32 %v1054_v17 }
 0x20d   :  { %1108 = vpow2.f32 %v1055_v18 }
 0x212   :  { %v1107_v21 = vpop.eup %1106 }
 0x213   :  { %v1109_v22 = vpop.eup %1108  ;;  %v387_v24 = vadd.f32 1.0, %v1107_v21  ;;  %v1841_v21 = vld [vmem:[%s2258_s2 + $0x178] sm:$0xff] }
 0x214   :  { %v407_v25 = vadd.f32 1.0, %v1109_v22  ;;  %v1847_v22 = vld [vmem:[%s2258_s2 + $0x168] sm:$0xff] }
 0x215   :  { %1110 = vrcp.f32 %v387_v24  ;;  %v399_v43 = vand.u32 2147483648, %v387_v24  ;;  %v397_v57 = vand.u32 2147483647, %v387_v24  ;;  %vm393_vm9 = vweird.f32 %v387_v24 }
 0x216   :  { %1112 = vrcp.f32 %v407_v25  ;;  %v419_v30 = vand.u32 2147483648, %v407_v25  ;;  %vm413_vm13 = vweird.f32 %v407_v25  ;;  %v417_v62 = vand.u32 2147483647, %v407_v25 }
 0x217   :  { %v400_v45 = vor.u32 1.1754944e-38, %v399_v43  ;;  %vm398_vm11 = vcmp.eq.f32.partialorder %v397_v57, 8.507059e+37  ;;  %v1902_v43 = vld [vmem:[%s2258_s2 + $0x128] sm:$0xff]  ;;  %v1941_v57 = vld [vmem:[%s2258_s2 + $0xe0] sm:$0xff] }
 0x218   :  { %v420_v8 = vor.u32 1.1754944e-38, %v419_v30  ;;  %vm418_vm15 = vcmp.eq.f32.partialorder %v417_v62, 8.507059e+37 }
 0x21b   :  { %v1111_v28 = vpop.eup %1110 }
 0x21c   :  { %v1113_v29 = vpop.eup %1112  ;;  %v389_v39 = vmul.f32 %v1111_v28, %v387_v24  ;;  %vm394_vm8 = vweird.f32 %v1111_v28  ;;  %v1859_v24 = vld [vmem:[%s2258_s2 + $0x160] sm:$0xff] }
 0x21d   :  { %v409_v63 = vmul.f32 %v1113_v29, %v407_v25  ;;  %vm395_vm10 = vmor %vm393_vm9, %vm394_vm8  ;;  %vm414_vm12 = vweird.f32 %v1113_v29  ;;  %v1865_v25 = vld [vmem:[%s2258_s2 + $0x150] sm:$0xff] }
 0x21e   :  { %v390_v41 = vsub.f32 1.0, %v389_v39  ;;  %vm415_vm14 = vmor %vm413_vm13, %vm414_vm12  ;;  %v1883_v39 = vld [vmem:[%s2258_s2 + $0x138] sm:$0xff] }
 0x21f   :  { %v410_v56 = vsub.f32 1.0, %v409_v63  ;;  %v1889_v63 = vld [vmem:[%s2258_s2 + $0x140] sm:$0xff] }
 0x220   :  { %v391_v58 = vmul.f32 %v1111_v28, %v390_v41  ;;  %v1896_v41 = vld [vmem:[%s2258_s2 + $0x120] sm:$0xff] }
 0x221   :  { %v411_v59 = vmul.f32 %v1113_v29, %v410_v56  ;;  %v1915_v56 = vld [vmem:[%s2258_s2 + $0x110] sm:$0xff] }
 0x222   :  { %v392_v48 = vadd.f32 %v1111_v28, %v391_v58  ;;  %v1928_v58 = vld [vmem:[%s2258_s2 + $0xf8] sm:$0xff] }
 0x223   :  { %v412_v55 = vadd.f32 %v1113_v29, %v411_v59  ;;  %v1967_v59 = vld [vmem:[%s2258_s2 + $0xb0] sm:$0xff] }
 0x224   :  { %v396_v26 = vsel %vm395_vm10, %v1111_v28, %v392_v48  ;;  %v1871_v28 = vld [vmem:[%s2258_s2 + $0x158] sm:$0xff] }
 0x225   :  { %v401_v53 = vsel %vm398_vm11, %v400_v45, %v396_v26  ;;  %v416_v7 = vsel %vm415_vm14, %v1113_v29, %v412_v55  ;;  %v1877_v29 = vld [vmem:[%s2258_s2 + $0x148] sm:$0xff]  ;;  %v1980_v48 = vld [vmem:[%s2258_s2 + $0x98] sm:$0xff]  ;;  %v1993_v45 = vld [vmem:[%s2258_s2 + $0x80] sm:$0xff] }
 0x226   :  { %v423_v61 = vmul.f32 %v401_v53, %v381_v54  ;;  %v421_v9 = vsel %vm418_vm15, %v420_v8, %v416_v7 }
 0x227   :  { %v426_v10 = vsub.f32 1.0, %v421_v9  ;;  %v428_v16 = vmul.f32 %v421_v9, %v1766_v52 }
 0x228   :  { %v424_v19 = vadd.f32 %v1053_v46, %v423_v61 }
 0x22a   :  { %1114 = vtanh.f32 %v424_v19 }
 0x230   :  { %v1115_v12 = vpop.eup %1114 }
 0x231   :  { %v427_v15 = vmul.f32 %v1115_v12, %v426_v10 }
 0x233   :  { %v429_v17 = vadd.f32 %v428_v16, %v427_v15 }
 0x235   :  { %v1833_v18 = vsel %vm437_vm0, %v429_v17, %v1766_v52  ;;  %v1853_v52 = vld [vmem:[%s2258_s2 + $0x170] sm:$0xff] }
 0x236   :  { %459 = vmatmul.f32.vlgmr.msra.gmra.mxu1 %v1833_v18  ;;  %479 = vmatmul.f32.vlgmr.msra.gmra.mxu2 %v1833_v18 }
 0x237   :  { %499 = vmatmul.f32.vlgmr.msra.gmra.mxu3 %v1833_v18  ;;  %723 = vmatpush.msra.mxu1 %v1841_v21 }
 0x238   :  { %803 = vmatpush.msra.mxu2 %v1847_v22  ;;  %823 = vmatpush.msra.mxu3 %v1853_v52 }
 0x239   :  { %724 = vmatpush.msra.mxu1 %v1859_v24 }
 0x23a   :  { %804 = vmatpush.msra.mxu2 %v1865_v25  ;;  %824 = vmatpush.msra.mxu3 %v1871_v28 }
 0x23b   :  { %725 = vmatpush.msra.mxu1 %v1877_v29 }
 0x23c   :  { %805 = vmatpush.msra.mxu2 %v1883_v39  ;;  %825 = vmatpush.msra.mxu3 %v1889_v63 }
 0x23d   :  { %726 = vmatpush.msra.mxu1 %v1365_v20  ;;  %v1909_v20 = vld [vmem:[%s2258_s2 + $0x108] sm:$0xff] }
 0x23e   :  { %806 = vmatpush.msra.mxu2 %v1896_v41  ;;  %826 = vmatpush.msra.mxu3 %v1902_v43 }
 0x23f   :  { %727 = vmatpush.msra.mxu1 %v1384_v23  ;;  %v1922_v23 = vld [vmem:[%s2258_s2 + $0xf0] sm:$0xff] }
 0x240   :  { %807 = vmatpush.msra.mxu2 %v1909_v20  ;;  %827 = vmatpush.msra.mxu3 %v1915_v56 }
 0x241   :  { %728 = vmatpush.msra.mxu1 %v1408_v27  ;;  %v1935_v27 = vld [vmem:[%s2258_s2 + $0xd8] sm:$0xff] }
 0x242   :  { %808 = vmatpush.msra.mxu2 %v1922_v23  ;;  %828 = vmatpush.msra.mxu3 %v1928_v58 }
 0x243   :  { %729 = vmatpush.msra.mxu1 %v1429_v31  ;;  %v1948_v31 = vld [vmem:[%s2258_s2 + $0xc0] sm:$0xff] }
 0x244   :  { %809 = vmatpush.msra.mxu2 %v1935_v27  ;;  %829 = vmatpush.msra.mxu3 %v1941_v57 }
 0x245   :  { %730 = vmatpush.msra.mxu1 %v1447_v34  ;;  %v1961_v34 = vld [vmem:[%s2258_s2 + $0xa8] sm:$0xff] }
 0x246   :  { %810 = vmatpush.msra.mxu2 %v1948_v31  ;;  %830 = vmatpush.msra.mxu3 %v1954_v60 }
 0x247   :  { %731 = vmatpush.msra.mxu1 %v1467_v37  ;;  %v1974_v37 = vld [vmem:[%s2258_s2 + $0x90] sm:$0xff] }
 0x248   :  { %811 = vmatpush.msra.mxu2 %v1961_v34  ;;  %831 = vmatpush.msra.mxu3 %v1967_v59 }
 0x249   :  { %732 = vmatpush.msra.mxu1 %v1486_v40  ;;  %v1987_v40 = vld [vmem:[%s2258_s2 + $0x78] sm:$0xff] }
 0x24a   :  { %812 = vmatpush.msra.mxu2 %v1974_v37  ;;  %832 = vmatpush.msra.mxu3 %v1980_v48 }
 0x24b   :  { %733 = vmatpush.msra.mxu1 %v1506_v44  ;;  %v1057_v44 = vld [vmem:[%s2261_s1 + $0x50] sm:$0xff] }
 0x24c   :  { %813 = vmatpush.msra.mxu2 %v1987_v40  ;;  %833 = vmatpush.msra.mxu3 %v1993_v45 }
 0x24d   :  { %734 = vmatpush.msra.mxu1 %v1525_v47 }
 0x24e   :  { %814 = vmatpush.msra.mxu2 %v1434_v32  ;;  %834 = vmatpush.msra.mxu3 %v1439_v33  ;;  %v1056_v32 = vld [vmem:[%s2261_s1 + $0x48] sm:$0xff] }
 0x24f   :  { %735 = vmatpush.msra.mxu1 %v1534_v49 }
 0x250   :  { %815 = vmatpush.msra.mxu2 %v1452_v35  ;;  %835 = vmatpush.msra.mxu3 %v1457_v36 }
 0x251   :  { %736 = vmatpush.msra.mxu1 %v1542_v51 }
 0x252   :  { %816 = vmatpush.msra.mxu2 %v1472_v38  ;;  %836 = vmatpush.msra.mxu3 %v2308_v0 }
 0x253   :  { %737 = vmatpush.msra.mxu1 %v2309_v1 }
 0x254   :  { %817 = vmatpush.msra.mxu2 %v2310_v2  ;;  %837 = vmatpush.msra.mxu3 %v2311_v3  ;;  %v1191_v3 = vld [vmem:[%s2259_s0] sm:$0xff] }
 0x255   :  { %738 = vmatpush.msra.mxu1 %v2312_v4  ;;  %vm672_vm1 = vcmp.gt.s32.totalorder %v1191_v3, 4  ;;  %vm792_vm2 = vcmp.gt.s32.totalorder %v1191_v3, 5 }
 0x256   :  { %818 = vmatpush.msra.mxu2 %v2313_v5  ;;  %838 = vmatpush.msra.mxu3 %v2314_v6  ;;  %v673_v5 = vsel %vm672_vm1, 1, %v2306_v42  ;;  %v793_v53 = vsel %vm792_vm2, 1, %v2306_v42  ;;  %v1058_v42 = vld [vmem:[%s2261_s1 + $0x58] sm:$0xff] }
 0x257   :  { %675 = vperm.xlu2 %1085, %v673_v5   ;;  %v1061_v5 = vld [vmem:[%s2261_s1 + $0x60] sm:$0xff] }
 0x25f   :  { %795 = vperm.xlu2 %1085, %v793_v53  }
 0x2b3   :  { %v460_v33 = vpop.f32.mrf.mxu1 }
 0x2b4   :  { %v461_v35 = vadd.f32 %v460_v33, %v2315_v11 }
 0x2b6   :  { %v503_v36 = vadd.f32 %v1056_v32, %v461_v35 }
 0x2b8   :  { %v1059_v38 = vmul.f32 -1.442695, %v503_v36 }
 0x2b9   :  { %v480_v47 = vpop.f32.mrf.mxu2 }
 0x2ba   :  { %1116 = vpow2.f32 %v1059_v38  ;;  %v481_v49 = vadd.f32 %v480_v47, %v2316_v13  ;;  %v500_v19 = vpop.f32.mrf.mxu3 }
 0x2bb   :  { %v501_v12 = vadd.f32 %v500_v19, %v2307_v50 }
 0x2bc   :  { %v523_v51 = vadd.f32 %v1057_v44, %v481_v49 }
 0x2be   :  { %v1060_v0 = vmul.f32 -1.442695, %v523_v51 }
 0x2c0   :  { %v1117_v1 = vpop.eup %1116  ;;  %1118 = vpow2.f32 %v1060_v0 }
 0x2c1   :  { %v507_v2 = vadd.f32 1.0, %v1117_v1 }
 0x2c3   :  { %1120 = vrcp.f32 %v507_v2  ;;  %v519_v55 = vand.u32 2147483648, %v507_v2  ;;  %v517_v61 = vand.u32 2147483647, %v507_v2  ;;  %vm513_vm4 = vweird.f32 %v507_v2 }
 0x2c5   :  { %v520_v9 = vor.u32 1.1754944e-38, %v519_v55  ;;  %vm518_vm6 = vcmp.eq.f32.partialorder %v517_v61, 8.507059e+37 }
 0x2c6   :  { %v1119_v4 = vpop.eup %1118 }
 0x2c7   :  { %v527_v6 = vadd.f32 1.0, %v1119_v4 }
 0x2c9   :  { %v1121_v54 = vpop.eup %1120  ;;  %1122 = vrcp.f32 %v527_v6  ;;  %v539_v17 = vand.u32 2147483648, %v527_v6  ;;  %v537_v33 = vand.u32 2147483647, %v527_v6  ;;  %vm533_vm8 = vweird.f32 %v527_v6 }
 0x2ca   :  { %v509_v26 = vmul.f32 %v1121_v54, %v507_v2  ;;  %vm514_vm3 = vweird.f32 %v1121_v54  ;;  %v556_v2 = vpop.permute.xlu1 %555 }
 0x2cb   :  { %vm515_vm5 = vmor %vm513_vm4, %vm514_vm3  ;;  %v540_v38 = vor.u32 1.1754944e-38, %v539_v17  ;;  %vm538_vm10 = vcmp.eq.f32.partialorder %v537_v33, 8.507059e+37  ;;  %vm557_vm11 = vcmp.eq.s32.totalorder %v556_v2, 1 }
 0x2cc   :  { %v510_v46 = vsub.f32 1.0, %v509_v26 }
 0x2ce   :  { %v511_v30 = vmul.f32 %v1121_v54, %v510_v46 }
 0x2cf   :  { %v1123_v62 = vpop.eup %1122 }
 0x2d0   :  { %v529_v7 = vmul.f32 %v1123_v62, %v527_v6  ;;  %v512_v8 = vadd.f32 %v1121_v54, %v511_v30  ;;  %vm534_vm7 = vweird.f32 %v1123_v62 }
 0x2d1   :  { %vm535_vm9 = vmor %vm533_vm8, %vm534_vm7 }
 0x2d2   :  { %v530_v10 = vsub.f32 1.0, %v529_v7  ;;  %v516_v14 = vsel %vm515_vm5, %v1121_v54, %v512_v8  ;;  %v1062_v54 = vld [vmem:[%s2261_s1 + $0x68] sm:$0xff] }
 0x2d3   :  { %v521_v15 = vsel %vm518_vm6, %v520_v9, %v516_v14 }
 0x2d4   :  { %v531_v16 = vmul.f32 %v1123_v62, %v530_v10  ;;  %v543_v32 = vmul.f32 %v521_v15, %v501_v12 }
 0x2d6   :  { %v532_v35 = vadd.f32 %v1123_v62, %v531_v16  ;;  %v544_v36 = vadd.f32 %v1058_v42, %v543_v32 }
 0x2d8   :  { %v536_v44 = vsel %vm535_vm9, %v1123_v62, %v532_v35  ;;  %1124 = vtanh.f32 %v544_v36 }
 0x2d9   :  { %v541_v47 = vsel %vm538_vm10, %v540_v38, %v536_v44 }
 0x2da   :  { %v546_v49 = vsub.f32 1.0, %v541_v47  ;;  %v548_v1 = vmul.f32 %v541_v47, %v1833_v18 }
 0x2de   :  { %v1125_v51 = vpop.eup %1124 }
 0x2df   :  { %v547_v0 = vmul.f32 %v1125_v51, %v546_v49  ;;  %v1063_v51 = vld [vmem:[%s2261_s1 + $0x70] sm:$0xff] }
 0x2e1   :  { %v549_v3 = vadd.f32 %v548_v1, %v547_v0 }
 0x2e3   :  { %v2030_v4 = vsel %vm557_vm11, %v549_v3, %v1833_v18  ;;  %v2047_v18 = vld [vmem:[%s2258_s2 + $0x130] sm:$0xff] }
 0x2e4   :  { %579 = vmatmul.f32.vlgmr.msrb.gmra.mxu0 %v2030_v4  ;;  %599 = vmatmul.f32.vlgmr.msrb.gmra.mxu1 %v2030_v4 }
 0x2e5   :  { %619 = vmatmul.f32.vlgmr.msrb.gmra.mxu2 %v2030_v4  ;;  %843 = vmatpush.msrb.mxu0 %v1841_v21 }
 0x2e6   :  { %923 = vmatpush.msrb.mxu1 %v1847_v22  ;;  %943 = vmatpush.msrb.mxu2 %v1853_v52  ;;  %v2055_v22 = vld [vmem:[%s2258_s2 + $0x118] sm:$0xff]  ;;  %v2063_v52 = vld [vmem:[%s2258_s2 + $0x100] sm:$0xff] }
 0x2e7   :  { %844 = vmatpush.msrb.mxu0 %v1859_v24 }
 0x2e8   :  { %924 = vmatpush.msrb.mxu1 %v1865_v25  ;;  %944 = vmatpush.msrb.mxu2 %v1871_v28  ;;  %v2071_v25 = vld [vmem:[%s2258_s2 + $0xe8] sm:$0xff]  ;;  %v2079_v28 = vld [vmem:[%s2258_s2 + $0xd0] sm:$0xff] }
 0x2e9   :  { %845 = vmatpush.msrb.mxu0 %v1877_v29 }
 0x2ea   :  { %925 = vmatpush.msrb.mxu1 %v1883_v39  ;;  %945 = vmatpush.msrb.mxu2 %v1889_v63  ;;  %v2087_v39 = vld [vmem:[%s2258_s2 + $0xb8] sm:$0xff]  ;;  %v2095_v63 = vld [vmem:[%s2258_s2 + $0xa0] sm:$0xff] }
 0x2eb   :  { %846 = vmatpush.msrb.mxu0 %v2047_v18 }
 0x2ec   :  { %926 = vmatpush.msrb.mxu1 %v1896_v41  ;;  %946 = vmatpush.msrb.mxu2 %v1902_v43  ;;  %v2103_v41 = vld [vmem:[%s2258_s2 + $0x88] sm:$0xff]  ;;  %v2111_v43 = vld [vmem:[%s2258_s2 + $0x70] sm:$0xff] }
 0x2ed   :  { %847 = vmatpush.msrb.mxu0 %v2055_v22 }
 0x2ee   :  { %927 = vmatpush.msrb.mxu1 %v1909_v20  ;;  %947 = vmatpush.msrb.mxu2 %v1915_v56  ;;  %v1201_v20 = vld [vmem:[%s2258_s2 + $0x60] sm:$0xff]  ;;  %v1202_v56 = vld [vmem:[%s2258_s2 + $0x68] sm:$0xff] }
 0x2ef   :  { %848 = vmatpush.msrb.mxu0 %v2063_v52 }
 0x2f0   :  { %928 = vmatpush.msrb.mxu1 %v1922_v23  ;;  %948 = vmatpush.msrb.mxu2 %v1928_v58  ;;  %v2123_v23 = vld [vmem:[%s2258_s2 + $0x58] sm:$0xff]  ;;  %v1204_v58 = vld [vmem:[%s2258_s2 + $0x48] sm:$0xff] }
 0x2f1   :  { %849 = vmatpush.msrb.mxu0 %v2071_v25 }
 0x2f2   :  { %929 = vmatpush.msrb.mxu1 %v1935_v27  ;;  %949 = vmatpush.msrb.mxu2 %v1941_v57  ;;  %v1205_v27 = vld [vmem:[%s2258_s2 + $0x50] sm:$0xff]  ;;  %v2135_v57 = vld [vmem:[%s2258_s2 + $0x40] sm:$0xff] }
 0x2f3   :  { %850 = vmatpush.msrb.mxu0 %v2079_v28 }
 0x2f4   :  { %930 = vmatpush.msrb.mxu1 %v1948_v31  ;;  %950 = vmatpush.msrb.mxu2 %v1954_v60  ;;  %v1207_v31 = vld [vmem:[%s2258_s2 + $0x30] sm:$0xff]  ;;  %v1208_v60 = vld [vmem:[%s2258_s2 + $0x38] sm:$0xff] }
 0x2f5   :  { %851 = vmatpush.msrb.mxu0 %v2087_v39 }
 0x2f6   :  { %931 = vmatpush.msrb.mxu1 %v1961_v34  ;;  %951 = vmatpush.msrb.mxu2 %v1967_v59  ;;  %v2147_v34 = vld [vmem:[%s2258_s2 + $0x28] sm:$0xff]  ;;  %v1210_v59 = vld [vmem:[%s2258_s2 + $0x18] sm:$0xff] }
 0x2f7   :  { %852 = vmatpush.msrb.mxu0 %v2095_v63 }
 0x2f8   :  { %932 = vmatpush.msrb.mxu1 %v1974_v37  ;;  %952 = vmatpush.msrb.mxu2 %v1980_v48  ;;  %v1211_v37 = vld [vmem:[%s2258_s2 + $0x20] sm:$0xff]  ;;  %v2159_v48 = vld [vmem:[%s2258_s2 + $0x10] sm:$0xff] }
 0x2f9   :  { %853 = vmatpush.msrb.mxu0 %v2103_v41 }
 0x2fa   :  { %933 = vmatpush.msrb.mxu1 %v1987_v40  ;;  %953 = vmatpush.msrb.mxu2 %v1993_v45  ;;  %v1213_v40 = vld [vmem:[%s2258_s2] sm:$0xff]  ;;  %v1214_v45 = vld [vmem:[%s2258_s2 + $0x8] sm:$0xff] }
 0x2fb   :  { %854 = vmatpush.msrb.mxu0 %v2111_v43 }
 0x2fc   :  { %934 = vmatpush.msrb.mxu1 %v1201_v20  ;;  %954 = vmatpush.msrb.mxu2 %v1202_v56 }
 0x2fd   :  { %855 = vmatpush.msrb.mxu0 %v2123_v23 }
 0x2fe   :  { %935 = vmatpush.msrb.mxu1 %v1204_v58  ;;  %955 = vmatpush.msrb.mxu2 %v1205_v27 }
 0x2ff   :  { %856 = vmatpush.msrb.mxu0 %v2135_v57 }
 0x300   :  { %936 = vmatpush.msrb.mxu1 %v1207_v31  ;;  %956 = vmatpush.msrb.mxu2 %v1208_v60 }
 0x301   :  { %857 = vmatpush.msrb.mxu0 %v2147_v34 }
 0x302   :  { %937 = vmatpush.msrb.mxu1 %v1210_v59  ;;  %957 = vmatpush.msrb.mxu2 %v1211_v37  ;;  %v676_v37 = vpop.permute.xlu2 %675 }
 0x303   :  { %858 = vmatpush.msrb.mxu0 %v2159_v48  ;;  %vm677_vm4 = vcmp.eq.s32.totalorder %v676_v37, 1 }
 0x304   :  { %938 = vmatpush.msrb.mxu1 %v1213_v40  ;;  %958 = vmatpush.msrb.mxu2 %v1214_v45 }
 0x361   :  { %v580_v6 = vpop.f32.mrf.mxu0  ;;  %v600_v26 = vpop.f32.mrf.mxu1 }
 0x362   :  { %v581_v46 = vadd.f32 %v580_v6, %v2315_v11  ;;  %v601_v53 = vadd.f32 %v600_v26, %v2316_v13 }
 0x364   :  { %v623_v55 = vadd.f32 %v1061_v5, %v581_v46  ;;  %v643_v30 = vadd.f32 %v1062_v54, %v601_v53 }
 0x366   :  { %v1064_v61 = vmul.f32 -1.442695, %v623_v55  ;;  %v1065_v62 = vmul.f32 -1.442695, %v643_v30 }
 0x368   :  { %1126 = vpow2.f32 %v1064_v61  ;;  %v620_v35 = vpop.f32.mrf.mxu2 }
 0x369   :  { %1128 = vpow2.f32 %v1065_v62  ;;  %v621_v47 = vadd.f32 %v620_v35, %v2307_v50 }
 0x36e   :  { %v1127_v19 = vpop.eup %1126 }
 0x36f   :  { %v1129_v7 = vpop.eup %1128  ;;  %v627_v8 = vadd.f32 1.0, %v1127_v19 }
 0x370   :  { %v647_v9 = vadd.f32 1.0, %v1129_v7 }
 0x371   :  { %1130 = vrcp.f32 %v627_v8  ;;  %v639_v17 = vand.u32 2147483648, %v627_v8  ;;  %v637_v33 = vand.u32 2147483647, %v627_v8  ;;  %vm633_vm13 = vweird.f32 %v627_v8 }
 0x372   :  { %1132 = vrcp.f32 %v647_v9  ;;  %v659_v3 = vand.u32 2147483648, %v647_v9  ;;  %vm653_vm1 = vweird.f32 %v647_v9  ;;  %v657_v20 = vand.u32 2147483647, %v647_v9 }
 0x373   :  { %v640_v44 = vor.u32 1.1754944e-38, %v639_v17  ;;  %vm638_vm15 = vcmp.eq.f32.partialorder %v637_v33, 8.507059e+37 }
 0x374   :  { %v660_v27 = vor.u32 1.1754944e-38, %v659_v3  ;;  %vm658_vm3 = vcmp.eq.f32.partialorder %v657_v20, 8.507059e+37  ;;  %v1072_v3 = vld [vmem:[%s2261_s1 + $0x98] sm:$0xff] }
 0x377   :  { %v1131_v10 = vpop.eup %1130 }
 0x378   :  { %v1133_v12 = vpop.eup %1132  ;;  %v629_v14 = vmul.f32 %v1131_v10, %v627_v8  ;;  %vm634_vm12 = vweird.f32 %v1131_v10 }
 0x379   :  { %v649_v42 = vmul.f32 %v1133_v12, %v647_v9  ;;  %vm635_vm14 = vmor %vm633_vm13, %vm634_vm12  ;;  %vm654_vm0 = vweird.f32 %v1133_v12 }
 0x37a   :  { %v630_v15 = vsub.f32 1.0, %v629_v14  ;;  %vm655_vm2 = vmor %vm653_vm1, %vm654_vm0 }
 0x37b   :  { %v650_v16 = vsub.f32 1.0, %v649_v42 }
 0x37c   :  { %v631_v32 = vmul.f32 %v1131_v10, %v630_v15 }
 0x37d   :  { %v651_v36 = vmul.f32 %v1133_v12, %v650_v16 }
 0x37e   :  { %v632_v38 = vadd.f32 %v1131_v10, %v631_v32 }
 0x37f   :  { %v652_v1 = vadd.f32 %v1133_v12, %v651_v36 }
 0x380   :  { %v636_v49 = vsel %vm635_vm14, %v1131_v10, %v632_v38 }
 0x381   :  { %v641_v0 = vsel %vm638_vm15, %v640_v44, %v636_v49  ;;  %v656_v58 = vsel %vm655_vm2, %v1133_v12, %v652_v1  ;;  %v1068_v12 = vld [vmem:[%s2261_s1 + $0x88] sm:$0xff]  ;;  %v796_v44 = vpop.permute.xlu2 %795  ;;  %v1071_v1 = vld [vmem:[%s2261_s1 + $0x90] sm:$0xff] }
 0x382   :  { %v663_v2 = vmul.f32 %v641_v0, %v621_v47  ;;  %v661_v31 = vsel %vm658_vm3, %v660_v27, %v656_v58  ;;  %vm797_vm13 = vcmp.eq.s32.totalorder %v796_v44, 1 }
 0x383   :  { %v666_v60 = vsub.f32 1.0, %v661_v31  ;;  %v668_v45 = vmul.f32 %v661_v31, %v2030_v4 }
 0x384   :  { %v664_v56 = vadd.f32 %v1063_v51, %v663_v2 }
 0x386   :  { %1134 = vtanh.f32 %v664_v56 }
 0x38c   :  { %v1135_v59 = vpop.eup %1134 }
 0x38d   :  { %v667_v40 = vmul.f32 %v1135_v59, %v666_v60 }
 0x38f   :  { %v669_v5 = vadd.f32 %v668_v45, %v667_v40 }
 0x391   :  { %v2182_v6 = vsel %vm677_vm4, %v669_v5, %v2030_v4 }
 0x392   :  { %699 = vmatmul.f32.vlgmr.msrb.gmra.mxu3 %v2182_v6  ;;  %719 = vmatmul.f32.vlgmr.msra.gmra.mxu0 %v2182_v6 }
 0x393   :  { %739 = vmatmul.f32.vlgmr.msra.gmra.mxu1 %v2182_v6  ;;  %963 = vmatpush.msrb.mxu3 %v1841_v21  ;;  %v1067_v21 = vld [vmem:[%s2261_s1 + $0x80] sm:$0xff] }
 0x395   :  { %964 = vmatpush.msrb.mxu3 %v1859_v24 }
 0x397   :  { %965 = vmatpush.msrb.mxu3 %v1877_v29 }
 0x399   :  { %966 = vmatpush.msrb.mxu3 %v2047_v18 }
 0x39b   :  { %967 = vmatpush.msrb.mxu3 %v2055_v22  ;;  %v1066_v22 = vld [vmem:[%s2261_s1 + $0x78] sm:$0xff] }
 0x39d   :  { %968 = vmatpush.msrb.mxu3 %v2063_v52 }
 0x39f   :  { %969 = vmatpush.msrb.mxu3 %v2071_v25 }
 0x3a1   :  { %970 = vmatpush.msrb.mxu3 %v2079_v28 }
 0x3a3   :  { %971 = vmatpush.msrb.mxu3 %v2087_v39 }
 0x3a5   :  { %972 = vmatpush.msrb.mxu3 %v2095_v63 }
 0x3a7   :  { %973 = vmatpush.msrb.mxu3 %v2103_v41 }
 0x3a9   :  { %974 = vmatpush.msrb.mxu3 %v2111_v43 }
 0x3ab   :  { %975 = vmatpush.msrb.mxu3 %v2123_v23 }
 0x3ad   :  { %976 = vmatpush.msrb.mxu3 %v2135_v57 }
 0x3af   :  { %977 = vmatpush.msrb.mxu3 %v2147_v34 }
 0x3b1   :  { %978 = vmatpush.msrb.mxu3 %v2159_v48 }
 0x40f   :  { %v720_v24 = vpop.f32.mrf.mxu0 }
 0x410   :  { %v721_v29 = vadd.f32 %v720_v24, %v2316_v13  ;;  %v740_v62 = vpop.f32.mrf.mxu1 }
 0x411   :  { %v741_v8 = vadd.f32 %v740_v62, %v2307_v50 }
 0x412   :  { %v763_v4 = vadd.f32 %v1067_v21, %v721_v29 }
 0x414   :  { %v1070_v18 = vmul.f32 -1.442695, %v763_v4 }
 0x415   :  { %v700_v52 = vpop.f32.mrf.mxu3 }
 0x416   :  { %1136 = vpow2.f32 %v1070_v18  ;;  %v701_v25 = vadd.f32 %v700_v52, %v2315_v11 }
 0x418   :  { %v743_v28 = vadd.f32 %v1066_v22, %v701_v25 }
 0x41a   :  { %v1069_v39 = vmul.f32 -1.442695, %v743_v28 }
 0x41c   :  { %v1137_v63 = vpop.eup %1136  ;;  %1138 = vpow2.f32 %v1069_v39 }
 0x41d   :  { %v767_v41 = vadd.f32 1.0, %v1137_v63 }
 0x41f   :  { %1140 = vrcp.f32 %v767_v41  ;;  %v779_v42 = vand.u32 2147483648, %v767_v41  ;;  %vm773_vm10 = vweird.f32 %v767_v41  ;;  %v777_v16 = vand.u32 2147483647, %v767_v41 }
 0x421   :  { %v780_v33 = vor.u32 1.1754944e-38, %v779_v42  ;;  %vm778_vm12 = vcmp.eq.f32.partialorder %v777_v16, 8.507059e+37 }
 0x422   :  { %v1139_v43 = vpop.eup %1138 }
 0x423   :  { %v747_v23 = vadd.f32 1.0, %v1139_v43 }
 0x425   :  { %1142 = vrcp.f32 %v747_v23  ;;  %v1141_v57 = vpop.eup %1140  ;;  %v759_v53 = vand.u32 2147483648, %v747_v23  ;;  %v757_v30 = vand.u32 2147483647, %v747_v23  ;;  %vm753_vm6 = vweird.f32 %v747_v23 }
 0x426   :  { %v769_v34 = vmul.f32 %v1141_v57, %v767_v41  ;;  %vm774_vm9 = vweird.f32 %v1141_v57 }
 0x427   :  { %v760_v7 = vor.u32 1.1754944e-38, %v759_v53  ;;  %vm758_vm8 = vcmp.eq.f32.partialorder %v757_v30, 8.507059e+37  ;;  %vm775_vm11 = vmor %vm773_vm10, %vm774_vm9 }
 0x428   :  { %v770_v26 = vsub.f32 1.0, %v769_v34  ;;  %v1073_v34 = vld [vmem:[%s2261_s1 + $0xa0] sm:$0xff] }
 0x42a   :  { %v771_v61 = vmul.f32 %v1141_v57, %v770_v26 }
 0x42b   :  { %v1143_v48 = vpop.eup %1142 }
 0x42c   :  { %v749_v54 = vmul.f32 %v1143_v48, %v747_v23  ;;  %vm754_vm5 = vweird.f32 %v1143_v48  ;;  %v772_v14 = vadd.f32 %v1141_v57, %v771_v61 }
 0x42d   :  { %vm755_vm7 = vmor %vm753_vm6, %vm754_vm5 }
 0x42e   :  { %v750_v46 = vsub.f32 1.0, %v749_v54  ;;  %v776_v32 = vsel %vm775_vm11, %v1141_v57, %v772_v14  ;;  %v1076_v14 = vld [vmem:[%s2261_s1 + $0xa8] sm:$0xff] }
 0x42f   :  { %v781_v35 = vsel %vm778_vm12, %v780_v33, %v776_v32  ;;  %v1077_v32 = vld [vmem:[%s2261_s1 + $0xb0] sm:$0xff] }
 0x430   :  { %v751_v55 = vmul.f32 %v1143_v48, %v750_v46  ;;  %v786_v36 = vsub.f32 1.0, %v781_v35  ;;  %v788_v49 = vmul.f32 %v781_v35, %v2182_v6 }
 0x432   :  { %v752_v19 = vadd.f32 %v1143_v48, %v751_v55 }
 0x434   :  { %v756_v9 = vsel %vm755_vm7, %v1143_v48, %v752_v19 }
 0x435   :  { %v761_v10 = vsel %vm758_vm8, %v760_v7, %v756_v9  ;;  %v916_v7 = vpop.permute.xlu0 %915 }
 0x436   :  { %v783_v15 = vmul.f32 %v761_v10, %v741_v8  ;;  %vm917_vm6 = vcmp.eq.s32.totalorder %v916_v7, 1 }
 0x438   :  { %v784_v17 = vadd.f32 %v1068_v12, %v783_v15 }
 0x43a   :  { %1144 = vtanh.f32 %v784_v17 }
 0x440   :  { %v1145_v38 = vpop.eup %1144 }
 0x441   :  { %v787_v47 = vmul.f32 %v1145_v38, %v786_v36 }
 0x443   :  { %v789_v51 = vadd.f32 %v788_v49, %v787_v47 }
 0x445   :  { %v2217_v0 = vsel %vm797_vm13, %v789_v51, %v2182_v6 }
 0x446   :  { %819 = vmatmul.f32.vlgmr.msra.gmra.mxu2 %v2217_v0  ;;  %839 = vmatmul.f32.vlgmr.msra.gmra.mxu3 %v2217_v0 }
 0x447   :  { %859 = vmatmul.f32.vlgmr.msrb.gmra.mxu0 %v2217_v0 }
 0x4c4   :  { %v860_v28 = vpop.f32.mrf.mxu0 }
 0x4c5   :  { %v861_v43 = vadd.f32 %v860_v28, %v2307_v50  ;;  %v1036_v28 = vpop.permute.xlu1 %1035 }
 0x4c9   :  { %v820_v2 = vpop.f32.mrf.mxu2  ;;  %v840_v20 = vpop.f32.mrf.mxu3 }
 0x4ca   :  { %v821_v56 = vadd.f32 %v820_v2, %v2315_v11  ;;  %v841_v58 = vadd.f32 %v840_v20, %v2316_v13 }
 0x4cc   :  { %v863_v27 = vadd.f32 %v1071_v1, %v821_v56  ;;  %v883_v31 = vadd.f32 %v1072_v3, %v841_v58 }
 0x4ce   :  { %v1074_v60 = vmul.f32 -1.442695, %v863_v27  ;;  %v1075_v59 = vmul.f32 -1.442695, %v883_v31 }
 0x4d0   :  { %1146 = vpow2.f32 %v1074_v60 }
 0x4d1   :  { %1148 = vpow2.f32 %v1075_v59 }
 0x4d6   :  { %v1147_v37 = vpop.eup %1146 }
 0x4d7   :  { %v1149_v40 = vpop.eup %1148  ;;  %v867_v45 = vadd.f32 1.0, %v1147_v37 }
 0x4d8   :  { %v887_v5 = vadd.f32 1.0, %v1149_v40  ;;  %v1078_v40 = vld [vmem:[%s2261_s1 + $0xb8] sm:$0xff] }
 0x4d9   :  { %1150 = vrcp.f32 %v867_v45  ;;  %v879_v18 = vand.u32 2147483648, %v867_v45  ;;  %v877_v25 = vand.u32 2147483647, %v867_v45  ;;  %vm873_vm15 = vweird.f32 %v867_v45 }
 0x4da   :  { %1152 = vrcp.f32 %v887_v5  ;;  %v899_v26 = vand.u32 2147483648, %v887_v5  ;;  %vm893_vm3 = vweird.f32 %v887_v5  ;;  %v897_v46 = vand.u32 2147483647, %v887_v5 }
 0x4db   :  { %v880_v41 = vor.u32 1.1754944e-38, %v879_v18  ;;  %vm878_vm1 = vcmp.eq.f32.partialorder %v877_v25, 8.507059e+37 }
 0x4dc   :  { %v900_v30 = vor.u32 1.1754944e-38, %v899_v26  ;;  %vm898_vm5 = vcmp.eq.f32.partialorder %v897_v46, 8.507059e+37 }
 0x4df   :  { %v1151_v6 = vpop.eup %1150 }
 0x4e0   :  { %v1153_v21 = vpop.eup %1152  ;;  %v869_v24 = vmul.f32 %v1151_v6, %v867_v45  ;;  %vm874_vm14 = vweird.f32 %v1151_v6 }
 0x4e1   :  { %v889_v29 = vmul.f32 %v1153_v21, %v887_v5  ;;  %vm875_vm0 = vmor %vm873_vm15, %vm874_vm14  ;;  %vm894_vm2 = vweird.f32 %v1153_v21  ;;  %vm1037_vm15 = vcmp.eq.s32.totalorder %v1036_v28, 1 }
 0x4e2   :  { %v870_v4 = vsub.f32 1.0, %v869_v24  ;;  %vm895_vm4 = vmor %vm893_vm3, %vm894_vm2 }
 0x4e3   :  { %v890_v22 = vsub.f32 1.0, %v889_v29 }
 0x4e4   :  { %v871_v52 = vmul.f32 %v1151_v6, %v870_v4 }
 0x4e5   :  { %v891_v39 = vmul.f32 %v1153_v21, %v890_v22 }
 0x4e6   :  { %v872_v63 = vadd.f32 %v1151_v6, %v871_v52 }
 0x4e7   :  { %v892_v48 = vadd.f32 %v1153_v21, %v891_v39 }
 0x4e8   :  { %v876_v23 = vsel %vm875_vm0, %v1151_v6, %v872_v63 }
 0x4e9   :  { %v881_v57 = vsel %vm878_vm1, %v880_v41, %v876_v23  ;;  %v896_v55 = vsel %vm895_vm4, %v1153_v21, %v892_v48 }
 0x4ea   :  { %v903_v54 = vmul.f32 %v881_v57, %v861_v43  ;;  %v901_v61 = vsel %vm898_vm5, %v900_v30, %v896_v55 }
 0x4eb   :  { %v906_v62 = vsub.f32 1.0, %v901_v61  ;;  %v908_v9 = vmul.f32 %v901_v61, %v2217_v0 }
 0x4ec   :  { %v904_v53 = vadd.f32 %v1073_v34, %v903_v54 }
 0x4ee   :  { %1154 = vtanh.f32 %v904_v53 }
 0x4f4   :  { %v1155_v19 = vpop.eup %1154 }
 0x4f5   :  { %v907_v8 = vmul.f32 %v1155_v19, %v906_v62 }
 0x4f7   :  { %v909_v10 = vadd.f32 %v908_v9, %v907_v8 }
 0x4f9   :  { %v2236_v12 = vsel %vm917_vm6, %v909_v10, %v2217_v0 }
 0x4fa   :  { %939 = vmatmul.f32.vlgmr.msrb.gmra.mxu1 %v2236_v12  ;;  %959 = vmatmul.f32.vlgmr.msrb.gmra.mxu2 %v2236_v12 }
 0x4fb   :  { %979 = vmatmul.f32.vlgmr.msrb.gmra.mxu3 %v2236_v12 }
 0x577   :  { %v940_v42 = vpop.f32.mrf.mxu1 }
 0x578   :  { %v941_v15 = vadd.f32 %v940_v42, %v2315_v11 }
 0x57a   :  { %v983_v16 = vadd.f32 %v1076_v14, %v941_v15 }
 0x57c   :  { %v1079_v17 = vmul.f32 -1.442695, %v983_v16 }
 0x57d   :  { %v960_v33 = vpop.f32.mrf.mxu2 }
 0x57e   :  { %1156 = vpow2.f32 %v1079_v17  ;;  %v961_v35 = vadd.f32 %v960_v33, %v2316_v13  ;;  %v980_v58 = vpop.f32.mrf.mxu3 }
 0x57f   :  { %v981_v59 = vadd.f32 %v980_v58, %v2307_v50 }
 0x580   :  { %v1003_v36 = vadd.f32 %v1077_v32, %v961_v35 }
 0x582   :  { %v1080_v38 = vmul.f32 -1.442695, %v1003_v36 }
 0x584   :  { %v1157_v44 = vpop.eup %1156  ;;  %1158 = vpow2.f32 %v1080_v38 }
 0x585   :  { %v987_v47 = vadd.f32 1.0, %v1157_v44 }
 0x587   :  { %1160 = vrcp.f32 %v987_v47  ;;  %v999_v2 = vand.u32 2147483648, %v987_v47  ;;  %v997_v20 = vand.u32 2147483647, %v987_v47  ;;  %vm993_vm8 = vweird.f32 %v987_v47 }
 0x589   :  { %v1000_v31 = vor.u32 1.1754944e-38, %v999_v2  ;;  %vm998_vm10 = vcmp.eq.f32.partialorder %v997_v20, 8.507059e+37 }
 0x58a   :  { %v1159_v49 = vpop.eup %1158 }
 0x58b   :  { %v1007_v51 = vadd.f32 1.0, %v1159_v49 }
 0x58d   :  { %v1161_v0 = vpop.eup %1160  ;;  %1162 = vrcp.f32 %v1007_v51  ;;  %v1019_v6 = vand.u32 2147483648, %v1007_v51  ;;  %v1017_v24 = vand.u32 2147483647, %v1007_v51  ;;  %vm1013_vm12 = vweird.f32 %v1007_v51 }
 0x58e   :  { %v989_v11 = vmul.f32 %v1161_v0, %v987_v47  ;;  %vm994_vm7 = vweird.f32 %v1161_v0 }
 0x58f   :  { %vm995_vm9 = vmor %vm993_vm8, %vm994_vm7  ;;  %v1020_v18 = vor.u32 1.1754944e-38, %v1019_v6  ;;  %vm1018_vm14 = vcmp.eq.f32.partialorder %v1017_v24, 8.507059e+37 }
 0x590   :  { %v990_v1 = vsub.f32 1.0, %v989_v11 }
 0x592   :  { %v991_v3 = vmul.f32 %v1161_v0, %v990_v1 }
 0x593   :  { %v1163_v56 = vpop.eup %1162 }
 0x594   :  { %v1009_v27 = vmul.f32 %v1163_v56, %v1007_v51  ;;  %v992_v13 = vadd.f32 %v1161_v0, %v991_v3  ;;  %vm1014_vm11 = vweird.f32 %v1163_v56 }
 0x595   :  { %vm1015_vm13 = vmor %vm1013_vm12, %vm1014_vm11 }
 0x596   :  { %v1010_v60 = vsub.f32 1.0, %v1009_v27  ;;  %v996_v37 = vsel %vm995_vm9, %v1161_v0, %v992_v13 }
 0x597   :  { %v1001_v45 = vsel %vm998_vm10, %v1000_v31, %v996_v37 }
 0x598   :  { %v1011_v5 = vmul.f32 %v1163_v56, %v1010_v60  ;;  %v1023_v21 = vmul.f32 %v1001_v45, %v981_v59 }
 0x59a   :  { %v1012_v29 = vadd.f32 %v1163_v56, %v1011_v5  ;;  %v1024_v4 = vadd.f32 %v1078_v40, %v1023_v21 }
 0x59c   :  { %v1016_v22 = vsel %vm1015_vm13, %v1163_v56, %v1012_v29  ;;  %1164 = vtanh.f32 %v1024_v4 }
 0x59d   :  { %v1021_v50 = vsel %vm1018_vm14, %v1020_v18, %v1016_v22 }
 0x59e   :  { %v1026_v52 = vsub.f32 1.0, %v1021_v50  ;;  %v1028_v63 = vmul.f32 %v1021_v50, %v2236_v12 }
 0x5a2   :  { %v1165_v25 = vpop.eup %1164 }
 0x5a3   :  { %v1027_v39 = vmul.f32 %v1165_v25, %v1026_v52 }
 0x5a5   :  { %v1029_v41 = vadd.f32 %v1028_v63, %v1027_v39 }
 0x5a7   :  { %v1038_v43 = vsel %vm1037_vm15, %v1029_v41, %v2236_v12 }
 0x5a8   :  { %1039 = vst [vmem:[%s2262_s4] sm:$0xff] %v1038_v43 }

</bundles_post_ra>
